<compile_context>
chip_gen: v5e
topology: v5e:2x2
jax: 0.10.0
libtpu: 0.0.40
codegen_flags: <defaults>
</compile_context>

<pallas_src>
import functools

import jax
import jax.numpy as jnp
from jax import lax
from jax.experimental import pallas as pl
from jax.experimental.pallas import tpu as pltpu

EPS = 1e-5
ECA_K = 3      # int(abs((log2(96) + 1) / 2)) == 3, odd -> kernel 3, padding 1
LANE = 128


def _round_up(n, m):
    return (n + m - 1) // m * m


def _prelu(v, alpha):
    return jnp.where(v >= 0, v, alpha * v)


def _bn_stats(v, mask_col, inv_n):
    """Masked train-mode BN stats (biased var) via two MXU matmuls.

    Mean-shifted two-pass form: mu first, then var = E[(v-mu)^2] with the
    validity mask folded into the reduction column (padded lanes excluded).
    """
    mu = jnp.dot(v, mask_col, preferred_element_type=jnp.float32) * inv_n
    d = v - mu
    var = jnp.dot(d * d, mask_col, preferred_element_type=jnp.float32) * inv_n
    return mu, var


def _phantom_layer_kernel(
    x_ref,        # (Cin, B*Lp)   VMEM
    segm_ref,     # (B*Lp, B)     VMEM  (1/L at valid rows of batch b)
    mask_ref,     # (B*Lp, 1)     VMEM  (1.0 at valid rows)
    w_eca_ref,    # (3,)          SMEM
    w_pw_ref,     # (Cp, Cin)     VMEM
    b_pw_ref,     # (Cp, 1)       VMEM
    a_pw_ref,     # (1,)          SMEM
    g_pw_ref,     # (Cp, 1)       VMEM
    be_pw_ref,    # (Cp, 1)       VMEM
    w_dw_ref,     # (Cc, K)       VMEM
    a_dw_ref,     # (1,)          SMEM
    g_dw_ref,     # (Cc, 1)       VMEM
    be_dw_ref,    # (Cc, 1)       VMEM
    a1_ref,       # (1,)          SMEM
    g1_ref,       # (Cout, 1)     VMEM
    be1_ref,      # (Cout, 1)     VMEM
    o_ref,        # (Cout, B*Lp)  VMEM
    ypad_ref,     # (Cc, B*SEG)   VMEM scratch: zero-padded depthwise slab
    z_ref,        # (Cc, B*Lp)    VMEM scratch: lane-contiguous cheap half
    *, B, L, Lp,
):
    x = x_ref[...]
    Cin, _ = x.shape
    Cp = w_pw_ref.shape[0]
    Cc, K = w_dw_ref.shape
    pad = (K - 1) // 2
    SEG = Lp + 2 * pad
    inv_n = 1.0 / (B * L)                       # true element count (masked)
    mask_col = mask_ref[...]

    # ------------------- ECA gate (identity path) -------------------
    # Per-batch pooled means for ALL batches with one MXU matmul (1/L and the
    # validity mask are folded into segm); 3-tap channel conv as a tiny
    # banded (Cin, Cin) matmul built from iotas; sigmoid -> (Cin, B) gates.
    pooled = jnp.dot(x, segm_ref[...],
                     preferred_element_type=jnp.float32)          # (Cin, B)
    w0 = w_eca_ref[0]
    w1 = w_eca_ref[1]
    w2 = w_eca_ref[2]
    r = lax.broadcasted_iota(jnp.int32, (Cin, Cin), 0)
    c = lax.broadcasted_iota(jnp.int32, (Cin, Cin), 1)
    band = (jnp.where(c == r - 1, w0, 0.0)
            + jnp.where(c == r, w1, 0.0)
            + jnp.where(c == r + 1, w2, 0.0))
    gates = jax.nn.sigmoid(
        jnp.dot(band, pooled, preferred_element_type=jnp.float32))  # (Cin, B)

    # ------------------- PhantomConv: pointwise (primary) -------------------
    # Single lane-dense MXU matmul over the whole flattened batch.
    y = jnp.dot(w_pw_ref[...], x,
                preferred_element_type=jnp.float32) + b_pw_ref[...]
    y = _prelu(y, a_pw_ref[0])
    mu, var = _bn_stats(y, mask_col, inv_n)
    y = (y - mu) * (g_pw_ref[...] * lax.rsqrt(var + EPS)) + be_pw_ref[...]

    # bn1 statistics for the primary half, streamed: prelu(y) is not kept
    # live across the depthwise section (recomputed in the final write).
    alpha1 = a1_ref[0]
    g1 = g1_ref[...]
    be1 = be1_ref[...]
    mu1, var1 = _bn_stats(_prelu(y, alpha1), mask_col, inv_n)
    sc1 = g1[0:Cp, :] * lax.rsqrt(var1 + EPS)
    sh1 = be1[0:Cp, :] - mu1 * sc1

    # ------------------- PhantomConv: depthwise (cheap) -------------------
    # Zero the slab, copy every batch's valid y segment (stores only,
    # disjoint regions -> no write->read serialization), then run the K-tap
    # FMA loop once over the whole slab (weight broadcasts emitted once/tap).
    ypad_ref[...] = jnp.zeros_like(ypad_ref)
    for b in range(B):                      # static unroll; B is small
        ypad_ref[:, b * SEG + pad:b * SEG + pad + L] = y[:, b * Lp:b * Lp + L]

    w_dw = w_dw_ref[...]
    W = B * SEG - (K - 1)
    acc = w_dw[:, 0:1] * ypad_ref[:, 0:W]
    for k in range(1, K):                   # static unroll over the 31 taps
        acc = acc + w_dw[:, k:k + 1] * ypad_ref[:, k:k + W]

    # Re-pack per batch into the lane-contiguous (Cc, B*Lp) layout.
    for b in range(B):
        z_ref[:, b * Lp:(b + 1) * Lp] = acc[:, b * SEG:b * SEG + Lp]
    z = _prelu(z_ref[...], a_dw_ref[0])
    mu, var = _bn_stats(z, mask_col, inv_n)
    z = (z - mu) * (g_dw_ref[...] * lax.rsqrt(var + EPS)) + be_dw_ref[...]

    # bn1 statistics for the cheap half (streamed, as above).
    mu2, var2 = _bn_stats(_prelu(z, alpha1), mask_col, inv_n)
    sc2 = g1[Cp:Cp + Cc, :] * lax.rsqrt(var2 + EPS)
    sh2 = be1[Cp:Cp + Cc, :] - mu2 * sc2

    # ---------- final PReLU + BN + ECA residual, per channel half ----------
    # bn1 is per-channel, so its statistics split across the two halves; each
    # half + gated residual is written straight to a 128-lane-aligned slice
    # of the output (Lp is a multiple of 128).  The gate stays a tiny
    # (Cin, 1) column per batch — no (Cin, B*Lp) gate slab is materialized.
    for b in range(B):                      # static unroll; B is small
        sl = slice(b * Lp, (b + 1) * Lp)
        g_b = gates[:, b:b + 1]
        o_ref[0:Cp, sl] = (_prelu(y[:, sl], alpha1) * sc1 + sh1
                           + g_b[0:Cp, :] * x[0:Cp, sl]).astype(o_ref.dtype)
        o_ref[Cp:Cp + Cc, sl] = (_prelu(z[:, sl], alpha1) * sc2 + sh2
                                 + g_b[Cp:Cp + Cc, :] * x[Cp:Cp + Cc, sl]
                                 ).astype(o_ref.dtype)


@jax.jit
def phantom_layer(x, params):
    B, Cin, L = x.shape
    Cp = params["w_pw"].shape[0]
    Cc, K = params["w_dw"].shape
    Cout = Cp + Cc
    assert Cin == Cout, "residual add needs in_channels == out_channels"
    assert Cp == Cc, "depthwise consumes the primary half: needs Cp == Cc"
    pad = (K - 1) // 2
    Lp = _round_up(L, LANE)          # lane-align every per-batch segment
    SEG = Lp + 2 * pad

    # Layout plumbing: NCL -> (C, B, L) -> zero-pad L to Lp -> (C, B*Lp).
    xk = jnp.transpose(x, (1, 0, 2))
    xk = jnp.pad(xk, ((0, 0), (0, 0), (0, Lp - L)))
    xk = xk.reshape(Cin, B * Lp)

    # Constant segment / validity matrices (trace-time constants) used for
    # the MXU-side pooled means and masked BN statistics.
    valid = (jnp.arange(Lp) < L).astype(jnp.float32)                  # (Lp,)
    eye_b = jnp.eye(B, dtype=jnp.float32)
    seg = (eye_b[:, None, :] * valid[None, :, None]).reshape(B * Lp, B)
    segm = seg / float(L)                                             # means
    mask_col = jnp.sum(seg, axis=1, keepdims=True)                # (B*Lp, 1)

    vmem = pl.BlockSpec(memory_space=pltpu.MemorySpace.VMEM)
    smem = pl.BlockSpec(memory_space=pltpu.MemorySpace.SMEM)

    out = pl.pallas_call(
        functools.partial(_phantom_layer_kernel, B=B, L=L, Lp=Lp),
        out_shape=jax.ShapeDtypeStruct((Cout, B * Lp), jnp.float32),
        in_specs=[
            vmem, vmem, vmem,               # x, segm, mask
            smem,                           # w_eca
            vmem, vmem, smem, vmem, vmem,   # pointwise: W, b, alpha, gamma, beta
            vmem, smem, vmem, vmem,         # depthwise: W, alpha, gamma, beta
            smem, vmem, vmem,               # layer: alpha1, gamma1, beta1
        ],
        out_specs=vmem,
        scratch_shapes=[
            pltpu.VMEM((Cc, B * SEG), jnp.float32),   # zero-padded dw slab
            pltpu.VMEM((Cc, B * Lp), jnp.float32),    # lane-contiguous z
        ],
        # No vmem_limit override: the working set at these sizes is far below
        # the default scoped budget on v5e/v6e/v7x (see tiling TODO above).
    )(
        xk, segm, mask_col,
        params["w_eca"],
        params["w_pw"], params["b_pw"], params["a_pw"],
        params["g_pw"], params["be_pw"],
        params["w_dw"], params["a_dw"], params["g_dw"], params["be_dw"],
        params["a1"], params["g1"], params["be1"],
    )
    out = out.reshape(Cout, B, Lp)[:, :, :L]
    return jnp.transpose(out, (1, 0, 2))


def init_params(key, in_channels, out_channels, kernel_size=31):
    assert out_channels % 2 == 0, "PhantomConv needs even out_channels"
    cp = out_channels // 2          # primary channels (pointwise)
    cc = out_channels - cp          # cheap channels (depthwise)
    ks = jax.random.split(key, 10)

    def u(k, shape, scale):
        return jax.random.uniform(k, shape, jnp.float32, -scale, scale)

    return dict(
        w_eca=u(ks[0], (ECA_K,), 0.5),
        w_pw=u(ks[1], (cp, in_channels), 0.3),
        b_pw=u(ks[2], (cp, 1), 0.1),
        a_pw=jnp.full((1,), 0.25, jnp.float32),      # nn.PReLU default
        g_pw=1.0 + u(ks[3], (cp, 1), 0.1),
        be_pw=u(ks[4], (cp, 1), 0.1),
        w_dw=u(ks[5], (cc, kernel_size), 0.2),
        a_dw=jnp.full((1,), 0.25, jnp.float32),
        g_dw=1.0 + u(ks[6], (cc, 1), 0.1),
        be_dw=u(ks[7], (cc, 1), 0.1),
        a1=jnp.full((1,), 0.25, jnp.float32),
        g1=1.0 + u(ks[8], (out_channels, 1), 0.1),
        be1=u(ks[9], (out_channels, 1), 0.1),
    )


def phantom_layer_ref(x, p):
    """Pure-JAX reference with identical math (for validation)."""
    B, C, L = x.shape
    # ECA
    pooled = jnp.mean(x, axis=2)                            # (B, C)
    pp = jnp.pad(pooled, ((0, 0), (1, 1)))
    conv = (p["w_eca"][0] * pp[:, 0:C] + p["w_eca"][1] * pp[:, 1:C + 1]
            + p["w_eca"][2] * pp[:, 2:C + 2])
    identity = jax.nn.sigmoid(conv)[:, :, None] * x
    # pointwise
    y = jnp.einsum("oc,bcl->bol", p["w_pw"], x,
                   precision="highest") + p["b_pw"][None]
    y = jnp.where(y >= 0, y, p["a_pw"][0] * y)
    mu = jnp.mean(y, axis=(0, 2), keepdims=True)
    var = jnp.mean((y - mu) ** 2, axis=(0, 2), keepdims=True)
    y = p["g_pw"][None] * (y - mu) * lax.rsqrt(var + EPS) + p["be_pw"][None]
    # depthwise
    K = p["w_dw"].shape[1]
    pad = (K - 1) // 2
    ypad = jnp.pad(y, ((0, 0), (0, 0), (pad, pad)))
    z = jnp.zeros_like(y)
    for k in range(K):
        z = z + p["w_dw"][:, k][None, :, None] * ypad[:, :, k:k + L]
    z = jnp.where(z >= 0, z, p["a_dw"][0] * z)
    mu = jnp.mean(z, axis=(0, 2), keepdims=True)
    var = jnp.mean((z - mu) ** 2, axis=(0, 2), keepdims=True)
    z = p["g_dw"][None] * (z - mu) * lax.rsqrt(var + EPS) + p["be_dw"][None]
    # concat + PReLU + BN + residual
    h = jnp.concatenate([y, z], axis=1)
    h = jnp.where(h >= 0, h, p["a1"][0] * h)
    mu = jnp.mean(h, axis=(0, 2), keepdims=True)
    var = jnp.mean((h - mu) ** 2, axis=(0, 2), keepdims=True)
    h = p["g1"][None] * (h - mu) * lax.rsqrt(var + EPS) + p["be1"][None]
    return h + identity


if __name__ == "__main__":
    key = jax.random.PRNGKey(0)
    kx, kp = jax.random.split(key)

    # Residual add requires in_channels == out_channels.  L is deliberately
    # not a multiple of 128 to exercise the lane-padding / masked-stats path.
    B, C, L = 2, 32, 96
    x = jax.random.normal(kx, (B, C, L), jnp.float32)
    params = init_params(kp, in_channels=C, out_channels=C, kernel_size=31)

    out = phantom_layer(x, params)
    out = jax.block_until_ready(out)

    ref = phantom_layer_ref(x, params)
    assert out.shape == (B, C, L)
    assert bool(jnp.all(jnp.isfinite(out)))
    assert bool(jnp.allclose(out, ref, rtol=5e-3, atol=5e-3))
    print("KERNEL_OK")
</pallas_src>

<mosaic_0001>
module attributes {stable_mosaic.version = 11 : i64} {
  func.func @_phantom_layer_kernel(%arg0: memref<32x256xf32, #tpu.memory_space<vmem>>, %arg1: memref<256x2xf32, #tpu.memory_space<vmem>>, %arg2: memref<256x1xf32, #tpu.memory_space<vmem>>, %arg3: memref<3xf32, #tpu.memory_space<smem>>, %arg4: memref<16x32xf32, #tpu.memory_space<vmem>>, %arg5: memref<16x1xf32, #tpu.memory_space<vmem>>, %arg6: memref<1xf32, #tpu.memory_space<smem>>, %arg7: memref<16x1xf32, #tpu.memory_space<vmem>>, %arg8: memref<16x1xf32, #tpu.memory_space<vmem>>, %arg9: memref<16x31xf32, #tpu.memory_space<vmem>>, %arg10: memref<1xf32, #tpu.memory_space<smem>>, %arg11: memref<16x1xf32, #tpu.memory_space<vmem>>, %arg12: memref<16x1xf32, #tpu.memory_space<vmem>>, %arg13: memref<1xf32, #tpu.memory_space<smem>>, %arg14: memref<32x1xf32, #tpu.memory_space<vmem>>, %arg15: memref<32x1xf32, #tpu.memory_space<vmem>>, %arg16: memref<32x256xf32, #tpu.memory_space<vmem>>, %arg17: memref<16x316xf32, #tpu.memory_space<vmem>>, %arg18: memref<16x256xf32, #tpu.memory_space<vmem>>) attributes {dimension_semantics = [], scalar_prefetch = 0 : i64, scratch_operands = 2 : i64, tpu.core_type = #tpu.core_type<tc>} {
    %c0 = arith.constant 0 : index
    %c0_0 = arith.constant 0 : index
    %0 = vector.load %arg0[%c0, %c0_0] : memref<32x256xf32, #tpu.memory_space<vmem>>, vector<32x256xf32>
    %c0_1 = arith.constant 0 : index
    %c0_2 = arith.constant 0 : index
    %1 = vector.load %arg2[%c0_1, %c0_2] : memref<256x1xf32, #tpu.memory_space<vmem>>, vector<256x1xf32>
    %c0_3 = arith.constant 0 : index
    %c0_4 = arith.constant 0 : index
    %2 = vector.load %arg1[%c0_3, %c0_4] : memref<256x2xf32, #tpu.memory_space<vmem>>, vector<256x2xf32>
    %cst = arith.constant dense<0.000000e+00> : vector<32x2xf32>
    %3 = tpu.matmul %0, %2, %cst {dimension_numbers = #tpu.dot_dimension_numbers<[1], [0], [0], [1], [0, 0, 1, 1], [], []>} : vector<32x256xf32>, vector<256x2xf32>, vector<32x2xf32> -> vector<32x2xf32>
    %c0_5 = arith.constant 0 : index
    %4 = memref.load %arg3[%c0_5] : memref<3xf32, #tpu.memory_space<smem>>
    %c1 = arith.constant 1 : index
    %5 = memref.load %arg3[%c1] : memref<3xf32, #tpu.memory_space<smem>>
    %c2 = arith.constant 2 : index
    %6 = memref.load %arg3[%c2] : memref<3xf32, #tpu.memory_space<smem>>
    %7 = tpu.iota {dimensions = array<i32: 0>} : vector<32x32xi32>
    %8 = tpu.iota {dimensions = array<i32: 1>} : vector<32x32xi32>
    %c1_i32 = arith.constant 1 : i32
    %9 = vector.broadcast %c1_i32 : i32 to vector<32x32xi32>
    %10 = arith.subi %7, %9 : vector<32x32xi32>
    %11 = arith.cmpi eq, %8, %10 : vector<32x32xi32>
    %cst_6 = arith.constant 0.000000e+00 : f32
    %12 = vector.broadcast %4 : f32 to vector<32x32xf32>
    %13 = vector.broadcast %cst_6 : f32 to vector<32x32xf32>
    %14 = arith.select %11, %12, %13 : vector<32x32xi1>, vector<32x32xf32>
    %15 = arith.cmpi eq, %8, %7 : vector<32x32xi32>
    %cst_7 = arith.constant 0.000000e+00 : f32
    %16 = vector.broadcast %5 : f32 to vector<32x32xf32>
    %17 = vector.broadcast %cst_7 : f32 to vector<32x32xf32>
    %18 = arith.select %15, %16, %17 : vector<32x32xi1>, vector<32x32xf32>
    %19 = arith.addf %14, %18 : vector<32x32xf32>
    %c1_i32_8 = arith.constant 1 : i32
    %20 = vector.broadcast %c1_i32_8 : i32 to vector<32x32xi32>
    %21 = arith.addi %7, %20 : vector<32x32xi32>
    %22 = arith.cmpi eq, %8, %21 : vector<32x32xi32>
    %cst_9 = arith.constant 0.000000e+00 : f32
    %23 = vector.broadcast %6 : f32 to vector<32x32xf32>
    %24 = vector.broadcast %cst_9 : f32 to vector<32x32xf32>
    %25 = arith.select %22, %23, %24 : vector<32x32xi1>, vector<32x32xf32>
    %26 = arith.addf %19, %25 : vector<32x32xf32>
    %cst_10 = arith.constant dense<0.000000e+00> : vector<32x2xf32>
    %27 = tpu.matmul %26, %3, %cst_10 {dimension_numbers = #tpu.dot_dimension_numbers<[1], [0], [0], [1], [0, 0, 1, 1], [], []>} : vector<32x32xf32>, vector<32x2xf32>, vector<32x2xf32> -> vector<32x2xf32>
    %28 = arith.negf %27 : vector<32x2xf32>
    %29 = math.exp %28 : vector<32x2xf32>
    %cst_11 = arith.constant 1.000000e+00 : f32
    %30 = vector.broadcast %cst_11 : f32 to vector<32x2xf32>
    %31 = arith.addf %30, %29 : vector<32x2xf32>
    %32 = arith.divf %30, %31 : vector<32x2xf32>
    %c0_12 = arith.constant 0 : index
    %c0_13 = arith.constant 0 : index
    %33 = vector.load %arg4[%c0_12, %c0_13] : memref<16x32xf32, #tpu.memory_space<vmem>>, vector<16x32xf32>
    %cst_14 = arith.constant dense<0.000000e+00> : vector<16x256xf32>
    %34 = tpu.matmul %33, %0, %cst_14 {dimension_numbers = #tpu.dot_dimension_numbers<[1], [0], [0], [1], [0, 0, 1, 1], [], []>} : vector<16x32xf32>, vector<32x256xf32>, vector<16x256xf32> -> vector<16x256xf32>
    %c0_15 = arith.constant 0 : index
    %c0_16 = arith.constant 0 : index
    %35 = vector.load %arg5[%c0_15, %c0_16] : memref<16x1xf32, #tpu.memory_space<vmem>>, vector<16x1xf32>
    %36 = vector.broadcast %35 : vector<16x1xf32> to vector<16x256xf32>
    %37 = arith.addf %34, %36 : vector<16x256xf32>
    %c0_17 = arith.constant 0 : index
    %38 = memref.load %arg6[%c0_17] : memref<1xf32, #tpu.memory_space<smem>>
    %cst_18 = arith.constant 0.000000e+00 : f32
    %39 = vector.broadcast %cst_18 : f32 to vector<16x256xf32>
    %40 = arith.cmpf oge, %37, %39 : vector<16x256xf32>
    %41 = vector.broadcast %38 : f32 to vector<16x256xf32>
    %42 = arith.mulf %41, %37 : vector<16x256xf32>
    %43 = arith.select %40, %37, %42 : vector<16x256xi1>, vector<16x256xf32>
    %cst_19 = arith.constant dense<0.000000e+00> : vector<16x1xf32>
    %44 = tpu.matmul %43, %1, %cst_19 {dimension_numbers = #tpu.dot_dimension_numbers<[1], [0], [0], [1], [0, 0, 1, 1], [], []>} : vector<16x256xf32>, vector<256x1xf32>, vector<16x1xf32> -> vector<16x1xf32>
    %cst_20 = arith.constant 0.00520833349 : f32
    %45 = vector.broadcast %cst_20 : f32 to vector<16x1xf32>
    %46 = arith.mulf %44, %45 : vector<16x1xf32>
    %47 = vector.broadcast %46 : vector<16x1xf32> to vector<16x256xf32>
    %48 = arith.subf %43, %47 : vector<16x256xf32>
    %49 = arith.mulf %48, %48 : vector<16x256xf32>
    %cst_21 = arith.constant dense<0.000000e+00> : vector<16x1xf32>
    %50 = tpu.matmul %49, %1, %cst_21 {dimension_numbers = #tpu.dot_dimension_numbers<[1], [0], [0], [1], [0, 0, 1, 1], [], []>} : vector<16x256xf32>, vector<256x1xf32>, vector<16x1xf32> -> vector<16x1xf32>
    %cst_22 = arith.constant 0.00520833349 : f32
    %51 = vector.broadcast %cst_22 : f32 to vector<16x1xf32>
    %52 = arith.mulf %50, %51 : vector<16x1xf32>
    %53 = vector.broadcast %46 : vector<16x1xf32> to vector<16x256xf32>
    %54 = arith.subf %43, %53 : vector<16x256xf32>
    %c0_23 = arith.constant 0 : index
    %c0_24 = arith.constant 0 : index
    %55 = vector.load %arg7[%c0_23, %c0_24] : memref<16x1xf32, #tpu.memory_space<vmem>>, vector<16x1xf32>
    %cst_25 = arith.constant 9.99999974E-6 : f32
    %56 = vector.broadcast %cst_25 : f32 to vector<16x1xf32>
    %57 = arith.addf %52, %56 : vector<16x1xf32>
    %58 = math.rsqrt %57 : vector<16x1xf32>
    %59 = arith.mulf %55, %58 : vector<16x1xf32>
    %60 = vector.broadcast %59 : vector<16x1xf32> to vector<16x256xf32>
    %61 = arith.mulf %54, %60 : vector<16x256xf32>
    %c0_26 = arith.constant 0 : index
    %c0_27 = arith.constant 0 : index
    %62 = vector.load %arg8[%c0_26, %c0_27] : memref<16x1xf32, #tpu.memory_space<vmem>>, vector<16x1xf32>
    %63 = vector.broadcast %62 : vector<16x1xf32> to vector<16x256xf32>
    %64 = arith.addf %61, %63 : vector<16x256xf32>
    %c0_28 = arith.constant 0 : index
    %65 = memref.load %arg13[%c0_28] : memref<1xf32, #tpu.memory_space<smem>>
    %c0_29 = arith.constant 0 : index
    %c0_30 = arith.constant 0 : index
    %66 = vector.load %arg14[%c0_29, %c0_30] : memref<32x1xf32, #tpu.memory_space<vmem>>, vector<32x1xf32>
    %c0_31 = arith.constant 0 : index
    %c0_32 = arith.constant 0 : index
    %67 = vector.load %arg15[%c0_31, %c0_32] : memref<32x1xf32, #tpu.memory_space<vmem>>, vector<32x1xf32>
    %cst_33 = arith.constant 0.000000e+00 : f32
    %68 = vector.broadcast %cst_33 : f32 to vector<16x256xf32>
    %69 = arith.cmpf oge, %64, %68 : vector<16x256xf32>
    %70 = vector.broadcast %65 : f32 to vector<16x256xf32>
    %71 = arith.mulf %70, %64 : vector<16x256xf32>
    %72 = arith.select %69, %64, %71 : vector<16x256xi1>, vector<16x256xf32>
    %cst_34 = arith.constant dense<0.000000e+00> : vector<16x1xf32>
    %73 = tpu.matmul %72, %1, %cst_34 {dimension_numbers = #tpu.dot_dimension_numbers<[1], [0], [0], [1], [0, 0, 1, 1], [], []>} : vector<16x256xf32>, vector<256x1xf32>, vector<16x1xf32> -> vector<16x1xf32>
    %cst_35 = arith.constant 0.00520833349 : f32
    %74 = vector.broadcast %cst_35 : f32 to vector<16x1xf32>
    %75 = arith.mulf %73, %74 : vector<16x1xf32>
    %76 = vector.broadcast %75 : vector<16x1xf32> to vector<16x256xf32>
    %77 = arith.subf %72, %76 : vector<16x256xf32>
    %78 = arith.mulf %77, %77 : vector<16x256xf32>
    %cst_36 = arith.constant dense<0.000000e+00> : vector<16x1xf32>
    %79 = tpu.matmul %78, %1, %cst_36 {dimension_numbers = #tpu.dot_dimension_numbers<[1], [0], [0], [1], [0, 0, 1, 1], [], []>} : vector<16x256xf32>, vector<256x1xf32>, vector<16x1xf32> -> vector<16x1xf32>
    %cst_37 = arith.constant 0.00520833349 : f32
    %80 = vector.broadcast %cst_37 : f32 to vector<16x1xf32>
    %81 = arith.mulf %79, %80 : vector<16x1xf32>
    %82 = vector.extract_strided_slice %66 {offsets = [0, 0], sizes = [16, 1], strides = [1, 1]} : vector<32x1xf32> to vector<16x1xf32>
    %cst_38 = arith.constant 9.99999974E-6 : f32
    %83 = vector.broadcast %cst_38 : f32 to vector<16x1xf32>
    %84 = arith.addf %81, %83 : vector<16x1xf32>
    %85 = math.rsqrt %84 : vector<16x1xf32>
    %86 = arith.mulf %82, %85 : vector<16x1xf32>
    %87 = vector.extract_strided_slice %67 {offsets = [0, 0], sizes = [16, 1], strides = [1, 1]} : vector<32x1xf32> to vector<16x1xf32>
    %88 = arith.mulf %75, %86 : vector<16x1xf32>
    %89 = arith.subf %87, %88 : vector<16x1xf32>
    %cst_39 = arith.constant 0.000000e+00 : f32
    %90 = vector.broadcast %cst_39 : f32 to vector<16x316xf32>
    %c0_40 = arith.constant 0 : index
    %c0_41 = arith.constant 0 : index
    %91 = vector.load %arg17[%c0_40, %c0_41] : memref<16x316xf32, #tpu.memory_space<vmem>>, vector<16x316xf32>
    tpu.vector_store %arg17[%c0_40, %c0_41], %90 {strides = array<i32>} : memref<16x316xf32, #tpu.memory_space<vmem>>, vector<16x316xf32>,
    %92 = vector.extract_strided_slice %64 {offsets = [0, 0], sizes = [16, 96], strides = [1, 1]} : vector<16x256xf32> to vector<16x96xf32>
    %c0_42 = arith.constant 0 : index
    %c15 = arith.constant 15 : index
    %93 = vector.load %arg17[%c0_42, %c15] : memref<16x316xf32, #tpu.memory_space<vmem>>, vector<16x96xf32>
    tpu.vector_store %arg17[%c0_42, %c15], %92 {strides = array<i32>} : memref<16x316xf32, #tpu.memory_space<vmem>>, vector<16x96xf32>,
    %94 = vector.extract_strided_slice %64 {offsets = [0, 128], sizes = [16, 96], strides = [1, 1]} : vector<16x256xf32> to vector<16x96xf32>
    %c0_43 = arith.constant 0 : index
    %c173 = arith.constant 173 : index
    %95 = vector.load %arg17[%c0_43, %c173] : memref<16x316xf32, #tpu.memory_space<vmem>>, vector<16x96xf32>
    tpu.vector_store %arg17[%c0_43, %c173], %94 {strides = array<i32>} : memref<16x316xf32, #tpu.memory_space<vmem>>, vector<16x96xf32>,
    %c0_44 = arith.constant 0 : index
    %c0_45 = arith.constant 0 : index
    %96 = vector.load %arg9[%c0_44, %c0_45] : memref<16x31xf32, #tpu.memory_space<vmem>>, vector<16x31xf32>
    %97 = vector.extract_strided_slice %96 {offsets = [0, 0], sizes = [16, 1], strides = [1, 1]} : vector<16x31xf32> to vector<16x1xf32>
    %c0_46 = arith.constant 0 : index
    %c0_47 = arith.constant 0 : index
    %98 = vector.load %arg17[%c0_46, %c0_47] : memref<16x316xf32, #tpu.memory_space<vmem>>, vector<16x286xf32>
    %99 = vector.broadcast %97 : vector<16x1xf32> to vector<16x286xf32>
    %100 = arith.mulf %99, %98 : vector<16x286xf32>
    %101 = vector.extract_strided_slice %96 {offsets = [0, 1], sizes = [16, 1], strides = [1, 1]} : vector<16x31xf32> to vector<16x1xf32>
    %c0_48 = arith.constant 0 : index
    %c1_49 = arith.constant 1 : index
    %102 = vector.load %arg17[%c0_48, %c1_49] : memref<16x316xf32, #tpu.memory_space<vmem>>, vector<16x286xf32>
    %103 = vector.broadcast %101 : vector<16x1xf32> to vector<16x286xf32>
    %104 = arith.mulf %103, %102 : vector<16x286xf32>
    %105 = arith.addf %100, %104 : vector<16x286xf32>
    %106 = vector.extract_strided_slice %96 {offsets = [0, 2], sizes = [16, 1], strides = [1, 1]} : vector<16x31xf32> to vector<16x1xf32>
    %c0_50 = arith.constant 0 : index
    %c2_51 = arith.constant 2 : index
    %107 = vector.load %arg17[%c0_50, %c2_51] : memref<16x316xf32, #tpu.memory_space<vmem>>, vector<16x286xf32>
    %108 = vector.broadcast %106 : vector<16x1xf32> to vector<16x286xf32>
    %109 = arith.mulf %108, %107 : vector<16x286xf32>
    %110 = arith.addf %105, %109 : vector<16x286xf32>
    %111 = vector.extract_strided_slice %96 {offsets = [0, 3], sizes = [16, 1], strides = [1, 1]} : vector<16x31xf32> to vector<16x1xf32>
    %c0_52 = arith.constant 0 : index
    %c3 = arith.constant 3 : index
    %112 = vector.load %arg17[%c0_52, %c3] : memref<16x316xf32, #tpu.memory_space<vmem>>, vector<16x286xf32>
    %113 = vector.broadcast %111 : vector<16x1xf32> to vector<16x286xf32>
    %114 = arith.mulf %113, %112 : vector<16x286xf32>
    %115 = arith.addf %110, %114 : vector<16x286xf32>
    %116 = vector.extract_strided_slice %96 {offsets = [0, 4], sizes = [16, 1], strides = [1, 1]} : vector<16x31xf32> to vector<16x1xf32>
    %c0_53 = arith.constant 0 : index
    %c4 = arith.constant 4 : index
    %117 = vector.load %arg17[%c0_53, %c4] : memref<16x316xf32, #tpu.memory_space<vmem>>, vector<16x286xf32>
    %118 = vector.broadcast %116 : vector<16x1xf32> to vector<16x286xf32>
    %119 = arith.mulf %118, %117 : vector<16x286xf32>
    %120 = arith.addf %115, %119 : vector<16x286xf32>
    %121 = vector.extract_strided_slice %96 {offsets = [0, 5], sizes = [16, 1], strides = [1, 1]} : vector<16x31xf32> to vector<16x1xf32>
    %c0_54 = arith.constant 0 : index
    %c5 = arith.constant 5 : index
    %122 = vector.load %arg17[%c0_54, %c5] : memref<16x316xf32, #tpu.memory_space<vmem>>, vector<16x286xf32>
    %123 = vector.broadcast %121 : vector<16x1xf32> to vector<16x286xf32>
    %124 = arith.mulf %123, %122 : vector<16x286xf32>
    %125 = arith.addf %120, %124 : vector<16x286xf32>
    %126 = vector.extract_strided_slice %96 {offsets = [0, 6], sizes = [16, 1], strides = [1, 1]} : vector<16x31xf32> to vector<16x1xf32>
    %c0_55 = arith.constant 0 : index
    %c6 = arith.constant 6 : index
    %127 = vector.load %arg17[%c0_55, %c6] : memref<16x316xf32, #tpu.memory_space<vmem>>, vector<16x286xf32>
    %128 = vector.broadcast %126 : vector<16x1xf32> to vector<16x286xf32>
    %129 = arith.mulf %128, %127 : vector<16x286xf32>
    %130 = arith.addf %125, %129 : vector<16x286xf32>
    %131 = vector.extract_strided_slice %96 {offsets = [0, 7], sizes = [16, 1], strides = [1, 1]} : vector<16x31xf32> to vector<16x1xf32>
    %c0_56 = arith.constant 0 : index
    %c7 = arith.constant 7 : index
    %132 = vector.load %arg17[%c0_56, %c7] : memref<16x316xf32, #tpu.memory_space<vmem>>, vector<16x286xf32>
    %133 = vector.broadcast %131 : vector<16x1xf32> to vector<16x286xf32>
    %134 = arith.mulf %133, %132 : vector<16x286xf32>
    %135 = arith.addf %130, %134 : vector<16x286xf32>
    %136 = vector.extract_strided_slice %96 {offsets = [0, 8], sizes = [16, 1], strides = [1, 1]} : vector<16x31xf32> to vector<16x1xf32>
    %c0_57 = arith.constant 0 : index
    %c8 = arith.constant 8 : index
    %137 = vector.load %arg17[%c0_57, %c8] : memref<16x316xf32, #tpu.memory_space<vmem>>, vector<16x286xf32>
    %138 = vector.broadcast %136 : vector<16x1xf32> to vector<16x286xf32>
    %139 = arith.mulf %138, %137 : vector<16x286xf32>
    %140 = arith.addf %135, %139 : vector<16x286xf32>
    %141 = vector.extract_strided_slice %96 {offsets = [0, 9], sizes = [16, 1], strides = [1, 1]} : vector<16x31xf32> to vector<16x1xf32>
    %c0_58 = arith.constant 0 : index
    %c9 = arith.constant 9 : index
    %142 = vector.load %arg17[%c0_58, %c9] : memref<16x316xf32, #tpu.memory_space<vmem>>, vector<16x286xf32>
    %143 = vector.broadcast %141 : vector<16x1xf32> to vector<16x286xf32>
    %144 = arith.mulf %143, %142 : vector<16x286xf32>
    %145 = arith.addf %140, %144 : vector<16x286xf32>
    %146 = vector.extract_strided_slice %96 {offsets = [0, 10], sizes = [16, 1], strides = [1, 1]} : vector<16x31xf32> to vector<16x1xf32>
    %c0_59 = arith.constant 0 : index
    %c10 = arith.constant 10 : index
    %147 = vector.load %arg17[%c0_59, %c10] : memref<16x316xf32, #tpu.memory_space<vmem>>, vector<16x286xf32>
    %148 = vector.broadcast %146 : vector<16x1xf32> to vector<16x286xf32>
    %149 = arith.mulf %148, %147 : vector<16x286xf32>
    %150 = arith.addf %145, %149 : vector<16x286xf32>
    %151 = vector.extract_strided_slice %96 {offsets = [0, 11], sizes = [16, 1], strides = [1, 1]} : vector<16x31xf32> to vector<16x1xf32>
    %c0_60 = arith.constant 0 : index
    %c11 = arith.constant 11 : index
    %152 = vector.load %arg17[%c0_60, %c11] : memref<16x316xf32, #tpu.memory_space<vmem>>, vector<16x286xf32>
    %153 = vector.broadcast %151 : vector<16x1xf32> to vector<16x286xf32>
    %154 = arith.mulf %153, %152 : vector<16x286xf32>
    %155 = arith.addf %150, %154 : vector<16x286xf32>
    %156 = vector.extract_strided_slice %96 {offsets = [0, 12], sizes = [16, 1], strides = [1, 1]} : vector<16x31xf32> to vector<16x1xf32>
    %c0_61 = arith.constant 0 : index
    %c12 = arith.constant 12 : index
    %157 = vector.load %arg17[%c0_61, %c12] : memref<16x316xf32, #tpu.memory_space<vmem>>, vector<16x286xf32>
    %158 = vector.broadcast %156 : vector<16x1xf32> to vector<16x286xf32>
    %159 = arith.mulf %158, %157 : vector<16x286xf32>
    %160 = arith.addf %155, %159 : vector<16x286xf32>
    %161 = vector.extract_strided_slice %96 {offsets = [0, 13], sizes = [16, 1], strides = [1, 1]} : vector<16x31xf32> to vector<16x1xf32>
    %c0_62 = arith.constant 0 : index
    %c13 = arith.constant 13 : index
    %162 = vector.load %arg17[%c0_62, %c13] : memref<16x316xf32, #tpu.memory_space<vmem>>, vector<16x286xf32>
    %163 = vector.broadcast %161 : vector<16x1xf32> to vector<16x286xf32>
    %164 = arith.mulf %163, %162 : vector<16x286xf32>
    %165 = arith.addf %160, %164 : vector<16x286xf32>
    %166 = vector.extract_strided_slice %96 {offsets = [0, 14], sizes = [16, 1], strides = [1, 1]} : vector<16x31xf32> to vector<16x1xf32>
    %c0_63 = arith.constant 0 : index
    %c14 = arith.constant 14 : index
    %167 = vector.load %arg17[%c0_63, %c14] : memref<16x316xf32, #tpu.memory_space<vmem>>, vector<16x286xf32>
    %168 = vector.broadcast %166 : vector<16x1xf32> to vector<16x286xf32>
    %169 = arith.mulf %168, %167 : vector<16x286xf32>
    %170 = arith.addf %165, %169 : vector<16x286xf32>
    %171 = vector.extract_strided_slice %96 {offsets = [0, 15], sizes = [16, 1], strides = [1, 1]} : vector<16x31xf32> to vector<16x1xf32>
    %c0_64 = arith.constant 0 : index
    %c15_65 = arith.constant 15 : index
    %172 = vector.load %arg17[%c0_64, %c15_65] : memref<16x316xf32, #tpu.memory_space<vmem>>, vector<16x286xf32>
    %173 = vector.broadcast %171 : vector<16x1xf32> to vector<16x286xf32>
    %174 = arith.mulf %173, %172 : vector<16x286xf32>
    %175 = arith.addf %170, %174 : vector<16x286xf32>
    %176 = vector.extract_strided_slice %96 {offsets = [0, 16], sizes = [16, 1], strides = [1, 1]} : vector<16x31xf32> to vector<16x1xf32>
    %c0_66 = arith.constant 0 : index
    %c16 = arith.constant 16 : index
    %177 = vector.load %arg17[%c0_66, %c16] : memref<16x316xf32, #tpu.memory_space<vmem>>, vector<16x286xf32>
    %178 = vector.broadcast %176 : vector<16x1xf32> to vector<16x286xf32>
    %179 = arith.mulf %178, %177 : vector<16x286xf32>
    %180 = arith.addf %175, %179 : vector<16x286xf32>
    %181 = vector.extract_strided_slice %96 {offsets = [0, 17], sizes = [16, 1], strides = [1, 1]} : vector<16x31xf32> to vector<16x1xf32>
    %c0_67 = arith.constant 0 : index
    %c17 = arith.constant 17 : index
    %182 = vector.load %arg17[%c0_67, %c17] : memref<16x316xf32, #tpu.memory_space<vmem>>, vector<16x286xf32>
    %183 = vector.broadcast %181 : vector<16x1xf32> to vector<16x286xf32>
    %184 = arith.mulf %183, %182 : vector<16x286xf32>
    %185 = arith.addf %180, %184 : vector<16x286xf32>
    %186 = vector.extract_strided_slice %96 {offsets = [0, 18], sizes = [16, 1], strides = [1, 1]} : vector<16x31xf32> to vector<16x1xf32>
    %c0_68 = arith.constant 0 : index
    %c18 = arith.constant 18 : index
    %187 = vector.load %arg17[%c0_68, %c18] : memref<16x316xf32, #tpu.memory_space<vmem>>, vector<16x286xf32>
    %188 = vector.broadcast %186 : vector<16x1xf32> to vector<16x286xf32>
    %189 = arith.mulf %188, %187 : vector<16x286xf32>
    %190 = arith.addf %185, %189 : vector<16x286xf32>
    %191 = vector.extract_strided_slice %96 {offsets = [0, 19], sizes = [16, 1], strides = [1, 1]} : vector<16x31xf32> to vector<16x1xf32>
    %c0_69 = arith.constant 0 : index
    %c19 = arith.constant 19 : index
    %192 = vector.load %arg17[%c0_69, %c19] : memref<16x316xf32, #tpu.memory_space<vmem>>, vector<16x286xf32>
    %193 = vector.broadcast %191 : vector<16x1xf32> to vector<16x286xf32>
    %194 = arith.mulf %193, %192 : vector<16x286xf32>
    %195 = arith.addf %190, %194 : vector<16x286xf32>
    %196 = vector.extract_strided_slice %96 {offsets = [0, 20], sizes = [16, 1], strides = [1, 1]} : vector<16x31xf32> to vector<16x1xf32>
    %c0_70 = arith.constant 0 : index
    %c20 = arith.constant 20 : index
    %197 = vector.load %arg17[%c0_70, %c20] : memref<16x316xf32, #tpu.memory_space<vmem>>, vector<16x286xf32>
    %198 = vector.broadcast %196 : vector<16x1xf32> to vector<16x286xf32>
    %199 = arith.mulf %198, %197 : vector<16x286xf32>
    %200 = arith.addf %195, %199 : vector<16x286xf32>
    %201 = vector.extract_strided_slice %96 {offsets = [0, 21], sizes = [16, 1], strides = [1, 1]} : vector<16x31xf32> to vector<16x1xf32>
    %c0_71 = arith.constant 0 : index
    %c21 = arith.constant 21 : index
    %202 = vector.load %arg17[%c0_71, %c21] : memref<16x316xf32, #tpu.memory_space<vmem>>, vector<16x286xf32>
    %203 = vector.broadcast %201 : vector<16x1xf32> to vector<16x286xf32>
    %204 = arith.mulf %203, %202 : vector<16x286xf32>
    %205 = arith.addf %200, %204 : vector<16x286xf32>
    %206 = vector.extract_strided_slice %96 {offsets = [0, 22], sizes = [16, 1], strides = [1, 1]} : vector<16x31xf32> to vector<16x1xf32>
    %c0_72 = arith.constant 0 : index
    %c22 = arith.constant 22 : index
    %207 = vector.load %arg17[%c0_72, %c22] : memref<16x316xf32, #tpu.memory_space<vmem>>, vector<16x286xf32>
    %208 = vector.broadcast %206 : vector<16x1xf32> to vector<16x286xf32>
    %209 = arith.mulf %208, %207 : vector<16x286xf32>
    %210 = arith.addf %205, %209 : vector<16x286xf32>
    %211 = vector.extract_strided_slice %96 {offsets = [0, 23], sizes = [16, 1], strides = [1, 1]} : vector<16x31xf32> to vector<16x1xf32>
    %c0_73 = arith.constant 0 : index
    %c23 = arith.constant 23 : index
    %212 = vector.load %arg17[%c0_73, %c23] : memref<16x316xf32, #tpu.memory_space<vmem>>, vector<16x286xf32>
    %213 = vector.broadcast %211 : vector<16x1xf32> to vector<16x286xf32>
    %214 = arith.mulf %213, %212 : vector<16x286xf32>
    %215 = arith.addf %210, %214 : vector<16x286xf32>
    %216 = vector.extract_strided_slice %96 {offsets = [0, 24], sizes = [16, 1], strides = [1, 1]} : vector<16x31xf32> to vector<16x1xf32>
    %c0_74 = arith.constant 0 : index
    %c24 = arith.constant 24 : index
    %217 = vector.load %arg17[%c0_74, %c24] : memref<16x316xf32, #tpu.memory_space<vmem>>, vector<16x286xf32>
    %218 = vector.broadcast %216 : vector<16x1xf32> to vector<16x286xf32>
    %219 = arith.mulf %218, %217 : vector<16x286xf32>
    %220 = arith.addf %215, %219 : vector<16x286xf32>
    %221 = vector.extract_strided_slice %96 {offsets = [0, 25], sizes = [16, 1], strides = [1, 1]} : vector<16x31xf32> to vector<16x1xf32>
    %c0_75 = arith.constant 0 : index
    %c25 = arith.constant 25 : index
    %222 = vector.load %arg17[%c0_75, %c25] : memref<16x316xf32, #tpu.memory_space<vmem>>, vector<16x286xf32>
    %223 = vector.broadcast %221 : vector<16x1xf32> to vector<16x286xf32>
    %224 = arith.mulf %223, %222 : vector<16x286xf32>
    %225 = arith.addf %220, %224 : vector<16x286xf32>
    %226 = vector.extract_strided_slice %96 {offsets = [0, 26], sizes = [16, 1], strides = [1, 1]} : vector<16x31xf32> to vector<16x1xf32>
    %c0_76 = arith.constant 0 : index
    %c26 = arith.constant 26 : index
    %227 = vector.load %arg17[%c0_76, %c26] : memref<16x316xf32, #tpu.memory_space<vmem>>, vector<16x286xf32>
    %228 = vector.broadcast %226 : vector<16x1xf32> to vector<16x286xf32>
    %229 = arith.mulf %228, %227 : vector<16x286xf32>
    %230 = arith.addf %225, %229 : vector<16x286xf32>
    %231 = vector.extract_strided_slice %96 {offsets = [0, 27], sizes = [16, 1], strides = [1, 1]} : vector<16x31xf32> to vector<16x1xf32>
    %c0_77 = arith.constant 0 : index
    %c27 = arith.constant 27 : index
    %232 = vector.load %arg17[%c0_77, %c27] : memref<16x316xf32, #tpu.memory_space<vmem>>, vector<16x286xf32>
    %233 = vector.broadcast %231 : vector<16x1xf32> to vector<16x286xf32>
    %234 = arith.mulf %233, %232 : vector<16x286xf32>
    %235 = arith.addf %230, %234 : vector<16x286xf32>
    %236 = vector.extract_strided_slice %96 {offsets = [0, 28], sizes = [16, 1], strides = [1, 1]} : vector<16x31xf32> to vector<16x1xf32>
    %c0_78 = arith.constant 0 : index
    %c28 = arith.constant 28 : index
    %237 = vector.load %arg17[%c0_78, %c28] : memref<16x316xf32, #tpu.memory_space<vmem>>, vector<16x286xf32>
    %238 = vector.broadcast %236 : vector<16x1xf32> to vector<16x286xf32>
    %239 = arith.mulf %238, %237 : vector<16x286xf32>
    %240 = arith.addf %235, %239 : vector<16x286xf32>
    %241 = vector.extract_strided_slice %96 {offsets = [0, 29], sizes = [16, 1], strides = [1, 1]} : vector<16x31xf32> to vector<16x1xf32>
    %c0_79 = arith.constant 0 : index
    %c29 = arith.constant 29 : index
    %242 = vector.load %arg17[%c0_79, %c29] : memref<16x316xf32, #tpu.memory_space<vmem>>, vector<16x286xf32>
    %243 = vector.broadcast %241 : vector<16x1xf32> to vector<16x286xf32>
    %244 = arith.mulf %243, %242 : vector<16x286xf32>
    %245 = arith.addf %240, %244 : vector<16x286xf32>
    %246 = vector.extract_strided_slice %96 {offsets = [0, 30], sizes = [16, 1], strides = [1, 1]} : vector<16x31xf32> to vector<16x1xf32>
    %c0_80 = arith.constant 0 : index
    %c30 = arith.constant 30 : index
    %247 = vector.load %arg17[%c0_80, %c30] : memref<16x316xf32, #tpu.memory_space<vmem>>, vector<16x286xf32>
    %248 = vector.broadcast %246 : vector<16x1xf32> to vector<16x286xf32>
    %249 = arith.mulf %248, %247 : vector<16x286xf32>
    %250 = arith.addf %245, %249 : vector<16x286xf32>
    %251 = vector.extract_strided_slice %250 {offsets = [0, 0], sizes = [16, 128], strides = [1, 1]} : vector<16x286xf32> to vector<16x128xf32>
    %c0_81 = arith.constant 0 : index
    %c0_82 = arith.constant 0 : index
    %252 = vector.load %arg18[%c0_81, %c0_82] : memref<16x256xf32, #tpu.memory_space<vmem>>, vector<16x128xf32>
    tpu.vector_store %arg18[%c0_81, %c0_82], %251 {strides = array<i32>} : memref<16x256xf32, #tpu.memory_space<vmem>>, vector<16x128xf32>,
    %253 = vector.extract_strided_slice %250 {offsets = [0, 158], sizes = [16, 128], strides = [1, 1]} : vector<16x286xf32> to vector<16x128xf32>
    %c0_83 = arith.constant 0 : index
    %c128 = arith.constant 128 : index
    %254 = vector.load %arg18[%c0_83, %c128] : memref<16x256xf32, #tpu.memory_space<vmem>>, vector<16x128xf32>
    tpu.vector_store %arg18[%c0_83, %c128], %253 {strides = array<i32>} : memref<16x256xf32, #tpu.memory_space<vmem>>, vector<16x128xf32>,
    %c0_84 = arith.constant 0 : index
    %c0_85 = arith.constant 0 : index
    %255 = vector.load %arg18[%c0_84, %c0_85] : memref<16x256xf32, #tpu.memory_space<vmem>>, vector<16x256xf32>
    %c0_86 = arith.constant 0 : index
    %256 = memref.load %arg10[%c0_86] : memref<1xf32, #tpu.memory_space<smem>>
    %cst_87 = arith.constant 0.000000e+00 : f32
    %257 = vector.broadcast %cst_87 : f32 to vector<16x256xf32>
    %258 = arith.cmpf oge, %255, %257 : vector<16x256xf32>
    %259 = vector.broadcast %256 : f32 to vector<16x256xf32>
    %260 = arith.mulf %259, %255 : vector<16x256xf32>
    %261 = arith.select %258, %255, %260 : vector<16x256xi1>, vector<16x256xf32>
    %cst_88 = arith.constant dense<0.000000e+00> : vector<16x1xf32>
    %262 = tpu.matmul %261, %1, %cst_88 {dimension_numbers = #tpu.dot_dimension_numbers<[1], [0], [0], [1], [0, 0, 1, 1], [], []>} : vector<16x256xf32>, vector<256x1xf32>, vector<16x1xf32> -> vector<16x1xf32>
    %cst_89 = arith.constant 0.00520833349 : f32
    %263 = vector.broadcast %cst_89 : f32 to vector<16x1xf32>
    %264 = arith.mulf %262, %263 : vector<16x1xf32>
    %265 = vector.broadcast %264 : vector<16x1xf32> to vector<16x256xf32>
    %266 = arith.subf %261, %265 : vector<16x256xf32>
    %267 = arith.mulf %266, %266 : vector<16x256xf32>
    %cst_90 = arith.constant dense<0.000000e+00> : vector<16x1xf32>
    %268 = tpu.matmul %267, %1, %cst_90 {dimension_numbers = #tpu.dot_dimension_numbers<[1], [0], [0], [1], [0, 0, 1, 1], [], []>} : vector<16x256xf32>, vector<256x1xf32>, vector<16x1xf32> -> vector<16x1xf32>
    %cst_91 = arith.constant 0.00520833349 : f32
    %269 = vector.broadcast %cst_91 : f32 to vector<16x1xf32>
    %270 = arith.mulf %268, %269 : vector<16x1xf32>
    %271 = vector.broadcast %264 : vector<16x1xf32> to vector<16x256xf32>
    %272 = arith.subf %261, %271 : vector<16x256xf32>
    %c0_92 = arith.constant 0 : index
    %c0_93 = arith.constant 0 : index
    %273 = vector.load %arg11[%c0_92, %c0_93] : memref<16x1xf32, #tpu.memory_space<vmem>>, vector<16x1xf32>
    %cst_94 = arith.constant 9.99999974E-6 : f32
    %274 = vector.broadcast %cst_94 : f32 to vector<16x1xf32>
    %275 = arith.addf %270, %274 : vector<16x1xf32>
    %276 = math.rsqrt %275 : vector<16x1xf32>
    %277 = arith.mulf %273, %276 : vector<16x1xf32>
    %278 = vector.broadcast %277 : vector<16x1xf32> to vector<16x256xf32>
    %279 = arith.mulf %272, %278 : vector<16x256xf32>
    %c0_95 = arith.constant 0 : index
    %c0_96 = arith.constant 0 : index
    %280 = vector.load %arg12[%c0_95, %c0_96] : memref<16x1xf32, #tpu.memory_space<vmem>>, vector<16x1xf32>
    %281 = vector.broadcast %280 : vector<16x1xf32> to vector<16x256xf32>
    %282 = arith.addf %279, %281 : vector<16x256xf32>
    %cst_97 = arith.constant 0.000000e+00 : f32
    %283 = vector.broadcast %cst_97 : f32 to vector<16x256xf32>
    %284 = arith.cmpf oge, %282, %283 : vector<16x256xf32>
    %285 = vector.broadcast %65 : f32 to vector<16x256xf32>
    %286 = arith.mulf %285, %282 : vector<16x256xf32>
    %287 = arith.select %284, %282, %286 : vector<16x256xi1>, vector<16x256xf32>
    %cst_98 = arith.constant dense<0.000000e+00> : vector<16x1xf32>
    %288 = tpu.matmul %287, %1, %cst_98 {dimension_numbers = #tpu.dot_dimension_numbers<[1], [0], [0], [1], [0, 0, 1, 1], [], []>} : vector<16x256xf32>, vector<256x1xf32>, vector<16x1xf32> -> vector<16x1xf32>
    %cst_99 = arith.constant 0.00520833349 : f32
    %289 = vector.broadcast %cst_99 : f32 to vector<16x1xf32>
    %290 = arith.mulf %288, %289 : vector<16x1xf32>
    %291 = vector.broadcast %290 : vector<16x1xf32> to vector<16x256xf32>
    %292 = arith.subf %287, %291 : vector<16x256xf32>
    %293 = arith.mulf %292, %292 : vector<16x256xf32>
    %cst_100 = arith.constant dense<0.000000e+00> : vector<16x1xf32>
    %294 = tpu.matmul %293, %1, %cst_100 {dimension_numbers = #tpu.dot_dimension_numbers<[1], [0], [0], [1], [0, 0, 1, 1], [], []>} : vector<16x256xf32>, vector<256x1xf32>, vector<16x1xf32> -> vector<16x1xf32>
    %cst_101 = arith.constant 0.00520833349 : f32
    %295 = vector.broadcast %cst_101 : f32 to vector<16x1xf32>
    %296 = arith.mulf %294, %295 : vector<16x1xf32>
    %297 = vector.extract_strided_slice %66 {offsets = [16, 0], sizes = [16, 1], strides = [1, 1]} : vector<32x1xf32> to vector<16x1xf32>
    %cst_102 = arith.constant 9.99999974E-6 : f32
    %298 = vector.broadcast %cst_102 : f32 to vector<16x1xf32>
    %299 = arith.addf %296, %298 : vector<16x1xf32>
    %300 = math.rsqrt %299 : vector<16x1xf32>
    %301 = arith.mulf %297, %300 : vector<16x1xf32>
    %302 = vector.extract_strided_slice %67 {offsets = [16, 0], sizes = [16, 1], strides = [1, 1]} : vector<32x1xf32> to vector<16x1xf32>
    %303 = arith.mulf %290, %301 : vector<16x1xf32>
    %304 = arith.subf %302, %303 : vector<16x1xf32>
    %305 = vector.extract_strided_slice %32 {offsets = [0, 0], sizes = [32, 1], strides = [1, 1]} : vector<32x2xf32> to vector<32x1xf32>
    %306 = vector.extract_strided_slice %64 {offsets = [0, 0], sizes = [16, 128], strides = [1, 1]} : vector<16x256xf32> to vector<16x128xf32>
    %cst_103 = arith.constant 0.000000e+00 : f32
    %307 = vector.broadcast %cst_103 : f32 to vector<16x128xf32>
    %308 = arith.cmpf oge, %306, %307 : vector<16x128xf32>
    %309 = vector.broadcast %65 : f32 to vector<16x128xf32>
    %310 = arith.mulf %309, %306 : vector<16x128xf32>
    %311 = arith.select %308, %306, %310 : vector<16x128xi1>, vector<16x128xf32>
    %312 = vector.broadcast %86 : vector<16x1xf32> to vector<16x128xf32>
    %313 = arith.mulf %311, %312 : vector<16x128xf32>
    %314 = vector.broadcast %89 : vector<16x1xf32> to vector<16x128xf32>
    %315 = arith.addf %313, %314 : vector<16x128xf32>
    %316 = vector.extract_strided_slice %305 {offsets = [0, 0], sizes = [16, 1], strides = [1, 1]} : vector<32x1xf32> to vector<16x1xf32>
    %317 = vector.extract_strided_slice %0 {offsets = [0, 0], sizes = [16, 128], strides = [1, 1]} : vector<32x256xf32> to vector<16x128xf32>
    %318 = vector.broadcast %316 : vector<16x1xf32> to vector<16x128xf32>
    %319 = arith.mulf %318, %317 : vector<16x128xf32>
    %320 = arith.addf %315, %319 : vector<16x128xf32>
    %c0_104 = arith.constant 0 : index
    %c0_105 = arith.constant 0 : index
    %321 = vector.load %arg16[%c0_104, %c0_105] : memref<32x256xf32, #tpu.memory_space<vmem>>, vector<16x128xf32>
    tpu.vector_store %arg16[%c0_104, %c0_105], %320 {strides = array<i32>} : memref<32x256xf32, #tpu.memory_space<vmem>>, vector<16x128xf32>,
    %322 = vector.extract_strided_slice %282 {offsets = [0, 0], sizes = [16, 128], strides = [1, 1]} : vector<16x256xf32> to vector<16x128xf32>
    %cst_106 = arith.constant 0.000000e+00 : f32
    %323 = vector.broadcast %cst_106 : f32 to vector<16x128xf32>
    %324 = arith.cmpf oge, %322, %323 : vector<16x128xf32>
    %325 = vector.broadcast %65 : f32 to vector<16x128xf32>
    %326 = arith.mulf %325, %322 : vector<16x128xf32>
    %327 = arith.select %324, %322, %326 : vector<16x128xi1>, vector<16x128xf32>
    %328 = vector.broadcast %301 : vector<16x1xf32> to vector<16x128xf32>
    %329 = arith.mulf %327, %328 : vector<16x128xf32>
    %330 = vector.broadcast %304 : vector<16x1xf32> to vector<16x128xf32>
    %331 = arith.addf %329, %330 : vector<16x128xf32>
    %332 = vector.extract_strided_slice %305 {offsets = [16, 0], sizes = [16, 1], strides = [1, 1]} : vector<32x1xf32> to vector<16x1xf32>
    %333 = vector.extract_strided_slice %0 {offsets = [16, 0], sizes = [16, 128], strides = [1, 1]} : vector<32x256xf32> to vector<16x128xf32>
    %334 = vector.broadcast %332 : vector<16x1xf32> to vector<16x128xf32>
    %335 = arith.mulf %334, %333 : vector<16x128xf32>
    %336 = arith.addf %331, %335 : vector<16x128xf32>
    %c16_107 = arith.constant 16 : index
    %c0_108 = arith.constant 0 : index
    %337 = vector.load %arg16[%c16_107, %c0_108] : memref<32x256xf32, #tpu.memory_space<vmem>>, vector<16x128xf32>
    tpu.vector_store %arg16[%c16_107, %c0_108], %336 {strides = array<i32>} : memref<32x256xf32, #tpu.memory_space<vmem>>, vector<16x128xf32>,
    %338 = vector.extract_strided_slice %32 {offsets = [0, 1], sizes = [32, 1], strides = [1, 1]} : vector<32x2xf32> to vector<32x1xf32>
    %339 = vector.extract_strided_slice %64 {offsets = [0, 128], sizes = [16, 128], strides = [1, 1]} : vector<16x256xf32> to vector<16x128xf32>
    %cst_109 = arith.constant 0.000000e+00 : f32
    %340 = vector.broadcast %cst_109 : f32 to vector<16x128xf32>
    %341 = arith.cmpf oge, %339, %340 : vector<16x128xf32>
    %342 = vector.broadcast %65 : f32 to vector<16x128xf32>
    %343 = arith.mulf %342, %339 : vector<16x128xf32>
    %344 = arith.select %341, %339, %343 : vector<16x128xi1>, vector<16x128xf32>
    %345 = vector.broadcast %86 : vector<16x1xf32> to vector<16x128xf32>
    %346 = arith.mulf %344, %345 : vector<16x128xf32>
    %347 = vector.broadcast %89 : vector<16x1xf32> to vector<16x128xf32>
    %348 = arith.addf %346, %347 : vector<16x128xf32>
    %349 = vector.extract_strided_slice %338 {offsets = [0, 0], sizes = [16, 1], strides = [1, 1]} : vector<32x1xf32> to vector<16x1xf32>
    %350 = vector.extract_strided_slice %0 {offsets = [0, 128], sizes = [16, 128], strides = [1, 1]} : vector<32x256xf32> to vector<16x128xf32>
    %351 = vector.broadcast %349 : vector<16x1xf32> to vector<16x128xf32>
    %352 = arith.mulf %351, %350 : vector<16x128xf32>
    %353 = arith.addf %348, %352 : vector<16x128xf32>
    %c0_110 = arith.constant 0 : index
    %c128_111 = arith.constant 128 : index
    %354 = vector.load %arg16[%c0_110, %c128_111] : memref<32x256xf32, #tpu.memory_space<vmem>>, vector<16x128xf32>
    tpu.vector_store %arg16[%c0_110, %c128_111], %353 {strides = array<i32>} : memref<32x256xf32, #tpu.memory_space<vmem>>, vector<16x128xf32>,
    %355 = vector.extract_strided_slice %282 {offsets = [0, 128], sizes = [16, 128], strides = [1, 1]} : vector<16x256xf32> to vector<16x128xf32>
    %cst_112 = arith.constant 0.000000e+00 : f32
    %356 = vector.broadcast %cst_112 : f32 to vector<16x128xf32>
    %357 = arith.cmpf oge, %355, %356 : vector<16x128xf32>
    %358 = vector.broadcast %65 : f32 to vector<16x128xf32>
    %359 = arith.mulf %358, %355 : vector<16x128xf32>
    %360 = arith.select %357, %355, %359 : vector<16x128xi1>, vector<16x128xf32>
    %361 = vector.broadcast %301 : vector<16x1xf32> to vector<16x128xf32>
    %362 = arith.mulf %360, %361 : vector<16x128xf32>
    %363 = vector.broadcast %304 : vector<16x1xf32> to vector<16x128xf32>
    %364 = arith.addf %362, %363 : vector<16x128xf32>
    %365 = vector.extract_strided_slice %338 {offsets = [16, 0], sizes = [16, 1], strides = [1, 1]} : vector<32x1xf32> to vector<16x1xf32>
    %366 = vector.extract_strided_slice %0 {offsets = [16, 128], sizes = [16, 128], strides = [1, 1]} : vector<32x256xf32> to vector<16x128xf32>
    %367 = vector.broadcast %365 : vector<16x1xf32> to vector<16x128xf32>
    %368 = arith.mulf %367, %366 : vector<16x128xf32>
    %369 = arith.addf %364, %368 : vector<16x128xf32>
    %c16_113 = arith.constant 16 : index
    %c128_114 = arith.constant 128 : index
    %370 = vector.load %arg16[%c16_113, %c128_114] : memref<32x256xf32, #tpu.memory_space<vmem>>, vector<16x128xf32>
    tpu.vector_store %arg16[%c16_113, %c128_114], %369 {strides = array<i32>} : memref<32x256xf32, #tpu.memory_space<vmem>>, vector<16x128xf32>,
    return
  }
}

</mosaic_0001>

<bundles_post_ra>
// kernel: phantom_layer.1
= control target key start
LH: loop header
LB: loop body
LE: loop exit
PB: predicated region body
PF: predicated region fallthrough
CT: control target
= control target key end

     0   :  { %s5616_s0 = inlined_call_operand.vmem [shape: f32[32,256], index: 0, kind: input, shape index: {}]   ;;  %s5617_s1 = inlined_call_operand.vmem [shape: f32[256,2], index: 1, kind: input, shape index: {}]   ;;  %s5618_s2 = inlined_call_operand.vmem [shape: f32[256,1], index: 2, kind: input, shape index: {}]   ;;  %s5619_s3 = inlined_call_operand.vmem [shape: f32[3], index: 3, kind: input, shape index: {}]   ;;  %s5620_s4 = inlined_call_operand.vmem [shape: f32[16,32], index: 4, kind: input, shape index: {}]   ;;  %s5621_s5 = inlined_call_operand.vmem [shape: f32[16,1], index: 5, kind: input, shape index: {}]   ;;  %s5622_s6 = inlined_call_operand.<no memory space> [shape: f32[1], index: 6, kind: input, shape index: {}]   ;;  %s5623_s7 = inlined_call_operand.vmem [shape: f32[16,1], index: 7, kind: input, shape index: {}]   ;;  %s5624_s8 = inlined_call_operand.vmem [shape: f32[16,1], index: 8, kind: input, shape index: {}]   ;;  %s5625_s9 = inlined_call_operand.vmem [shape: f32[16,31], index: 9, kind: input, shape index: {}]   ;;  %s5626_s10 = inlined_call_operand.<no memory space> [shape: f32[1], index: 10, kind: input, shape index: {}]   ;;  %s5627_s11 = inlined_call_operand.vmem [shape: f32[16,1], index: 11, kind: input, shape index: {}]   ;;  %s5628_s12 = inlined_call_operand.vmem [shape: f32[16,1], index: 12, kind: input, shape index: {}]   ;;  %s5629_s13 = inlined_call_operand.<no memory space> [shape: f32[1], index: 13, kind: input, shape index: {}]   ;;  %s5630_s14 = inlined_call_operand.vmem [shape: f32[32,1], index: 14, kind: input, shape index: {}]   ;;  %s5631_s15 = inlined_call_operand.vmem [shape: f32[32,1], index: 15, kind: input, shape index: {}]   ;;  %s5632_s16 = inlined_call_operand.vmem [shape: f32[32,256], index: 16, kind: output, shape index: {}]  }
   0x1   :  { %5741 = sst [smem:[#allocation61_spill]] %s5616_s0 }
   0x2   :  { %24 = vsyncpa [#allocation8], 0  ;;  %s36_s23 = sshll.u32 %s5619_s3, 4  ;;  %s3066_s24 = smov [#allocation7]   ;;  %s37_s23 = int_to_ptr.vmem [resolvable:$true] %s36_s23 }
   0x3   :  { %39 = dma.vmem_to_smem %s37_s23, 16, %s3066_s24, [#allocation8]  }
   0x4   :  { %3064 = dma.done.wait [#allocation8], 16  }
   0x5   :  { %3065 = vsyncadd [#allocation8], 4294967280 }
   0x6   :  { %68 = sfence }
   0x7   :  { %v124_v0 = vld [vmem:[%s5617_s1 + $0x78] sm:$0xff]  ;;  %v123_v2 = vld [vmem:[%s5617_s1 + $0x70] sm:$0xff]  ;;  %v122_v4 = vld [vmem:[%s5617_s1 + $0x68] sm:$0xff]  ;;  %s5742_s19 = sld [smem:[#allocation61_spill]]  ;;  %vm252_vm0 = vcmask 261120   ;;  %v5645_v36 = vmov 0  }
   0x8   :  { %v140_v1 = vld [vmem:[%s5617_s1 + $0xf8] sm:$0xff]  ;;  %141 = vmatpush.msra.mxu0 %v124_v0  ;;  %v139_v3 = vld [vmem:[%s5617_s1 + $0xf0] sm:$0xff]  ;;  %v138_v5 = vld [vmem:[%s5617_s1 + $0xe8] sm:$0xff]  ;;  %2876 = vset.pattern.permute.xlu0 %v5645_v36  ;;  %v5634_v47 = vmov 1   ;;  %v3069_v49 = vmov 2   ;;  %v3070_v50 = vmov 3  }
   0x9   :  { %170 = vmatpush.msra.mxu1 %v140_v1  ;;  %v121_v6 = vld [vmem:[%s5617_s1 + $0x60] sm:$0xff]  ;;  %v120_v8 = vld [vmem:[%s5617_s1 + $0x58] sm:$0xff]  ;;  %v119_v10 = vld [vmem:[%s5617_s1 + $0x50] sm:$0xff]  ;;  %2877 = vset.pattern.permute.xlu1 %v5645_v36  ;;  %v3071_v51 = vmov 4   ;;  %v3072_v52 = vmov 7   ;;  %v3073_v56 = vmov 5  }
   0xa   :  { %142 = vmatpush.msra.mxu0 %v123_v2  ;;  %v137_v7 = vld [vmem:[%s5617_s1 + $0xe0] sm:$0xff]  ;;  %v136_v9 = vld [vmem:[%s5617_s1 + $0xd8] sm:$0xff]  ;;  %v135_v11 = vld [vmem:[%s5617_s1 + $0xd0] sm:$0xff]  ;;  %2878 = vset.pattern.permute.xlu2 %v5645_v36  ;;  %s3499_s17 = sld [smem:[#allocation7]]  ;;  %s3099_s29 = smov 45  }
   0xb   :  { %171 = vmatpush.msra.mxu1 %v139_v3  ;;  %v118_v12 = vld [vmem:[%s5617_s1 + $0x48] sm:$0xff]  ;;  %v117_v14 = vld [vmem:[%s5617_s1 + $0x40] sm:$0xff]  ;;  %v116_v16 = vld [vmem:[%s5617_s1 + $0x38] sm:$0xff]  ;;  %v202_v3 = vlaneseq  ;;  %s3510_s21 = sld [smem:[#allocation7 + $0x1]]  ;;  %s3100_s30 = smov 15  }
   0xc   :  { %143 = vmatpush.msra.mxu0 %v122_v4  ;;  %v134_v13 = vld [vmem:[%s5617_s1 + $0xc8] sm:$0xff]  ;;  %v133_v15 = vld [vmem:[%s5617_s1 + $0xc0] sm:$0xff]  ;;  %v132_v17 = vld [vmem:[%s5617_s1 + $0xb8] sm:$0xff]  ;;  %s3543_s28 = sld [smem:[#allocation7 + $0x2]]  ;;  %s5681_s24 = smov 123  }
   0xd   :  { %172 = vmatpush.msra.mxu1 %v138_v5  ;;  %v115_v18 = vld [vmem:[%s5617_s1 + $0x30] sm:$0xff]  ;;  %v114_v21 = vld [vmem:[%s5617_s1 + $0x28] sm:$0xff]  ;;  %v3294_v23 = vld [vmem:[%s5742_s19 + $0x20] sm:$0xff]  ;;  %v5644_v5 = vmov 10   ;;  %s3106_s25 = smov 124   ;;  %s3107_s26 = smov 119  }
   0xe   :  { %144 = vmatpush.msra.mxu0 %v121_v6  ;;  %v131_v19 = vld [vmem:[%s5617_s1 + $0xb0] sm:$0xff]  ;;  %v130_v22 = vld [vmem:[%s5617_s1 + $0xa8] sm:$0xff]  ;;  %v113_v24 = vld [vmem:[%s5617_s1 + $0x20] sm:$0xff]  ;;  %s3109_s27 = smov 121   ;;  %s3114_s3 = smov 110  }
   0xf   :  { %173 = vmatpush.msra.mxu1 %v137_v7  ;;  %v3282_v20 = vld [vmem:[%s5742_s19 + $0x30] sm:$0xff]  ;;  %v129_v25 = vld [vmem:[%s5617_s1 + $0xa0] sm:$0xff]  ;;  %v112_v27 = vld [vmem:[%s5617_s1 + $0x18] sm:$0xff]  ;;  %s3116_s0 = smov 109   ;;  %s5720_s18 = smov 115  }
  0x10   :  { %145 = vmatpush.msra.mxu0 %v120_v8  ;;  %402 = vmatpush.msra.mxu3 %v3282_v20  ;;  %v71_v26 = vld [vmem:[%s5742_s19 + $0x10] sm:$0xff]  ;;  %v128_v28 = vld [vmem:[%s5617_s1 + $0x98] sm:$0xff]  ;;  %v69_v29 = vld [vmem:[%s5742_s19] sm:$0xff]  ;;  %s3118_s20 = smov 107   ;;  %s3119_s22 = smov 114  }
  0x11   :  { %174 = vmatpush.msra.mxu1 %v136_v9  ;;  %v111_v30 = vld [vmem:[%s5617_s1 + $0x10] sm:$0xff]  ;;  %v370_v32 = vld [vmem:[%s5620_s4] sm:$0xff]  ;;  %v110_v34 = vld [vmem:[%s5617_s1 + $0x8] sm:$0xff]  ;;  %s3121_s23 = smov 104  }
  0x12   :  { %146 = vmatpush.msra.mxu0 %v119_v10  ;;  %403 = vmatpush.msra.mxu3 %v3294_v23  ;;  %v127_v31 = vld [vmem:[%s5617_s1 + $0x90] sm:$0xff]  ;;  %v372_v33 = vld [vmem:[%s5621_s5] sm:$0xff]  ;;  %v126_v35 = vld [vmem:[%s5617_s1 + $0x88] sm:$0xff] }
  0x13   :  { %175 = vmatpush.msra.mxu1 %v135_v11  ;;  %v76_v37 = vld [vmem:[%s5742_s19 + $0x38] sm:$0xff]  ;;  %v109_v38 = vld [vmem:[%s5617_s1] sm:$0xff]  ;;  %376 = vperm.xlu0 %2876, %v372_v33   ;;  %v70_v40 = vld [vmem:[%s5742_s19 + $0x8] sm:$0xff] }
  0x14   :  { %147 = vmatpush.msra.mxu0 %v118_v12  ;;  %404 = vmatpush.msra.mxu3 %v71_v26  ;;  %v125_v39 = vld [vmem:[%s5617_s1 + $0x80] sm:$0xff]  ;;  %v74_v41 = vld [vmem:[%s5742_s19 + $0x28] sm:$0xff]  ;;  %v72_v44 = vld [vmem:[%s5742_s19 + $0x18] sm:$0xff]  ;;  %v3501_v12 = vshrl.u32 %v202_v3, 7  ;;  %s5667_s1 = smov 116  }
  0x15   :  { %176 = vmatpush.msra.mxu1 %v134_v13  ;;  %v605_v42 = vld [vmem:[%s5624_s8 + $0x8] sm:$0xff]  ;;  %v3367_v46 = vld [vmem:[%s5625_s9] sm:$0xff]  ;;  %v3395_v53 = vld [vmem:[%s5618_s2 + $0xf8] sm:$0xff] }
  0x16   :  { %148 = vmatpush.msra.mxu0 %v117_v14  ;;  %405 = vmatpush.msra.mxu3 %v69_v29  ;;  %v371_v43 = vld [vmem:[%s5620_s4 + $0x8] sm:$0xff]  ;;  %v3402_v54 = vld [vmem:[%s5618_s2 + $0xf0] sm:$0xff]  ;;  %v3416_v57 = vld [vmem:[%s5618_s2 + $0xe0] sm:$0xff]  ;;  %v204_v33 = vadd.s32 8, %v3501_v12  ;;  %s3122_s4 = smov 111  }
  0x17   :  { %177 = vmatpush.msra.mxu1 %v133_v15  ;;  %2807 = vmatmul.msk.f32.vlgmr.msra.gmra.mxu3 %vm252_vm0, %v370_v32  ;;  %v373_v45 = vld [vmem:[%s5621_s5 + $0x8] sm:$0xff]  ;;  %v3427_v60 = vld [vmem:[%s5618_s2 + $0xd8] sm:$0xff]  ;;  %v3442_v63 = vld [vmem:[%s5618_s2 + $0xd0] sm:$0xff]  ;;  %s5684_s5 = smov 102  }
  0x18   :  { %149 = vmatpush.msra.mxu0 %v116_v16  ;;  %425 = vmatpush.msrb.mxu3 %v76_v37  ;;  %v3377_v48 = vld [vmem:[%s5625_s9 + $0x8] sm:$0xff]  ;;  %v3437_v62 = vld [vmem:[%s5618_s2 + $0x78] sm:$0xff]  ;;  %v3450_v0 = vld [vmem:[%s5618_s2 + $0x70] sm:$0xff] }
  0x19   :  { %178 = vmatpush.msra.mxu1 %v132_v17  ;;  %613 = vperm.xlu1 %2877, %v605_v42   ;;  %v3409_v55 = vld [vmem:[%s5618_s2 + $0xe8] sm:$0xff]  ;;  %v3463_v2 = vld [vmem:[%s5618_s2 + $0xc0] sm:$0xff]  ;;  %v3481_v8 = vld [vmem:[%s5618_s2 + $0xb8] sm:$0xff]  ;;  %v3531_v17 = vand.u32 127, %v202_v3  ;;  %v3076_v3 = vmov 9  }
  0x1a   :  { %150 = vmatpush.msra.mxu0 %v115_v18  ;;  %426 = vmatpush.msrb.mxu3 %v74_v41  ;;  %v3455_v1 = vld [vmem:[%s5618_s2 + $0xc8] sm:$0xff]  ;;  %v3487_v9 = vld [vmem:[%s5618_s2 + $0x60] sm:$0xff]  ;;  %v3496_v11 = vld [vmem:[%s5618_s2 + $0xb0] sm:$0xff]  ;;  %v2795_v18 = vadd.s32 4294967295, %v3501_v12 }
  0x1b   :  { %179 = vmatpush.msra.mxu1 %v131_v19  ;;  %826 = vperm.xlu2 %2878, %v3367_v46   ;;  %v3469_v4 = vld [vmem:[%s5618_s2 + $0x68] sm:$0xff]  ;;  %v3506_v13 = vld [vmem:[%s5618_s2 + $0x58] sm:$0xff]  ;;  %v3521_v15 = vld [vmem:[%s5618_s2 + $0x50] sm:$0xff]  ;;  %vm222_vm2 = vcmp.eq.s32.totalorder %v3531_v17, %v3501_v12  ;;  %vm223_vm6 = vcmp.eq.s32.totalorder %v3531_v17, %v204_v33 }
  0x1c   :  { %151 = vmatpush.msra.mxu0 %v114_v21  ;;  %427 = vmatpush.msrb.mxu3 %v72_v44  ;;  %v3515_v14 = vld [vmem:[%s5618_s2 + $0xa8] sm:$0xff]  ;;  %v3528_v16 = vld [vmem:[%s5618_s2 + $0xa0] sm:$0xff]  ;;  %vm213_vm1 = vcmp.eq.s32.totalorder %v3531_v17, %v2795_v18 }
  0x1d   :  { %180 = vmatpush.msra.mxu1 %v130_v22  ;;  %381 = vperm.xlu0 %2876, %v373_v45   ;;  %v3619_v42 = vld [vmem:[%s5618_s2 + $0x28] sm:$0xff] }
  0x1e   :  { %152 = vmatpush.msra.mxu0 %v113_v24  ;;  %428 = vmatpush.msrb.mxu3 %v70_v40  ;;  %v3548_v24 = vld [vmem:[%s5618_s2 + $0x98] sm:$0xff] }
  0x1f   :  { %181 = vmatpush.msra.mxu1 %v129_v25  ;;  %2808 = vmatmul.msk.f32.gmra.mxu3 %vm252_vm0, %v371_v43  ;;  %v3554_v25 = vld [vmem:[%s5618_s2 + $0x40] sm:$0xff] }
  0x20   :  { %153 = vmatpush.msra.mxu0 %v112_v27  ;;  %473 = vmatpush.msra.mxu3 %v3395_v53  ;;  %v3561_v27 = vld [vmem:[%s5618_s2 + $0x90] sm:$0xff] }
  0x21   :  { %182 = vmatpush.msra.mxu1 %v128_v28  ;;  %2879 = vset.pattern.permute.xlu1 %v5634_v47  ;;  %v3566_v28 = vstv %s3499_s17  ;;  %s5673_s17 = smov 106  }
  0x22   :  { %154 = vmatpush.msra.mxu0 %v111_v30  ;;  %841 = vperm.xlu1 %2879, %v3367_v46   ;;  %v3574_v30 = vld [vmem:[%s5618_s2 + $0x38] sm:$0xff] }
  0x23   :  { %183 = vmatpush.msra.mxu1 %v127_v31  ;;  %2880 = vset.pattern.permute.xlu2 %v5634_v47  ;;  %v3579_v31 = vstv %s3510_s21  ;;  %s3101_s21 = smov 127  }
  0x24   :  { %155 = vmatpush.msra.mxu0 %v110_v34  ;;  %845 = vperm.xlu2 %2880, %v3377_v48   ;;  %v3586_v34 = vstv %s5622_s6  ;;  %s3105_s6 = smov 122  }
  0x25   :  { %184 = vmatpush.msra.mxu1 %v126_v35  ;;  %2881 = vset.pattern.permute.xlu0 %v3069_v49  ;;  %v3591_v35 = vld [vmem:[%s5618_s2 + $0x88] sm:$0xff] }
  0x26   :  { %156 = vmatpush.msra.mxu0 %v109_v38  ;;  %890 = vperm.xlu0 %2881, %v3367_v46   ;;  %v3599_v38 = vld [vmem:[%s5618_s2 + $0x30] sm:$0xff] }
  0x27   :  { %185 = vmatpush.msra.mxu1 %v125_v39  ;;  %157 = vmatmul.f32.vlgmr.msra.gmra.mxu0 %v69_v29  ;;  %v3605_v39 = vld [vmem:[%s5618_s2 + $0x80] sm:$0xff] }
  0x28   :  { %186 = vmatmul.f32.vlgmr.msra.gmra.mxu1 %v70_v40  ;;  %2809 = vmatmul.msk.f32.vlgmr.msrb.gmra.mxu3 %vm252_vm0, %v370_v32  ;;  %v235_v32 = vadd.s32 1, %v3501_v12  ;;  %v218_v40 = vsel %vm213_vm1, %v3566_v28, 0.0 }
  0x29   :  { %539 = vmatpush.msrb.mxu1 %v3395_v53  ;;  %474 = vmatpush.msra.mxu3 %v3402_v54 }
  0x2a   :  { %2882 = vset.pattern.permute.xlu1 %v3069_v49  ;;  %516 = vmatpush.msrb.mxu0 %v3437_v62  ;;  %vm239_vm4 = vcmp.eq.s32.totalorder %v3531_v17, %v235_v32  ;;  %v3626_v49 = vstv %s3543_s28  ;;  %v3659_v32 = vld [vmem:[%s5618_s2 + $0x10] sm:$0xff]  ;;  %s5718_s28 = smov 117  }
  0x2b   :  { %894 = vperm.xlu1 %2882, %v3377_v48   ;;  %540 = vmatpush.msrb.mxu1 %v3402_v54 }
  0x2c   :  { %475 = vmatpush.msra.mxu3 %v3409_v55  ;;  %2887 = vset.pattern.permute.xlu2 %v3073_v56 }
  0x2d   :  { %541 = vmatpush.msrb.mxu1 %v3409_v55  ;;  %1037 = vperm.xlu2 %2887, %v3367_v46  }
  0x2e   :  { %2883 = vset.pattern.permute.xlu0 %v3070_v50  ;;  %476 = vmatpush.msra.mxu3 %v3416_v57 }
  0x2f   :  { %160 = vmatmul.f32.gmra.mxu0 %v71_v26  ;;  %939 = vperm.xlu0 %2883, %v3367_v46  }
  0x30   :  { %189 = vmatmul.f32.gmra.mxu1 %v72_v44  ;;  %2810 = vmatmul.msk.f32.gmra.mxu3 %vm252_vm0, %v371_v43 }
  0x31   :  { %542 = vmatpush.msrb.mxu1 %v3416_v57  ;;  %477 = vmatpush.msra.mxu3 %v3427_v60 }
  0x32   :  { %517 = vmatpush.msrb.mxu0 %v3450_v0 }
  0x33   :  { %2884 = vset.pattern.permute.xlu1 %v3070_v50  ;;  %543 = vmatpush.msrb.mxu1 %v3427_v60  ;;  %v2796_v50 = vadd.s32 4294967295, %v204_v33 }
  0x34   :  { %943 = vperm.xlu1 %2884, %v3377_v48   ;;  %478 = vmatpush.msra.mxu3 %v3442_v63 }
  0x35   :  { %544 = vmatpush.msrb.mxu1 %v3442_v63  ;;  %518 = vmatpush.msrb.mxu0 %v3469_v4  ;;  %vm214_vm5 = vcmp.eq.s32.totalorder %v3531_v17, %v2796_v50 }
  0x36   :  { %479 = vmatpush.msra.mxu3 %v3455_v1 }
  0x37   :  { %163 = vmatmul.f32.gmra.mxu0 %v3294_v23  ;;  %2885 = vset.pattern.permute.xlu0 %v3071_v51  ;;  %v3075_v23 = vmov 8  }
  0x38   :  { %192 = vmatmul.f32.gmra.mxu1 %v74_v41  ;;  %988 = vperm.xlu0 %2885, %v3367_v46   ;;  %v227_v41 = vsel %vm222_vm2, %v3579_v31, 0.0 }
  0x39   :  { %545 = vmatpush.msrb.mxu1 %v3455_v1  ;;  %480 = vmatpush.msra.mxu3 %v3463_v2  ;;  %v231_v18 = vadd.f32 %v227_v41, %v218_v40  ;;  %v236_v40 = vadd.s32 1, %v204_v33  ;;  %v3077_v33 = vmov 14  }
  0x3a   :  { %519 = vmatpush.msrb.mxu0 %v3487_v9  ;;  %2890 = vset.pattern.permute.xlu2 %v3075_v23 }
  0x3b   :  { %481 = vmatpush.msra.mxu3 %v3481_v8  ;;  %546 = vmatpush.msrb.mxu1 %v3463_v2  ;;  %vm240_vm8 = vcmp.eq.s32.totalorder %v3531_v17, %v236_v40 }
  0x3c   :  { %2886 = vset.pattern.permute.xlu1 %v3071_v51  ;;  %520 = vmatpush.msrb.mxu0 %v3506_v13  ;;  %v245_v50 = vsel %vm240_vm8, %v3626_v49, 0.0 }
  0x3d   :  { %992 = vperm.xlu1 %2886, %v3377_v48   ;;  %482 = vmatpush.msra.mxu3 %v3496_v11 }
  0x3e   :  { %547 = vmatpush.msrb.mxu1 %v3481_v8  ;;  %521 = vmatpush.msrb.mxu0 %v3521_v15 }
  0x3f   :  { %166 = vmatmul.f32.gmra.mxu0 %v3282_v20  ;;  %483 = vmatpush.msra.mxu3 %v3515_v14  ;;  %v3539_v20 = vld [vmem:[%s5618_s2 + $0x48] sm:$0xff] }
  0x40   :  { %195 = vmatmul.f32.gmra.mxu1 %v76_v37  ;;  %522 = vmatpush.msrb.mxu0 %v3539_v20 }
  0x41   :  { %548 = vmatpush.msrb.mxu1 %v3496_v11  ;;  %484 = vmatpush.msra.mxu3 %v3528_v16 }
  0x42   :  { %523 = vmatpush.msrb.mxu0 %v3554_v25  ;;  %1184 = vperm.xlu2 %2890, %v3367_v46  }
  0x43   :  { %549 = vmatpush.msrb.mxu1 %v3515_v14  ;;  %485 = vmatpush.msra.mxu3 %v3548_v24 }
  0x44   :  { %524 = vmatpush.msrb.mxu0 %v3574_v30 }
  0x45   :  { %2889 = vset.pattern.permute.xlu1 %v3072_v52  ;;  %486 = vmatpush.msra.mxu3 %v3561_v27 }
  0x46   :  { %1135 = vperm.xlu1 %2889, %v3367_v46   ;;  %550 = vmatpush.msrb.mxu1 %v3528_v16 }
  0x47   :  { %487 = vmatpush.msra.mxu3 %v3591_v35  ;;  %525 = vmatpush.msrb.mxu0 %v3599_v38 }
  0x48   :  { %551 = vmatpush.msrb.mxu1 %v3548_v24 }
  0x49   :  { %488 = vmatpush.msra.mxu3 %v3605_v39  ;;  %526 = vmatpush.msrb.mxu0 %v3619_v42 }
  0x4a   :  { %552 = vmatpush.msrb.mxu1 %v3561_v27  ;;  %2892 = vset.pattern.permute.xlu2 %v3076_v3 }
  0x4b   :  { %1233 = vperm.xlu2 %2892, %v3367_v46   ;;  %665 = vmatpush.msrb.mxu3 %v3395_v53 }
  0x4c   :  { %553 = vmatpush.msrb.mxu1 %v3591_v35 }
  0x4d   :  { %666 = vmatpush.msrb.mxu3 %v3402_v54 }
  0x4e   :  { %2891 = vset.pattern.permute.xlu1 %v3073_v56  ;;  %v3633_v56 = vld [vmem:[%s5618_s2 + $0x20] sm:$0xff]  ;;  %554 = vmatpush.msrb.mxu1 %v3605_v39 }
  0x4f   :  { %1041 = vperm.xlu1 %2891, %v3377_v48   ;;  %527 = vmatpush.msrb.mxu0 %v3633_v56 }
  0x50   :  { %667 = vmatpush.msrb.mxu3 %v3409_v55  ;;  %731 = vmatpush.msra.mxu1 %v3395_v53 }
  0x52   :  { %668 = vmatpush.msrb.mxu3 %v3416_v57  ;;  %732 = vmatpush.msra.mxu1 %v3402_v54 }
  0x53   :  { %2894 = vset.pattern.permute.xlu2 %v3072_v52 }
  0x54   :  { %1139 = vperm.xlu2 %2894, %v3377_v48   ;;  %669 = vmatpush.msrb.mxu3 %v3427_v60 }
  0x55   :  { %733 = vmatpush.msra.mxu1 %v3409_v55 }
  0x56   :  { %670 = vmatpush.msrb.mxu3 %v3442_v63 }
  0x57   :  { %2893 = vset.pattern.permute.xlu1 %v5644_v5  ;;  %734 = vmatpush.msra.mxu1 %v3416_v57 }
  0x58   :  { %1282 = vperm.xlu1 %2893, %v3367_v46   ;;  %671 = vmatpush.msrb.mxu3 %v3455_v1 }
  0x59   :  { %735 = vmatpush.msra.mxu1 %v3427_v60 }
  0x5a   :  { %672 = vmatpush.msrb.mxu3 %v3463_v2 }
  0x5b   :  { %736 = vmatpush.msra.mxu1 %v3442_v63 }
  0x5c   :  { %673 = vmatpush.msrb.mxu3 %v3481_v8 }
  0x5d   :  { %737 = vmatpush.msra.mxu1 %v3455_v1 }
  0x5e   :  { %674 = vmatpush.msrb.mxu3 %v3496_v11 }
  0x5f   :  { %738 = vmatpush.msra.mxu1 %v3463_v2 }
  0x60   :  { %2896 = vset.pattern.permute.xlu1 %v3075_v23  ;;  %675 = vmatpush.msrb.mxu3 %v3515_v14 }
  0x61   :  { %1188 = vperm.xlu1 %2896, %v3377_v48   ;;  %739 = vmatpush.msra.mxu1 %v3481_v8 }
  0x62   :  { %676 = vmatpush.msrb.mxu3 %v3528_v16 }
  0x63   :  { %740 = vmatpush.msra.mxu1 %v3496_v11 }
  0x64   :  { %677 = vmatpush.msrb.mxu3 %v3548_v24 }
  0x65   :  { %741 = vmatpush.msra.mxu1 %v3515_v14 }
  0x66   :  { %678 = vmatpush.msrb.mxu3 %v3561_v27 }
  0x67   :  { %742 = vmatpush.msra.mxu1 %v3528_v16 }
  0x68   :  { %679 = vmatpush.msrb.mxu3 %v3591_v35 }
  0x69   :  { %2898 = vset.pattern.permute.xlu1 %v3076_v3  ;;  %743 = vmatpush.msra.mxu1 %v3548_v24 }
  0x6a   :  { %1237 = vperm.xlu1 %2898, %v3377_v48   ;;  %680 = vmatpush.msrb.mxu3 %v3605_v39 }
  0x6b   :  { %744 = vmatpush.msra.mxu1 %v3561_v27 }
  0x6d   :  { %745 = vmatpush.msra.mxu1 %v3591_v35 }
  0x6f   :  { %746 = vmatpush.msra.mxu1 %v3605_v39 }
  0x72   :  { %2901 = vset.pattern.permute.xlu1 %v3077_v33 }
  0x73   :  { %1478 = vperm.xlu1 %2901, %v3367_v46  }
  0x85   :  { %v3534_v19 = vpop.permute.xlu0 %376 }
  0x8f   :  { %v3636_v23 = vpop.permute.xlu0 %381 }
  0x9a   :  { %v3432_v61 = vpop.f32.mrf.mxu3 }
  0xa2   :  { %v3491_v10 = vpop.f32.mrf.mxu3 }
  0xa4   :  { %v3420_v58 = vpop.f32.mrf.mxu0 }
  0xa5   :  { %v3422_v59 = vpop.f32.mrf.mxu1 }
  0xa6   :  { %v188_v3 = vadd.f32 %v3422_v59, %v3420_v58 }
  0xab   :  { %v430_v26 = vpop.f32.mrf.mxu3 }
  0xac   :  { %v3473_v6 = vpop.f32.mrf.mxu0  ;;  %v431_v29 = vadd.f32 %v430_v26, %v3534_v19 }
  0xad   :  { %v3475_v7 = vpop.f32.mrf.mxu1 }
  0xae   :  { %vm438_vm3 = vcmp.ge.f32.partialorder %v431_v29, 0.0  ;;  %v443_v37 = vmul.f32 %v3586_v34, %v431_v29 }
  0xb0   :  { %v3622_v43 = vsel %vm438_vm3, %v431_v29, %v443_v37  ;;  %v244_v37 = vsel %vm239_vm4, %v3626_v49, 0.0 }
  0xb1   :  { %489 = vmatmul.f32.vlgmr.msra.gmra.mxu3 %v3622_v43 }
  0xb2   :  { %2371 = vmatpush.msra.mxu3 %v3395_v53 }
  0xb3   :  { %v433_v26 = vpop.f32.mrf.mxu3 }
  0xb4   :  { %v164_v21 = vpop.f32.mrf.mxu0  ;;  %2372 = vmatpush.msra.mxu3 %v3402_v54 }
  0xb5   :  { %v193_v22 = vpop.f32.mrf.mxu1 }
  0xb6   :  { %v194_v29 = vadd.f32 %v193_v22, %v164_v21  ;;  %v205_v21 = vadd.s32 16, %v3501_v12  ;;  %v191_v22 = vadd.f32 %v3475_v7, %v3473_v6  ;;  %v219_v6 = vsel %vm214_vm5, %v3566_v28, 0.0  ;;  %2373 = vmatpush.msra.mxu3 %v3409_v55 }
  0xb7   :  { %v228_v7 = vsel %vm223_vm6, %v3579_v31, 0.0 }
  0xb8   :  { %v2797_v58 = vadd.s32 4294967295, %v205_v21  ;;  %v232_v59 = vadd.f32 %v228_v7, %v219_v6  ;;  %vm224_vm10 = vcmp.eq.s32.totalorder %v3531_v17, %v205_v21  ;;  %2374 = vmatpush.msra.mxu3 %v3416_v57 }
  0xba   :  { %vm215_vm9 = vcmp.eq.s32.totalorder %v3531_v17, %v2797_v58  ;;  %v249_v40 = vadd.f32 %v245_v50, %v232_v59  ;;  %2375 = vmatpush.msra.mxu3 %v3427_v60 }
  0xbc   :  { %v167_v44 = vpop.f32.mrf.mxu0  ;;  %2376 = vmatpush.msra.mxu3 %v3442_v63 }
  0xbd   :  { %v196_v45 = vpop.f32.mrf.mxu1 }
  0xbe   :  { %v197_v51 = vadd.f32 %v196_v45, %v167_v44  ;;  %v434_v44 = vadd.f32 %v433_v26, %v3636_v23  ;;  %v3647_v45 = vld [vmem:[%s5618_s2 + $0x18] sm:$0xff]  ;;  %2377 = vmatpush.msra.mxu3 %v3455_v1 }
  0xbf   :  { %528 = vmatpush.msrb.mxu0 %v3647_v45 }
  0xc0   :  { %277 = vmatpush.msra.mxu2 %v197_v51  ;;  %v445_v41 = vmul.f32 %v3586_v34, %v434_v44  ;;  %v248_v51 = vadd.f32 %v244_v37, %v231_v18  ;;  %vm440_vm7 = vcmp.ge.f32.partialorder %v434_v44, 0.0  ;;  %v3676_v18 = vld [vmem:[%s5618_s2 + $0x8] sm:$0xff]  ;;  %v237_v37 = vadd.s32 1, %v205_v21  ;;  %2378 = vmatpush.msra.mxu3 %v3463_v2 }
  0xc1   :  { %529 = vmatpush.msrb.mxu0 %v3659_v32  ;;  %v229_v21 = vsel %vm224_vm10, %v3579_v31, 0.0 }
  0xc2   :  { %278 = vmatpush.msra.mxu2 %v194_v29  ;;  %v3678_v26 = vsel %vm440_vm7, %v434_v44, %v445_v41  ;;  %v3692_v29 = vld [vmem:[%s5618_s2] sm:$0xff]  ;;  %v206_v44 = vadd.s32 24, %v3501_v12  ;;  %vm241_vm11 = vcmp.eq.s32.totalorder %v3531_v17, %v237_v37  ;;  %2379 = vmatpush.msra.mxu3 %v3481_v8 }
  0xc3   :  { %492 = vmatmul.f32.gmra.mxu3 %v3678_v26  ;;  %530 = vmatpush.msrb.mxu0 %v3676_v18  ;;  %v246_v41 = vsel %vm241_vm11, %v3626_v49, 0.0  ;;  %vm786_vm11 = vcmask 490496  }
  0xc4   :  { %279 = vmatpush.msra.mxu2 %v191_v22  ;;  %v220_v22 = vsel %vm215_vm9, %v3566_v28, 0.0  ;;  %v2798_v12 = vadd.s32 4294967295, %v206_v44  ;;  %vm225_vm13 = vcmp.eq.s32.totalorder %v3531_v17, %v206_v44  ;;  %2380 = vmatpush.msra.mxu3 %v3496_v11 }
  0xc5   :  { %531 = vmatpush.msrb.mxu0 %v3692_v29  ;;  %v233_v52 = vadd.f32 %v229_v21, %v220_v22  ;;  %v230_v58 = vsel %vm225_vm13, %v3579_v31, 0.0  ;;  %v5642_v22 = vmov 18   ;;  %vm810_vm13 = vcmask 1047912  }
  0xc6   :  { %280 = vmatpush.msra.mxu2 %v188_v3  ;;  %vm216_vm12 = vcmp.eq.s32.totalorder %v3531_v17, %v2798_v12  ;;  %v238_v3 = vadd.s32 1, %v206_v44  ;;  %v5641_v44 = vmov 20   ;;  %2381 = vmatpush.msra.mxu3 %v3515_v14 }
  0xc7   :  { %2799 = vmatmul.msk.f32.vlgmr.msra.gmra.mxu2 %vm252_vm0, %v248_v51  ;;  %708 = vmatpush.msra.mxu0 %v3437_v62  ;;  %v5643_v51 = vmov 15   ;;  %v250_v6 = vadd.f32 %v246_v41, %v233_v52  ;;  %v221_v7 = vsel %vm216_vm12, %v3566_v28, 0.0  ;;  %v3083_v52 = vmov 24  }
  0xc8   :  { %450 = vmatpush.msrb.mxu2 %v3437_v62  ;;  %2903 = vset.pattern.permute.xlu1 %v5643_v51  ;;  %vm242_vm14 = vcmp.eq.s32.totalorder %v3531_v17, %v238_v3  ;;  %v234_v59 = vadd.f32 %v230_v58, %v221_v7  ;;  %v5647_v17 = vmov 13   ;;  %v5638_v41 = vmov 25  }
  0xc9   :  { %709 = vmatpush.msra.mxu0 %v3450_v0  ;;  %1527 = vperm.xlu1 %2903, %v3367_v46   ;;  %v247_v28 = vsel %vm242_vm14, %v3626_v49, 0.0  ;;  %v408_v49 = vadd.f32 %v3432_v61, %v3534_v19  ;;  %v411_v19 = vadd.f32 %v3491_v10, %v3636_v23  ;;  %v3080_v23 = vmov 19  }
  0xca   :  { %451 = vmatpush.msrb.mxu2 %v3450_v0  ;;  %v251_v31 = vadd.f32 %v247_v28, %v234_v59  ;;  %2382 = vmatpush.msra.mxu3 %v3528_v16  ;;  %v5637_v59 = vmov 29   ;;  %vm799_vm12 = vcmask 908408   ;;  %vm812_vm14 = vcmask 105472  }
  0xcb   :  { %710 = vmatpush.msra.mxu0 %v3469_v4  ;;  %v442_v61 = vmul.f32 %v3586_v34, %v408_v49  ;;  %vm437_vm15 = vcmp.ge.f32.partialorder %v408_v49, 0.0  ;;  %v444_v10 = vmul.f32 %v3586_v34, %v411_v19 }
  0xcc   :  { %452 = vmatpush.msrb.mxu2 %v3469_v4  ;;  %2383 = vmatpush.msra.mxu3 %v3548_v24 }
  0xcd   :  { %711 = vmatpush.msra.mxu0 %v3487_v9  ;;  %v3772_v50 = vsel %vm437_vm15, %v408_v49, %v442_v61  ;;  %v5640_v61 = vmov 27   ;;  %vm5735_vm15 = vcmask 1039360  }
  0xce   :  { %453 = vmatpush.msrb.mxu2 %v3487_v9  ;;  %2384 = vmatpush.msra.mxu3 %v3561_v27 }
  0xcf   :  { %2800 = vmatmul.msk.f32.gmra.mxu2 %vm252_vm0, %v249_v40  ;;  %712 = vmatpush.msra.mxu0 %v3506_v13 }
  0xd0   :  { %454 = vmatpush.msrb.mxu2 %v3506_v13  ;;  %2385 = vmatpush.msra.mxu3 %v3591_v35 }
  0xd1   :  { %2906 = vset.pattern.permute.xlu1 %v5647_v17  ;;  %713 = vmatpush.msra.mxu0 %v3521_v15 }
  0xd2   :  { %455 = vmatpush.msrb.mxu2 %v3521_v15  ;;  %1433 = vperm.xlu1 %2906, %v3377_v48  }
  0xd3   :  { %714 = vmatpush.msra.mxu0 %v3539_v20  ;;  %2386 = vmatpush.msra.mxu3 %v3605_v39 }
  0xd4   :  { %456 = vmatpush.msrb.mxu2 %v3539_v20 }
  0xd5   :  { %715 = vmatpush.msra.mxu0 %v3554_v25 }
  0xd6   :  { %457 = vmatpush.msrb.mxu2 %v3554_v25 }
  0xd7   :  { %2801 = vmatmul.msk.f32.gmra.mxu2 %vm252_vm0, %v250_v6  ;;  %716 = vmatpush.msra.mxu0 %v3574_v30  ;;  %v5639_v6 = vmov 22  }
  0xd8   :  { %458 = vmatpush.msrb.mxu2 %v3574_v30 }
  0xd9   :  { %717 = vmatpush.msra.mxu0 %v3599_v38 }
  0xda   :  { %459 = vmatpush.msrb.mxu2 %v3599_v38  ;;  %2908 = vset.pattern.permute.xlu1 %v3077_v33  ;;  %v3776_v33 = vpop.permute.xlu1 %613 }
  0xdb   :  { %1482 = vperm.xlu1 %2908, %v3377_v48   ;;  %718 = vmatpush.msra.mxu0 %v3619_v42 }
  0xdc   :  { %460 = vmatpush.msrb.mxu2 %v3619_v42 }
  0xdd   :  { %719 = vmatpush.msra.mxu0 %v3633_v56 }
  0xde   :  { %461 = vmatpush.msrb.mxu2 %v3633_v56 }
  0xdf   :  { %2802 = vmatmul.msk.f32.gmra.mxu2 %vm252_vm0, %v251_v31  ;;  %vm439_vm0 = vcmp.ge.f32.partialorder %v411_v19, 0.0  ;;  %720 = vmatpush.msra.mxu0 %v3647_v45  ;;  %v5636_v31 = vmov 26  }
  0xe0   :  { %462 = vmatpush.msrb.mxu2 %v3647_v45  ;;  %v3791_v37 = vsel %vm439_vm0, %v411_v19, %v444_v10  ;;  %vm921_vm0 = vcmask 1031168  }
  0xe1   :  { %721 = vmatpush.msra.mxu0 %v3659_v32 }
  0xe2   :  { %463 = vmatpush.msrb.mxu2 %v3659_v32  ;;  %v3799_v34 = vpop.permute.xlu1 %841 }
  0xe3   :  { %2911 = vset.pattern.permute.xlu1 %v3080_v23  ;;  %722 = vmatpush.msra.mxu0 %v3676_v18 }
  0xe4   :  { %464 = vmatpush.msrb.mxu2 %v3676_v18  ;;  %1723 = vperm.xlu1 %2911, %v3367_v46  }
  0xe5   :  { %723 = vmatpush.msra.mxu0 %v3692_v29 }
  0xe6   :  { %465 = vmatpush.msrb.mxu2 %v3692_v29 }
  0xe7   :  { %466 = vmatmul.f32.vlgmr.msrb.gmra.mxu2 %v3772_v50 }
  0xe8   :  { %642 = vmatpush.msra.mxu2 %v3437_v62 }
  0xea   :  { %643 = vmatpush.msra.mxu2 %v3450_v0  ;;  %v3821_v40 = vpop.permute.xlu1 %894 }
  0xeb   :  { %5743 = vst [vmem:[#allocation10_spill] sm:$0xff] %v3821_v40 }
  0xec   :  { %644 = vmatpush.msra.mxu2 %v3469_v4  ;;  %2913 = vset.pattern.permute.xlu1 %v5641_v44 }
  0xed   :  { %1772 = vperm.xlu1 %2913, %v3367_v46  }
  0xee   :  { %645 = vmatpush.msra.mxu2 %v3487_v9 }
  0xef   :  { %469 = vmatmul.f32.gmra.mxu2 %v3791_v37 }
  0xf0   :  { %646 = vmatpush.msra.mxu2 %v3506_v13 }
  0xf2   :  { %647 = vmatpush.msra.mxu2 %v3521_v15  ;;  %v3835_v21 = vpop.permute.xlu1 %943 }
  0xf3   :  { %5744 = vst [vmem:[#allocation11_spill] sm:$0xff] %v3835_v21 }
  0xf4   :  { %648 = vmatpush.msra.mxu2 %v3539_v20 }
  0xf5   :  { %2916 = vset.pattern.permute.xlu1 %v5642_v22 }
  0xf6   :  { %649 = vmatpush.msra.mxu2 %v3554_v25  ;;  %1678 = vperm.xlu1 %2916, %v3377_v48  }
  0xf8   :  { %650 = vmatpush.msra.mxu2 %v3574_v30 }
  0xfa   :  { %651 = vmatpush.msra.mxu2 %v3599_v38  ;;  %v3843_v12 = vpop.permute.xlu1 %992 }
  0xfb   :  { %5745 = vst [vmem:[#allocation12_spill] sm:$0xff] %v3843_v12 }
  0xfc   :  { %652 = vmatpush.msra.mxu2 %v3619_v42 }
  0xfe   :  { %653 = vmatpush.msra.mxu2 %v3633_v56  ;;  %2918 = vset.pattern.permute.xlu1 %v3080_v23 }
  0xff   :  { %1727 = vperm.xlu1 %2918, %v3377_v48  }
 0x100   :  { %654 = vmatpush.msra.mxu2 %v3647_v45 }
 0x102   :  { %655 = vmatpush.msra.mxu2 %v3659_v32  ;;  %v3852_v3 = vpop.permute.xlu1 %1135 }
 0x104   :  { %656 = vmatpush.msra.mxu2 %v3676_v18 }
 0x106   :  { %657 = vmatpush.msra.mxu2 %v3692_v29 }
 0x107   :  { %2921 = vset.pattern.permute.xlu1 %v3083_v52 }
 0x108   :  { %2348 = vmatpush.msrb.mxu2 %v3437_v62  ;;  %1968 = vperm.xlu1 %2921, %v3367_v46  }
 0x10a   :  { %2349 = vmatpush.msrb.mxu2 %v3450_v0  ;;  %v3862_v7 = vpop.permute.xlu1 %1041 }
 0x10b   :  { %5746 = vst [vmem:[#allocation13_spill] sm:$0xff] %v3862_v7 }
 0x10c   :  { %2350 = vmatpush.msrb.mxu2 %v3469_v4 }
 0x10e   :  { %2351 = vmatpush.msrb.mxu2 %v3487_v9 }
 0x110   :  { %2352 = vmatpush.msrb.mxu2 %v3506_v13  ;;  %2923 = vset.pattern.permute.xlu1 %v5638_v41 }
 0x111   :  { %2017 = vperm.xlu1 %2923, %v3367_v46  }
 0x112   :  { %2353 = vmatpush.msrb.mxu2 %v3521_v15  ;;  %v3867_v58 = vpop.permute.xlu1 %1282 }
 0x114   :  { %2354 = vmatpush.msrb.mxu2 %v3539_v20 }
 0x116   :  { %2355 = vmatpush.msrb.mxu2 %v3554_v25 }
 0x118   :  { %2356 = vmatpush.msrb.mxu2 %v3574_v30 }
 0x119   :  { %2924 = vset.pattern.permute.xlu1 %v5639_v6 }
 0x11a   :  { %2357 = vmatpush.msrb.mxu2 %v3599_v38  ;;  %1874 = vperm.xlu1 %2924, %v3377_v48   ;;  %v3871_v28 = vpop.permute.xlu1 %1188 }
 0x11b   :  { %5747 = vst [vmem:[#allocation14_spill] sm:$0xff] %v3871_v28 }
 0x11c   :  { %2358 = vmatpush.msrb.mxu2 %v3619_v42 }
 0x11e   :  { %2359 = vmatpush.msrb.mxu2 %v3633_v56 }
 0x120   :  { %2360 = vmatpush.msrb.mxu2 %v3647_v45 }
 0x122   :  { %2361 = vmatpush.msrb.mxu2 %v3659_v32  ;;  %2928 = vset.pattern.permute.xlu1 %v3083_v52  ;;  %v3875_v49 = vpop.permute.xlu1 %1237 }
 0x123   :  { %1972 = vperm.xlu1 %2928, %v3377_v48   ;;  %5748 = vst [vmem:[#allocation15_spill] sm:$0xff] %v3875_v49 }
 0x124   :  { %2362 = vmatpush.msrb.mxu2 %v3676_v18 }
 0x126   :  { %2363 = vmatpush.msrb.mxu2 %v3692_v29 }
 0x12a   :  { %v3881_v10 = vpop.permute.xlu1 %1478 }
 0x12b   :  { %2931 = vset.pattern.permute.xlu1 %v5637_v59 }
 0x12c   :  { %2213 = vperm.xlu1 %2931, %v3367_v46  }
 0x134   :  { %2932 = vset.pattern.permute.xlu1 %v5636_v31  ;;  %v490_v41 = vpop.f32.mrf.mxu3 }
 0x135   :  { %2070 = vperm.xlu1 %2932, %v3377_v48  }
 0x13b   :  { %v3886_v52 = vpop.permute.xlu1 %1527 }
 0x13d   :  { %2934 = vset.pattern.permute.xlu1 %v5640_v61 }
 0x13e   :  { %2119 = vperm.xlu1 %2934, %v3377_v48  }
 0x144   :  { %v3890_v31 = vpop.permute.xlu1 %1433 }
 0x146   :  { %2939 = vset.pattern.permute.xlu1 %v5645_v36  ;;  %v493_v51 = vpop.f32.mrf.mxu3 }
 0x14a   :  { %v3879_v19 = vpop.f32.mrf.mxu2 }
 0x14b   :  { %5749 = vst [vmem:[#allocation16_spill] sm:$0xff] %v3879_v19 }
 0x14d   :  { %v3894_v6 = vpop.permute.xlu1 %1482 }
 0x152   :  { %v3884_v23 = vpop.f32.mrf.mxu2 }
 0x153   :  { %5750 = vst [vmem:[#allocation17_spill] sm:$0xff] %v3884_v23 }
 0x156   :  { %v3896_v17 = vpop.permute.xlu1 %1723 }
 0x15a   :  { %v3888_v47 = vpop.f32.mrf.mxu2 }
 0x15b   :  { %5751 = vst [vmem:[#allocation18_spill] sm:$0xff] %v3888_v47 }
 0x15f   :  { %v3898_v19 = vpop.permute.xlu1 %1772 }
 0x162   :  { %v3892_v59 = vpop.f32.mrf.mxu2 }
 0x163   :  { %5752 = vst [vmem:[#allocation19_spill] sm:$0xff] %v3892_v59 }
 0x168   :  { %v3900_v47 = vpop.permute.xlu1 %1678 }
 0x169   :  { %5753 = vst [vmem:[#allocation20_spill] sm:$0xff] %v3900_v47 }
 0x16a   :  { %v467_v61 = vpop.f32.mrf.mxu2 }
 0x16b   :  { %v491_v44 = vadd.f32 %v490_v41, %v467_v61 }
 0x16d   :  { %v496_v22 = vmul.f32 0.0052083335, %v491_v44 }
 0x16f   :  { %500 = vperm.xlu1 %2939, %v496_v22  }
 0x171   :  { %v3902_v49 = vpop.permute.xlu1 %1727 }
 0x172   :  { %v470_v5 = vpop.f32.mrf.mxu2  ;;  %5754 = vst [vmem:[#allocation21_spill] sm:$0xff] %v3902_v49 }
 0x173   :  { %v494_v36 = vadd.f32 %v493_v51, %v470_v5  ;;  %v3089_v5 = vmov 6   ;;  %v3090_v51 = vmov 12  }
 0x174   :  { %2888 = vset.pattern.permute.xlu0 %v3089_v5  ;;  %2897 = vset.pattern.permute.xlu2 %v3090_v51 }
 0x175   :  { %v497_v23 = vmul.f32 0.0052083335, %v494_v36  ;;  %1086 = vperm.xlu0 %2888, %v3367_v46   ;;  %1380 = vperm.xlu2 %2897, %v3367_v46  }
 0x177   :  { %505 = vperm.xlu1 %2939, %v497_v23   ;;  %v5760_v23 = vmov 13  }
 0x17a   :  { %v3904_v59 = vpop.permute.xlu1 %1968 }
 0x17b   :  { %5755 = vst [vmem:[#allocation22_spill] sm:$0xff] %v3904_v59 }
 0x17d   :  { %1090 = vperm.xlu0 %2888, %v3377_v48   ;;  %2899 = vset.pattern.permute.xlu2 %v5760_v23 }
 0x17e   :  { %1429 = vperm.xlu2 %2899, %v3367_v46  }
 0x183   :  { %v3906_v28 = vpop.permute.xlu1 %2017 }
 0x18c   :  { %v3908_v41 = vpop.permute.xlu1 %1874 }
 0x18d   :  { %5756 = vst [vmem:[#allocation23_spill] sm:$0xff] %v3908_v41  ;;  %v3091_v41 = vmov 11  }
 0x18e   :  { %2895 = vset.pattern.permute.xlu0 %v3091_v41  ;;  %2902 = vset.pattern.permute.xlu2 %v3091_v41 }
 0x18f   :  { %1331 = vperm.xlu0 %2895, %v3367_v46   ;;  %1335 = vperm.xlu2 %2902, %v3377_v48  }
 0x195   :  { %v3910_v44 = vpop.permute.xlu1 %1972 }
 0x196   :  { %5757 = vst [vmem:[#allocation24_spill] sm:$0xff] %v3910_v44  ;;  %v5761_v44 = vmov 10  }
 0x197   :  { %2900 = vset.pattern.permute.xlu0 %v5761_v44  ;;  %2904 = vset.pattern.permute.xlu2 %v3090_v51 }
 0x198   :  { %1286 = vperm.xlu0 %2900, %v3377_v48   ;;  %1384 = vperm.xlu2 %2904, %v3377_v48  }
 0x19e   :  { %v3912_v22 = vpop.permute.xlu1 %2213 }
 0x1a7   :  { %v3915_v36 = vpop.permute.xlu1 %2070 }
 0x1a8   :  { %5758 = vst [vmem:[#allocation25_spill] sm:$0xff] %v3915_v36 }
 0x1b0   :  { %v3919_v61 = vpop.permute.xlu1 %2119 }
 0x1b1   :  { %5759 = vst [vmem:[#allocation26_spill] sm:$0xff] %v3919_v61 }
 0x1e1   :  { %v501_v5 = vpop.permute.xlu1 %500 }
 0x1e2   :  { %v3925_v47 = vsub.f32 %v3772_v50, %v501_v5  ;;  %v3928_v36 = vsub.f32 %v3622_v43, %v501_v5 }
 0x1e4   :  { %v512_v61 = vmul.f32 %v3925_v47, %v3925_v47  ;;  %v513_v23 = vmul.f32 %v3928_v36, %v3928_v36 }
 0x1e6   :  { %532 = vmatmul.f32.vlgmr.msrb.gmra.mxu0 %v512_v61  ;;  %555 = vmatmul.f32.vlgmr.msrb.gmra.mxu1 %v513_v23 }
 0x1e7   :  { %2414 = vmatpush.msrb.mxu0 %v3437_v62  ;;  %2437 = vmatpush.msrb.mxu1 %v3395_v53 }
 0x1e9   :  { %v506_v43 = vpop.permute.xlu1 %505  ;;  %2415 = vmatpush.msrb.mxu0 %v3450_v0  ;;  %2438 = vmatpush.msrb.mxu1 %v3402_v54  ;;  %v3092_v54 = vmov 16   ;;  %v3093_v0 = vmov 17  }
 0x1ea   :  { %v3942_v50 = vsub.f32 %v3791_v37, %v506_v43  ;;  %v3945_v41 = vsub.f32 %v3678_v26, %v506_v43  ;;  %2905 = vset.pattern.permute.xlu0 %v3092_v54  ;;  %2907 = vset.pattern.permute.xlu2 %v3093_v0 }
 0x1eb   :  { %2416 = vmatpush.msrb.mxu0 %v3469_v4  ;;  %2439 = vmatpush.msrb.mxu1 %v3409_v55  ;;  %v5762_v55 = vmov 15   ;;  %v2978_v4 = vld [vmem:[%s5625_s9] sm:$0xff] }
 0x1ec   :  { %v514_v62 = vmul.f32 %v3942_v50, %v3942_v50  ;;  %v515_v53 = vmul.f32 %v3945_v41, %v3945_v41  ;;  %1576 = vperm.xlu0 %2905, %v3367_v46   ;;  %1625 = vperm.xlu2 %2907, %v3367_v46  }
 0x1ed   :  { %2417 = vmatpush.msrb.mxu0 %v3487_v9  ;;  %2440 = vmatpush.msrb.mxu1 %v3416_v57  ;;  %v5763_v57 = vmov 18  }
 0x1ee   :  { %535 = vmatmul.f32.gmra.mxu0 %v514_v62  ;;  %558 = vmatmul.f32.gmra.mxu1 %v515_v53 }
 0x1ef   :  { %2418 = vmatpush.msrb.mxu0 %v3506_v13  ;;  %2441 = vmatpush.msrb.mxu1 %v3427_v60  ;;  %v3094_v60 = vmov 21   ;;  %v3095_v13 = vmov 23  }
 0x1f1   :  { %2419 = vmatpush.msrb.mxu0 %v3521_v15  ;;  %2442 = vmatpush.msrb.mxu1 %v3442_v63  ;;  %v3985_v63 = vpop.permute.xlu2 %826  ;;  %v3096_v15 = vmov 28  }
 0x1f3   :  { %2420 = vmatpush.msrb.mxu0 %v3539_v20  ;;  %2443 = vmatpush.msrb.mxu1 %v3455_v1  ;;  %v5769_v20 = vmov 29  }
 0x1f4   :  { %2910 = vset.pattern.permute.xlu0 %v5762_v55  ;;  %2909 = vset.pattern.permute.xlu2 %v5763_v57 }
 0x1f5   :  { %2421 = vmatpush.msrb.mxu0 %v3554_v25  ;;  %2444 = vmatpush.msrb.mxu1 %v3463_v2  ;;  %v5766_v2 = vmov 27   ;;  %v3097_v25 = vmov 30  }
 0x1f6   :  { %1531 = vperm.xlu0 %2910, %v3377_v48   ;;  %1674 = vperm.xlu2 %2909, %v3367_v46  }
 0x1f7   :  { %2422 = vmatpush.msrb.mxu0 %v3574_v30  ;;  %2445 = vmatpush.msrb.mxu1 %v3481_v8  ;;  %v5767_v8 = vmov 22   ;;  %v4015_v30 = vpop.permute.xlu0 %890 }
 0x1f9   :  { %2423 = vmatpush.msrb.mxu0 %v3599_v38  ;;  %2446 = vmatpush.msrb.mxu1 %v3496_v11  ;;  %v3993_v1 = vpop.permute.xlu2 %845  ;;  %v5768_v11 = vmov 25   ;;  %v5772_v38 = vmov 0  }
 0x1fa   :  { %5765 = vst [vmem:[#allocation27_spill] sm:$0xff] %v3993_v1 }
 0x1fb   :  { %2424 = vmatpush.msrb.mxu0 %v3619_v42  ;;  %2447 = vmatpush.msrb.mxu1 %v3515_v14 }
 0x1fd   :  { %2425 = vmatpush.msrb.mxu0 %v3633_v56  ;;  %2448 = vmatpush.msrb.mxu1 %v3528_v16  ;;  %v2979_v16 = vld [vmem:[%s5625_s9 + $0x8] sm:$0xff]  ;;  %s3102_s9 = smov 126  }
 0x1fe   :  { %2915 = vset.pattern.permute.xlu0 %v3094_v60  ;;  %2912 = vset.pattern.permute.xlu2 %v3092_v54 }
 0x1ff   :  { %2426 = vmatpush.msrb.mxu0 %v3647_v45  ;;  %1821 = vperm.xlu0 %2915, %v3367_v46   ;;  %v5764_v46 = vmov 20   ;;  %v4023_v42 = vpop.permute.xlu0 %939 }
 0x200   :  { %2449 = vmatpush.msrb.mxu1 %v3548_v24  ;;  %1580 = vperm.xlu2 %2912, %v3377_v48  }
 0x201   :  { %2427 = vmatpush.msrb.mxu0 %v3659_v32  ;;  %v4000_v9 = vpop.permute.xlu2 %1037 }
 0x202   :  { %2450 = vmatpush.msrb.mxu1 %v3561_v27 }
 0x203   :  { %2428 = vmatpush.msrb.mxu0 %v3676_v18 }
 0x204   :  { %2451 = vmatpush.msrb.mxu1 %v3591_v35  ;;  %v604_v35 = vld [vmem:[%s5624_s8] sm:$0xff]  ;;  %s3104_s8 = smov 125  }
 0x205   :  { %2429 = vmatpush.msrb.mxu0 %v3692_v29 }
 0x206   :  { %2452 = vmatpush.msrb.mxu1 %v3605_v39 }
 0x207   :  { %2920 = vset.pattern.permute.xlu0 %v5764_v46  ;;  %v4027_v45 = vpop.permute.xlu0 %988 }
 0x208   :  { %1776 = vperm.xlu0 %2920, %v3377_v48   ;;  %2914 = vset.pattern.permute.xlu2 %v3093_v0 }
 0x209   :  { %1629 = vperm.xlu2 %2914, %v3377_v48   ;;  %v4004_v14 = vpop.permute.xlu2 %1184 }
 0x20f   :  { %v4032_v37 = vpop.permute.xlu0 %1086 }
 0x210   :  { %2927 = vset.pattern.permute.xlu0 %v5766_v2 }
 0x211   :  { %2115 = vperm.xlu0 %2927, %v2978_v4   ;;  %2917 = vset.pattern.permute.xlu2 %v5767_v8  ;;  %v4010_v24 = vpop.permute.xlu2 %1233 }
 0x212   :  { %1870 = vperm.xlu2 %2917, %v2978_v4  }
 0x217   :  { %v4036_v23 = vpop.permute.xlu0 %1090 }
 0x219   :  { %2930 = vset.pattern.permute.xlu0 %v5768_v11  ;;  %v4013_v27 = vpop.permute.xlu2 %1139 }
 0x21a   :  { %2021 = vperm.xlu0 %2930, %v3377_v48   ;;  %2919 = vset.pattern.permute.xlu2 %v3095_v13  ;;  %v5770_v48 = vmov 26   ;;  %5771 = vst [vmem:[#allocation28_spill] sm:$0xff] %v4013_v27 }
 0x21b   :  { %1919 = vperm.xlu2 %2919, %v2978_v4  }
 0x21f   :  { %v4040_v57 = vpop.permute.xlu0 %1331 }
 0x221   :  { %v4021_v39 = vpop.permute.xlu2 %1380 }
 0x222   :  { %2935 = vset.pattern.permute.xlu0 %v3096_v15 }
 0x223   :  { %2168 = vperm.xlu0 %2935, %v2979_v16   ;;  %2922 = vset.pattern.permute.xlu2 %v3094_v60 }
 0x224   :  { %1825 = vperm.xlu2 %2922, %v2979_v16  }
 0x229   :  { %v4025_v56 = vpop.permute.xlu2 %1429 }
 0x22b   :  { %2936 = vset.pattern.permute.xlu0 %v5769_v20 }
 0x22c   :  { %2217 = vperm.xlu0 %2936, %v2979_v16   ;;  %2925 = vset.pattern.permute.xlu2 %v5770_v48 }
 0x22d   :  { %2066 = vperm.xlu2 %2925, %v2978_v4  }
 0x231   :  { %v4029_v26 = vpop.permute.xlu2 %1335 }
 0x232   :  { %5773 = vst [vmem:[#allocation29_spill] sm:$0xff] %v4029_v26 }
 0x234   :  { %2937 = vset.pattern.permute.xlu0 %v3097_v25 }
 0x235   :  { %2266 = vperm.xlu0 %2937, %v2979_v16   ;;  %2926 = vset.pattern.permute.xlu2 %v3095_v13 }
 0x236   :  { %1923 = vperm.xlu2 %2926, %v2979_v16  }
 0x239   :  { %v4034_v44 = vpop.permute.xlu2 %1384 }
 0x23a   :  { %5774 = vst [vmem:[#allocation30_spill] sm:$0xff] %v4034_v44 }
 0x23d   :  { %2938 = vset.pattern.permute.xlu0 %v5772_v38 }
 0x23e   :  { %608 = vperm.xlu0 %2938, %v604_v35   ;;  %2929 = vset.pattern.permute.xlu2 %v3096_v15  ;;  %v4044_v15 = vpop.permute.xlu0 %1286 }
 0x23f   :  { %2164 = vperm.xlu2 %2929, %v2978_v4   ;;  %5775 = vst [vmem:[#allocation31_spill] sm:$0xff] %v4044_v15 }
 0x246   :  { %831 = vperm.xlu0 %2938, %v2979_v16   ;;  %v4038_v53 = vpop.permute.xlu2 %1625 }
 0x247   :  { %2933 = vset.pattern.permute.xlu2 %v3097_v25  ;;  %v564_v25 = vld [vmem:[%s5623_s7] sm:$0xff] }
 0x248   :  { %2262 = vperm.xlu2 %2933, %v2978_v4  }
 0x250   :  { %2940 = vset.pattern.permute.xlu2 %v5772_v38  ;;  %v4042_v11 = vpop.permute.xlu2 %1674 }
 0x263   :  { %v533_v51 = vpop.f32.mrf.mxu0  ;;  %v556_v61 = vpop.f32.mrf.mxu1 }
 0x264   :  { %v557_v5 = vadd.f32 %v556_v61, %v533_v51 }
 0x266   :  { %v562_v43 = vmul.f32 0.0052083335, %v557_v5 }
 0x268   :  { %v566_v62 = vadd.f32 1e-05, %v562_v43 }
 0x26a   :  { %2946 = vrsqrt.f32 %v566_v62  ;;  %vm574_vm2 = vweird.f32 %v566_v62 }
 0x26b   :  { %v536_v54 = vpop.f32.mrf.mxu0  ;;  %v559_v0 = vpop.f32.mrf.mxu1 }
 0x26c   :  { %v560_v55 = vadd.f32 %v559_v0, %v536_v54  ;;  %v4049_v54 = vpop.permute.xlu2 %1580 }
 0x26d   :  { %5776 = vst [vmem:[#allocation32_spill] sm:$0xff] %v4049_v54 }
 0x26e   :  { %v563_v60 = vmul.f32 0.0052083335, %v560_v55  ;;  %v4051_v55 = vpop.permute.xlu0 %1576 }
 0x270   :  { %v2947_v46 = vpop.eup %2946  ;;  %v567_v2 = vadd.f32 1e-05, %v563_v60 }
 0x271   :  { %v569_v4 = vmul.f32 %v2947_v46, %v566_v62  ;;  %vm575_vm1 = vweird.f32 %v2947_v46  ;;  %v565_v62 = vld [vmem:[%s5623_s7 + $0x8] sm:$0xff]  ;;  %s5700_s7 = smov 118  }
 0x272   :  { %2948 = vrsqrt.f32 %v567_v2  ;;  %vm576_vm3 = vmor %vm574_vm2, %vm575_vm1  ;;  %vm584_vm5 = vweird.f32 %v567_v2  ;;  %vm970_vm1 = vcmask 1022976   ;;  %vm5736_vm2 = vcmask 1014784  }
 0x273   :  { %v570_v8 = vmul.f32 %v2947_v46, %v569_v4 }
 0x275   :  { %v571_v13 = vmul.f32 0.5, %v570_v8 }
 0x277   :  { %v572_v16 = vsub.f32 1.5, %v571_v13  ;;  %v4058_v13 = vpop.permute.xlu0 %1531 }
 0x278   :  { %v2949_v20 = vpop.eup %2948  ;;  %5778 = vst [vmem:[#allocation34_spill] sm:$0xff] %v4058_v13 }
 0x279   :  { %v579_v48 = vmul.f32 %v2949_v20, %v567_v2  ;;  %v573_v35 = vmul.f32 %v2947_v46, %v572_v16  ;;  %vm585_vm4 = vweird.f32 %v2949_v20 }
 0x27a   :  { %vm586_vm6 = vmor %vm584_vm5, %vm585_vm4  ;;  %vm1117_vm4 = vcmask 998400   ;;  %vm1166_vm5 = vcmask 990208  }
 0x27b   :  { %v580_v51 = vmul.f32 %v2949_v20, %v579_v48  ;;  %v577_v61 = vsel %vm576_vm3, %v2947_v46, %v573_v35  ;;  %v4056_v46 = vpop.permute.xlu2 %1629  ;;  %vm5737_vm3 = vcmask 1006592  }
 0x27c   :  { %v588_v5 = vmul.f32 %v577_v61, %v564_v25  ;;  %5777 = vst [vmem:[#allocation33_spill] sm:$0xff] %v4056_v46 }
 0x27d   :  { %v581_v43 = vmul.f32 0.5, %v580_v51 }
 0x27e   :  { %592 = vperm.xlu2 %2940, %v588_v5  }
 0x27f   :  { %v582_v0 = vsub.f32 1.5, %v581_v43  ;;  %v4062_v48 = vpop.permute.xlu0 %1821 }
 0x281   :  { %v583_v60 = vmul.f32 %v2949_v20, %v582_v0 }
 0x283   :  { %v587_v4 = vsel %vm586_vm6, %v2949_v20, %v583_v60  ;;  %v4060_v16 = vpop.permute.xlu2 %1870  ;;  %v5662_v60 = vmov 0.0   ;;  %vm1215_vm6 = vcmask 982016  }
 0x284   :  { %v589_v8 = vmul.f32 %v587_v4, %v565_v62  ;;  %788 = vst [vmem:[#allocation2 + $0x18] sm:$0xff] %v5662_v60 }
 0x285   :  { %784 = vst [vmem:[#allocation2] sm:$0xff] %v5662_v60 }
 0x286   :  { %597 = vperm.xlu2 %2940, %v589_v8   ;;  %785 = vst [vmem:[#allocation2 + $0x8] sm:$0xff] %v5662_v60 }
 0x287   :  { %v4066_v2 = vpop.permute.xlu0 %1776  ;;  %789 = vst [vmem:[#allocation2 + $0x20] sm:$0xff] %v5662_v60 }
 0x288   :  { %5779 = vst [vmem:[#allocation35_spill] sm:$0xff] %v4066_v2 }
 0x28b   :  { %v4064_v25 = vpop.permute.xlu2 %1919 }
 0x28f   :  { %v4070_v51 = vpop.permute.xlu0 %2115 }
 0x290   :  { %5781 = vst [vmem:[#allocation37_spill] sm:$0xff] %v4070_v51 }
 0x293   :  { %v4068_v35 = vpop.permute.xlu2 %1825 }
 0x294   :  { %5780 = vst [vmem:[#allocation36_spill] sm:$0xff] %v4068_v35 }
 0x297   :  { %v4074_v20 = vpop.permute.xlu0 %2021 }
 0x298   :  { %5782 = vst [vmem:[#allocation38_spill] sm:$0xff] %v4074_v20 }
 0x29b   :  { %v4072_v61 = vpop.permute.xlu2 %2066 }
 0x29f   :  { %v4078_v43 = vpop.permute.xlu0 %2168 }
 0x2a0   :  { %5784 = vst [vmem:[#allocation40_spill] sm:$0xff] %v4078_v43 }
 0x2a3   :  { %v4076_v5 = vpop.permute.xlu2 %1923 }
 0x2a4   :  { %5783 = vst [vmem:[#allocation39_spill] sm:$0xff] %v4076_v5 }
 0x2a7   :  { %v4082_v62 = vpop.permute.xlu0 %2217 }
 0x2a8   :  { %5785 = vst [vmem:[#allocation41_spill] sm:$0xff] %v4082_v62  ;;  %v4097_v62 = vstv %s5629_s13  ;;  %s5665_s13 = smov 112  }
 0x2a9   :  { %5787 = vst [vmem:[#allocation43_spill] sm:$0xff] %v4097_v62 }
 0x2ab   :  { %v4080_v0 = vpop.permute.xlu2 %2164 }
 0x2af   :  { %v4090_v8 = vpop.permute.xlu0 %2266 }
 0x2b0   :  { %5786 = vst [vmem:[#allocation42_spill] sm:$0xff] %v4090_v8 }
 0x2b3   :  { %v4088_v4 = vpop.permute.xlu2 %2262 }
 0x2b7   :  { %v609_v44 = vpop.permute.xlu0 %608 }
 0x2d8   :  { %v593_v38 = vpop.permute.xlu2 %592 }
 0x2d9   :  { %v600_v13 = vmul.f32 %v593_v38, %v3925_v47  ;;  %v601_v43 = vmul.f32 %v593_v38, %v3928_v36 }
 0x2db   :  { %v616_v15 = vadd.f32 %v609_v44, %v600_v13  ;;  %v617_v20 = vadd.f32 %v609_v44, %v601_v43  ;;  %v2980_v43 = vld [vmem:[%s5618_s2 + $0x78] sm:$0xff] }
 0x2dd   :  { %804 = vrot.lane.b32.xlu0 %v617_v20, %s3099_s29  ;;  %793 = vrot.lane.b32.xlu1 %v616_v15, %s3100_s30  ;;  %vm629_vm7 = vcmp.ge.f32.partialorder %v616_v15, 0.0  ;;  %v634_v60 = vmul.f32 %v4097_v62, %v616_v15  ;;  %vm630_vm8 = vcmp.ge.f32.partialorder %v617_v20, 0.0  ;;  %v635_v47 = vmul.f32 %v4097_v62, %v617_v20 }
 0x2df   :  { %v4101_v8 = vsel %vm629_vm7, %v616_v15, %v634_v60  ;;  %v4103_v36 = vsel %vm630_vm8, %v617_v20, %v635_v47  ;;  %v2981_v15 = vld [vmem:[%s5618_s2 + $0xf8] sm:$0xff]  ;;  %vm1264_vm7 = vcmask 973824   ;;  %vm5740_vm8 = vcmask 965632  }
 0x2e0   :  { %5788 = vst [vmem:[#allocation44_spill] sm:$0xff] %v4101_v8  ;;  %658 = vmatmul.f32.vlgmr.msra.gmra.mxu2 %v4101_v8  ;;  %681 = vmatmul.f32.vlgmr.msrb.gmra.mxu3 %v4103_v36  ;;  %v598_v38 = vpop.permute.xlu2 %597 }
 0x2e1   :  { %5789 = vst [vmem:[#allocation45_spill] sm:$0xff] %v4103_v36  ;;  %v602_v44 = vmul.f32 %v598_v38, %v3942_v50  ;;  %v603_v13 = vmul.f32 %v598_v38, %v3945_v41  ;;  %2530 = vmatpush.msra.mxu2 %v2980_v43  ;;  %2553 = vmatpush.msrb.mxu3 %v2981_v15  ;;  %v2982_v50 = vld [vmem:[%s5618_s2 + $0x70] sm:$0xff]  ;;  %v2986_v15 = vld [vmem:[%s5618_s2 + $0x60] sm:$0xff] }
 0x2e2   :  { %v2983_v41 = vld [vmem:[%s5618_s2 + $0xf0] sm:$0xff] }
 0x2e3   :  { %v618_v20 = vadd.f32 %v3776_v33, %v602_v44  ;;  %v619_v60 = vadd.f32 %v3776_v33, %v603_v13  ;;  %2531 = vmatpush.msra.mxu2 %v2982_v50  ;;  %2554 = vmatpush.msrb.mxu3 %v2983_v41  ;;  %v2984_v33 = vld [vmem:[%s5618_s2 + $0x68] sm:$0xff]  ;;  %v2987_v50 = vld [vmem:[%s5618_s2 + $0xe0] sm:$0xff]  ;;  %v2990_v41 = vld [vmem:[%s5618_s2 + $0x50] sm:$0xff] }
 0x2e4   :  { %v2985_v44 = vld [vmem:[%s5618_s2 + $0xe8] sm:$0xff] }
 0x2e5   :  { %806 = vrot.lane.b32.xlu1 %v619_v60, %s3099_s29  ;;  %795 = vrot.lane.b32.xlu2 %v618_v20, %s3100_s30  ;;  %vm631_vm9 = vcmp.ge.f32.partialorder %v618_v20, 0.0  ;;  %v636_v47 = vmul.f32 %v4097_v62, %v618_v20  ;;  %vm632_vm10 = vcmp.ge.f32.partialorder %v619_v60, 0.0  ;;  %v637_v38 = vmul.f32 %v4097_v62, %v619_v60  ;;  %s3110_s29 = smov 113   ;;  %s5686_s30 = smov 120  }
 0x2e6   :  { %2532 = vmatpush.msra.mxu2 %v2984_v33  ;;  %2555 = vmatpush.msrb.mxu3 %v2985_v44  ;;  %v2993_v33 = vld [vmem:[%s5618_s2 + $0xc8] sm:$0xff]  ;;  %v2994_v44 = vld [vmem:[%s5618_s2 + $0x40] sm:$0xff] }
 0x2e7   :  { %v4131_v13 = vsel %vm631_vm9, %v618_v20, %v636_v47  ;;  %v4133_v43 = vsel %vm632_vm10, %v619_v60, %v637_v38  ;;  %v2988_v20 = vld [vmem:[%s5618_s2 + $0x58] sm:$0xff]  ;;  %v2991_v47 = vld [vmem:[%s5618_s2 + $0xd0] sm:$0xff]  ;;  %v2992_v38 = vld [vmem:[%s5618_s2 + $0x48] sm:$0xff]  ;;  %vm5738_vm9 = vcmask 957440   ;;  %vm5739_vm10 = vcmask 949248  }
 0x2e8   :  { %5790 = vst [vmem:[#allocation46_spill] sm:$0xff] %v4131_v13  ;;  %661 = vmatmul.f32.gmra.mxu2 %v4131_v13  ;;  %684 = vmatmul.f32.gmra.mxu3 %v4133_v43  ;;  %v2989_v60 = vld [vmem:[%s5618_s2 + $0xd8] sm:$0xff] }
 0x2e9   :  { %5791 = vst [vmem:[#allocation47_spill] sm:$0xff] %v4133_v43  ;;  %2533 = vmatpush.msra.mxu2 %v2986_v15  ;;  %2556 = vmatpush.msrb.mxu3 %v2987_v50  ;;  %v2995_v15 = vld [vmem:[%s5618_s2 + $0xc0] sm:$0xff]  ;;  %v2996_v50 = vld [vmem:[%s5618_s2 + $0x38] sm:$0xff] }
 0x2eb   :  { %2534 = vmatpush.msra.mxu2 %v2988_v20  ;;  %2557 = vmatpush.msrb.mxu3 %v2989_v60  ;;  %v2997_v20 = vld [vmem:[%s5618_s2 + $0xb8] sm:$0xff]  ;;  %v2998_v60 = vld [vmem:[%s5618_s2 + $0x30] sm:$0xff] }
 0x2ed   :  { %2535 = vmatpush.msra.mxu2 %v2990_v41  ;;  %2558 = vmatpush.msrb.mxu3 %v2991_v47  ;;  %v2999_v41 = vld [vmem:[%s5618_s2 + $0xb0] sm:$0xff]  ;;  %v3000_v47 = vld [vmem:[%s5618_s2 + $0x28] sm:$0xff] }
 0x2ef   :  { %2536 = vmatpush.msra.mxu2 %v2992_v38  ;;  %2559 = vmatpush.msrb.mxu3 %v2993_v33  ;;  %v3001_v38 = vld [vmem:[%s5618_s2 + $0xa8] sm:$0xff]  ;;  %v3002_v33 = vld [vmem:[%s5618_s2 + $0x20] sm:$0xff] }
 0x2f1   :  { %2537 = vmatpush.msra.mxu2 %v2994_v44  ;;  %2560 = vmatpush.msrb.mxu3 %v2995_v15  ;;  %v3003_v44 = vld [vmem:[%s5618_s2 + $0xa0] sm:$0xff]  ;;  %v3004_v15 = vld [vmem:[%s5618_s2 + $0x18] sm:$0xff] }
 0x2f3   :  { %2538 = vmatpush.msra.mxu2 %v2996_v50  ;;  %2561 = vmatpush.msrb.mxu3 %v2997_v20  ;;  %v3005_v50 = vld [vmem:[%s5618_s2 + $0x98] sm:$0xff]  ;;  %v3006_v20 = vld [vmem:[%s5618_s2 + $0x90] sm:$0xff] }
 0x2f5   :  { %2539 = vmatpush.msra.mxu2 %v2998_v60  ;;  %2562 = vmatpush.msrb.mxu3 %v2999_v41  ;;  %v3007_v60 = vld [vmem:[%s5618_s2 + $0x88] sm:$0xff]  ;;  %v3008_v41 = vld [vmem:[%s5618_s2 + $0x80] sm:$0xff] }
 0x2f7   :  { %2540 = vmatpush.msra.mxu2 %v3000_v47  ;;  %2563 = vmatpush.msrb.mxu3 %v3001_v38 }
 0x2f9   :  { %2541 = vmatpush.msra.mxu2 %v3002_v33  ;;  %2564 = vmatpush.msrb.mxu3 %v3003_v44 }
 0x2fb   :  { %2542 = vmatpush.msra.mxu2 %v3004_v15  ;;  %2565 = vmatpush.msrb.mxu3 %v3005_v50 }
 0x2fd   :  { %2543 = vmatpush.msra.mxu2 %v3659_v32  ;;  %2566 = vmatpush.msrb.mxu3 %v3006_v20  ;;  %v5792_v32 = vmov 0.0  }
 0x2fe   :  { %787 = vst.msk [vmem:[#allocation2 + $0x10] sm:$0xff] %vm786_vm11, %v5792_v32 }
 0x2ff   :  { %2544 = vmatpush.msra.mxu2 %v3676_v18  ;;  %2567 = vmatpush.msrb.mxu3 %v3007_v60  ;;  %790 = vst.msk [vmem:[#allocation2 + $0x28] sm:$0xff] %vm786_vm11, %v5792_v32  ;;  %v4211_v18 = vpop.permute.xlu0 %831  ;;  %vm5723_vm11 = vcmask 941056  }
 0x300   :  { %5793 = vst [vmem:[#allocation48_spill] sm:$0xff] %v4211_v18 }
 0x301   :  { %2545 = vmatpush.msra.mxu2 %v3692_v29  ;;  %2568 = vmatpush.msrb.mxu3 %v3008_v41 }
 0x33f   :  { %v796_v47 = vpop.permute.xlu2 %795 }
 0x340   :  { %801 = vst.msk [vmem:[#allocation2 + $0x18] sm:$0xff] %vm799_vm12, %v796_v47 }
 0x34f   :  { %v805_v38 = vpop.permute.xlu0 %804  ;;  %v794_v33 = vpop.permute.xlu1 %793 }
 0x350   :  { %811 = vst.msk [vmem:[#allocation2 + $0x8] sm:$0xff] %vm810_vm13, %v805_v38 }
 0x351   :  { %813 = vst.msk [vmem:[#allocation2 + $0x10] sm:$0xff] %vm812_vm14, %v805_v38 }
 0x352   :  { %800 = vst.msk [vmem:[#allocation2] sm:$0xff] %vm799_vm12, %v794_v33  ;;  %vm5722_vm12 = vcmask 932864  }
 0x357   :  { %v4213_v29 = vld [vmem:[#allocation2 + $0x8] sm:$0xff]  ;;  %v807_v44 = vpop.permute.xlu1 %806 }
 0x358   :  { %v4215_v15 = vld [vmem:[#allocation2 + $0x10] sm:$0xff]  ;;  %814 = vst.msk [vmem:[#allocation2 + $0x20] sm:$0xff] %vm810_vm13, %v807_v44  ;;  %v849_v50 = vmul.f32 %v3799_v34, %v4213_v29  ;;  %v898_v32 = vmul.f32 %v4015_v30, %v4213_v29  ;;  %v1927_v62 = vmul.f32 %v4064_v25, %v4213_v29  ;;  %v1535_v43 = vmul.f32 %v3886_v52, %v4213_v29 }
 0x359   :  { %v4219_v20 = vld [vmem:[#allocation2] sm:$0xff]  ;;  %815 = vst.msk [vmem:[#allocation2 + $0x28] sm:$0xff] %vm812_vm14, %v807_v44  ;;  %v850_v60 = vmul.f32 %v3799_v34, %v4215_v15  ;;  %v1046_v38 = vmul.f32 %v4000_v9, %v4215_v15  ;;  %v1634_v36 = vmul.f32 %v4038_v53, %v4215_v15  ;;  %v2075_v18 = vmul.f32 %v4072_v61, %v4215_v15 }
 0x35a   :  { %862 = vrot.lane.b32.xlu1 %v849_v50, %s3101_s21  ;;  %v848_v41 = vmul.f32 %v3799_v34, %v4219_v20  ;;  %v897_v47 = vmul.f32 %v4015_v30, %v4219_v20  ;;  %v947_v50 = vmul.f32 %v4023_v42, %v4213_v29  ;;  %v1044_v13 = vmul.f32 %v4000_v9, %v4219_v20 }
 0x35b   :  { %864 = vrot.lane.b32.xlu2 %v850_v60, %s3101_s21  ;;  %v899_v60 = vmul.f32 %v4015_v30, %v4215_v15  ;;  %v1242_v30 = vmul.f32 %v4010_v24, %v4215_v15  ;;  %v1240_v35 = vmul.f32 %v4010_v24, %v4219_v20  ;;  %v2026_v49 = vmul.f32 %v3906_v28, %v4215_v15 }
 0x35c   :  { %860 = vrot.lane.b32.xlu0 %v848_v41, %s3101_s21  ;;  %v1094_v41 = vmul.f32 %v4032_v37, %v4213_v29  ;;  %vm5726_vm13 = vcmask 924672   ;;  %vm5725_vm14 = vcmask 916480  }
 0x362   :  { %911 = vrot.lane.b32.xlu1 %v898_v32, %s3102_s9  ;;  %v996_v32 = vmul.f32 %v4027_v45, %v4213_v29 }
 0x363   :  { %909 = vrot.lane.b32.xlu2 %v897_v47, %s3102_s9  ;;  %v659_v33 = vpop.f32.mrf.mxu2  ;;  %v682_v34 = vpop.f32.mrf.mxu3  ;;  %v946_v47 = vmul.f32 %v4023_v42, %v4219_v20 }
 0x364   :  { %1060 = vrot.lane.b32.xlu0 %v1046_v38, %s5681_s24  ;;  %v4237_v44 = vadd.f32 %v682_v34, %v659_v33  ;;  %v1095_v38 = vmul.f32 %v4032_v37, %v4215_v15  ;;  %v948_v33 = vmul.f32 %v4023_v42, %v4215_v15  ;;  %v1291_v34 = vmul.f32 %v3867_v58, %v4215_v15 }
 0x365   :  { %v1536_v42 = vmul.f32 %v3886_v52, %v4215_v15 }
 0x366   :  { %5794 = vst [vmem:[#allocation49_spill] sm:$0xff] %v4237_v44 }
 0x36a   :  { %960 = vrot.lane.b32.xlu1 %v947_v50, %s3104_s8  ;;  %v1143_v50 = vmul.f32 %v3852_v3, %v4213_v29 }
 0x36b   :  { %913 = vrot.lane.b32.xlu2 %v899_v60, %s3102_s9  ;;  %v995_v60 = vmul.f32 %v4027_v45, %v4219_v20 }
 0x36c   :  { %1107 = vrot.lane.b32.xlu0 %v1094_v41, %s3105_s6  ;;  %v1192_v41 = vmul.f32 %v4004_v14, %v4213_v29 }
 0x372   :  { %1009 = vrot.lane.b32.xlu1 %v996_v32, %s3106_s25  ;;  %v997_v32 = vmul.f32 %v4027_v45, %v4215_v15  ;;  %v1683_v45 = vmul.f32 %v4042_v11, %v4215_v15 }
 0x373   :  { %958 = vrot.lane.b32.xlu2 %v946_v47, %s3104_s8  ;;  %v1584_v47 = vmul.f32 %v4051_v55, %v4213_v29 }
 0x374   :  { %1256 = vrot.lane.b32.xlu0 %v1242_v30, %s3107_s26  ;;  %v1339_v30 = vmul.f32 %v4040_v57, %v4213_v29 }
 0x37a   :  { %1109 = vrot.lane.b32.xlu1 %v1095_v38, %s3105_s6  ;;  %v1045_v38 = vmul.f32 %v4000_v9, %v4213_v29  ;;  %v2025_v9 = vmul.f32 %v3906_v28, %v4213_v29 }
 0x37b   :  { %962 = vrot.lane.b32.xlu2 %v948_v33, %s3104_s8  ;;  %v1388_v33 = vmul.f32 %v4021_v39, %v4213_v29 }
 0x37c   :  { %1305 = vrot.lane.b32.xlu0 %v1291_v34, %s5700_s7  ;;  %v1144_v34 = vmul.f32 %v3852_v3, %v4215_v15 }
 0x382   :  { %1156 = vrot.lane.b32.xlu1 %v1143_v50, %s3109_s27  ;;  %v1731_v50 = vmul.f32 %v3896_v17, %v4213_v29 }
 0x383   :  { %1007 = vrot.lane.b32.xlu2 %v995_v60, %s3106_s25  ;;  %v1437_v60 = vmul.f32 %v4025_v56, %v4213_v29 }
 0x384   :  { %1550 = vrot.lane.b32.xlu0 %v1536_v42, %s3110_s29  ;;  %v1193_v42 = vmul.f32 %v4004_v14, %v4215_v15 }
 0x38a   :  { %1205 = vrot.lane.b32.xlu1 %v1192_v41, %s5686_s30  ;;  %v1830_v41 = vmul.f32 %v4062_v48, %v4215_v15 }
 0x38b   :  { %1011 = vrot.lane.b32.xlu2 %v997_v32, %s3106_s25  ;;  %v1486_v32 = vmul.f32 %v3881_v10, %v4213_v29 }
 0x38c   :  { %1597 = vrot.lane.b32.xlu0 %v1584_v47, %s5665_s13  ;;  %v1241_v47 = vmul.f32 %v4010_v24, %v4213_v29  ;;  %v2221_v24 = vmul.f32 %v3912_v22, %v4213_v29 }
 0x392   :  { %1352 = vrot.lane.b32.xlu1 %v1339_v30, %s5718_s28  ;;  %v1878_v30 = vmul.f32 %v4060_v16, %v4213_v29 }
 0x393   :  { %1058 = vrot.lane.b32.xlu2 %v1045_v38, %s5681_s24  ;;  %v1585_v38 = vmul.f32 %v4051_v55, %v4215_v15 }
 0x394   :  { %1697 = vrot.lane.b32.xlu0 %v1683_v45, %s3114_s3  ;;  %v1290_v45 = vmul.f32 %v3867_v58, %v4213_v29 }
 0x39a   :  { %1401 = vrot.lane.b32.xlu1 %v1388_v33, %s5667_s1  ;;  %v1977_v33 = vmul.f32 %v3904_v59, %v4215_v15 }
 0x39b   :  { %1158 = vrot.lane.b32.xlu2 %v1144_v34, %s3109_s27 }
 0x39c   :  { %1744 = vrot.lane.b32.xlu0 %v1731_v50, %s3116_s0  ;;  %v1633_v50 = vmul.f32 %v4038_v53, %v4213_v29 }
 0x3a2   :  { %1450 = vrot.lane.b32.xlu1 %v1437_v60, %s5720_s18  ;;  %v1340_v60 = vmul.f32 %v4040_v57, %v4215_v15 }
 0x3a3   :  { %1207 = vrot.lane.b32.xlu2 %v1193_v42, %s5686_s30  ;;  %v1093_v42 = vmul.f32 %v4032_v37, %v4219_v20 }
 0x3a4   :  { %1844 = vrot.lane.b32.xlu0 %v1830_v41, %s3118_s20 }
 0x3aa   :  { %1499 = vrot.lane.b32.xlu1 %v1486_v32, %s3119_s22  ;;  %v1732_v32 = vmul.f32 %v3896_v17, %v4215_v15 }
 0x3ab   :  { %1254 = vrot.lane.b32.xlu2 %v1241_v47, %s3107_s26  ;;  %v1389_v47 = vmul.f32 %v4021_v39, %v4215_v15 }
 0x3ac   :  { %1891 = vrot.lane.b32.xlu0 %v1878_v30, %s5673_s17  ;;  %v2074_v30 = vmul.f32 %v4072_v61, %v4213_v29 }
 0x3b2   :  { %1599 = vrot.lane.b32.xlu1 %v1585_v38, %s5665_s13  ;;  %v1780_v38 = vmul.f32 %v3898_v19, %v4213_v29  ;;  %s3124_s13 = smov 108  }
 0x3b3   :  { %1303 = vrot.lane.b32.xlu2 %v1290_v45, %s5700_s7  ;;  %v1438_v45 = vmul.f32 %v4025_v56, %v4215_v15 }
 0x3b4   :  { %1991 = vrot.lane.b32.xlu0 %v1977_v33, %s3121_s23  ;;  %v2124_v33 = vmul.f32 %v4070_v51, %v4215_v15 }
 0x3b5   :  { %v4329_v34 = vpop.permute.xlu2 %864 }
 0x3ba   :  { %1646 = vrot.lane.b32.xlu1 %v1633_v50, %s3122_s4 }
 0x3bb   :  { %1354 = vrot.lane.b32.xlu2 %v1340_v60, %s5718_s28 }
 0x3bc   :  { %1105 = vrot.lane.b32.xlu0 %v1093_v42, %s3105_s6 }
 0x3bd   :  { %v4340_v41 = vpop.permute.xlu2 %909 }
 0x3be   :  { %5795 = vst [vmem:[#allocation50_spill] sm:$0xff] %v4340_v41  ;;  %v1191_v41 = vmul.f32 %v4004_v14, %v4219_v20  ;;  %v4458_v14 = vld [vmem:[#allocation2 + $0x18] sm:$0xff] }
 0x3bf   :  { %5800 = vst [vmem:[#allocation55_spill] sm:$0xff] %v4458_v14 }
 0x3c2   :  { %1746 = vrot.lane.b32.xlu1 %v1732_v32, %s3116_s0  ;;  %v1879_v32 = vmul.f32 %v4060_v16, %v4215_v15 }
 0x3c3   :  { %1403 = vrot.lane.b32.xlu2 %v1389_v47, %s5667_s1  ;;  %s3125_s1 = smov 101   ;;  %v1487_v47 = vmul.f32 %v3881_v10, %v4215_v15 }
 0x3c4   :  { %2087 = vrot.lane.b32.xlu0 %v2074_v30, %s5684_s5  ;;  %v1436_v30 = vmul.f32 %v4025_v56, %v4219_v20  ;;  %v1632_v56 = vmul.f32 %v4038_v53, %v4219_v20  ;;  %v1682_v53 = vmul.f32 %v4042_v11, %v4213_v29 }
 0x3c5   :  { %v4351_v37 = vpop.permute.xlu2 %913 }
 0x3ca   :  { %1793 = vrot.lane.b32.xlu1 %v1780_v38, %s3124_s13 }
 0x3cb   :  { %1452 = vrot.lane.b32.xlu2 %v1438_v45, %s5720_s18 }
 0x3cc   :  { %2138 = vrot.lane.b32.xlu0 %v2124_v33, %s3125_s1  ;;  %v4362_v50 = vpop.permute.xlu1 %862 }
 0x3cd   :  { %v4364_v60 = vpop.permute.xlu2 %958 }
 0x3ce   :  { %5796 = vst [vmem:[#allocation51_spill] sm:$0xff] %v4364_v60  ;;  %v4366_v42 = vpop.permute.xlu0 %860 }
 0x3cf   :  { %5797 = vst [vmem:[#allocation52_spill] sm:$0xff] %v4366_v42  ;;  %v2172_v42 = vmul.f32 %v4080_v0, %v4213_v29 }
 0x3d2   :  { %1893 = vrot.lane.b32.xlu1 %v1879_v32, %s5673_s17  ;;  %s3126_s17 = smov 105  }
 0x3d3   :  { %1501 = vrot.lane.b32.xlu2 %v1487_v47, %s3119_s22 }
 0x3d4   :  { %1448 = vrot.lane.b32.xlu0 %v1436_v30, %s5720_s18  ;;  %v4377_v38 = vpop.permute.xlu1 %911 }
 0x3d5   :  { %v4379_v45 = vpop.permute.xlu2 %962 }
 0x3d6   :  { %v4381_v33 = vpop.permute.xlu0 %1060 }
 0x3da   :  { %1940 = vrot.lane.b32.xlu1 %v1927_v62, %s3126_s17  ;;  %v1779_v62 = vmul.f32 %v3898_v19, %v4219_v20 }
 0x3db   :  { %1548 = vrot.lane.b32.xlu2 %v1535_v43, %s3110_s29 }
 0x3dc   :  { %1644 = vrot.lane.b32.xlu0 %v1632_v56, %s3122_s4  ;;  %v4392_v32 = vpop.permute.xlu1 %960 }
 0x3dd   :  { %v4394_v47 = vpop.permute.xlu2 %1007 }
 0x3de   :  { %5798 = vst [vmem:[#allocation53_spill] sm:$0xff] %v4394_v47  ;;  %v4396_v30 = vpop.permute.xlu0 %1107  ;;  %v1781_v47 = vmul.f32 %v3898_v19, %v4215_v15  ;;  %v1829_v19 = vmul.f32 %v4062_v48, %v4213_v29 }
 0x3e2   :  { %1056 = vrot.lane.b32.xlu1 %v1044_v13, %s5681_s24  ;;  %s3127_s24 = smov 103  }
 0x3e3   :  { %1648 = vrot.lane.b32.xlu2 %v1634_v36, %s3122_s4  ;;  %v1926_v36 = vmul.f32 %v4064_v25, %v4219_v20 }
 0x3e4   :  { %1791 = vrot.lane.b32.xlu0 %v1779_v62, %s3124_s13  ;;  %v4407_v43 = vpop.permute.xlu1 %1009 }
 0x3e5   :  { %v4409_v56 = vpop.permute.xlu2 %1011 }
 0x3e6   :  { %v4411_v8 = vpop.permute.xlu0 %1256 }
 0x3ea   :  { %2038 = vrot.lane.b32.xlu1 %v2025_v9, %s3127_s24  ;;  %v2073_v9 = vmul.f32 %v4072_v61, %v4219_v20  ;;  %v2220_v61 = vmul.f32 %v3912_v22, %v4219_v20 }
 0x3eb   :  { %1695 = vrot.lane.b32.xlu2 %v1682_v53, %s3114_s3 }
 0x3ec   :  { %1938 = vrot.lane.b32.xlu0 %v1926_v36, %s3126_s17  ;;  %v4422_v13 = vpop.permute.xlu1 %1109 }
 0x3ed   :  { %v4424_v62 = vpop.permute.xlu2 %1058 }
 0x3ee   :  { %v4426_v44 = vpop.permute.xlu0 %1305 }
 0x3f2   :  { %2089 = vrot.lane.b32.xlu1 %v2075_v18, %s5684_s5 }
 0x3f3   :  { %1795 = vrot.lane.b32.xlu2 %v1781_v47, %s3124_s13 }
 0x3f4   :  { %2085 = vrot.lane.b32.xlu0 %v2073_v9, %s5684_s5  ;;  %v4437_v53 = vpop.permute.xlu1 %1156  ;;  %s5712_s5 = smov 99  }
 0x3f5   :  { %v4439_v36 = vpop.permute.xlu2 %1158 }
 0x3f6   :  { %v4441_v60 = vpop.permute.xlu0 %1550 }
 0x3fa   :  { %1203 = vrot.lane.b32.xlu1 %v1191_v41, %s5686_s30  ;;  %v1928_v41 = vmul.f32 %v4064_v25, %v4215_v15  ;;  %s3129_s30 = smov 100   ;;  %v1976_v25 = vmul.f32 %v3904_v59, %v4213_v29 }
 0x3fb   :  { %1842 = vrot.lane.b32.xlu2 %v1829_v19, %s3118_s20  ;;  %v851_v19 = vmul.f32 %v3993_v1, %v4458_v14 }
 0x3fc   :  { %2232 = vrot.lane.b32.xlu0 %v2220_v61, %s5712_s5  ;;  %v4452_v18 = vpop.permute.xlu1 %1205 }
 0x3fd   :  { %v4454_v47 = vpop.permute.xlu2 %1207 }
 0x3fe   :  { %v4456_v9 = vpop.permute.xlu0 %1597 }
 0x3ff   :  { %5799 = vst [vmem:[#allocation54_spill] sm:$0xff] %v4456_v9  ;;  %v1142_v9 = vmul.f32 %v3852_v3, %v4219_v20  ;;  %v2270_v3 = vmul.f32 %v4088_v4, %v4213_v29 }
 0x402   :  { %2185 = vrot.lane.b32.xlu1 %v2172_v42, %s3129_s30  ;;  %v900_v42 = vmul.f32 %v3821_v40, %v4458_v14  ;;  %v1289_v40 = vmul.f32 %v3867_v58, %v4219_v20 }
 0x403   :  { %1942 = vrot.lane.b32.xlu2 %v1928_v41, %s3126_s17 }
 0x404   :  { %866 = vrot.lane.b32.xlu0 %v851_v19, %s3101_s21  ;;  %v4469_v61 = vpop.permute.xlu1 %1352 }
 0x405   :  { %v4471_v7 = vpop.permute.xlu2 %1254 }
 0x406   :  { %v4473_v5 = vpop.permute.xlu0 %1697 }
 0x40a   :  { %1252 = vrot.lane.b32.xlu1 %v1240_v35, %s3107_s26  ;;  %v949_v35 = vmul.f32 %v3835_v21, %v4458_v14 }
 0x40b   :  { %1989 = vrot.lane.b32.xlu2 %v1976_v25, %s3121_s23 }
 0x40c   :  { %915 = vrot.lane.b32.xlu0 %v900_v42, %s3102_s9  ;;  %v4484_v41 = vpop.permute.xlu1 %1401 }
 0x40d   :  { %v4486_v19 = vpop.permute.xlu2 %1303 }
 0x40e   :  { %v4488_v2 = vpop.permute.xlu0 %1744 }
 0x40f   :  { %5801 = vst [vmem:[#allocation56_spill] sm:$0xff] %v4488_v2 }
 0x412   :  { %2234 = vrot.lane.b32.xlu1 %v2221_v24, %s5712_s5  ;;  %v998_v24 = vmul.f32 %v3843_v12, %v4458_v14 }
 0x413   :  { %2040 = vrot.lane.b32.xlu2 %v2026_v49, %s3127_s24 }
 0x414   :  { %964 = vrot.lane.b32.xlu0 %v949_v35, %s3104_s8  ;;  %v4499_v25 = vpop.permute.xlu1 %1450 }
 0x415   :  { %v4501_v42 = vpop.permute.xlu2 %1354 }
 0x416   :  { %v4503_v2 = vpop.permute.xlu0 %1844 }
 0x417   :  { %5802 = vst [vmem:[#allocation57_spill] sm:$0xff] %v4503_v2  ;;  %v4520_v2 = vld [vmem:[#allocation2 + $0x28] sm:$0xff] }
 0x418   :  { %v1000_v58 = vmul.f32 %v3843_v12, %v4520_v2  ;;  %v2173_v12 = vmul.f32 %v4080_v0, %v4215_v15 }
 0x41a   :  { %1301 = vrot.lane.b32.xlu1 %v1289_v40, %s5700_s7  ;;  %v2123_v40 = vmul.f32 %v4070_v51, %v4213_v29  ;;  %s3130_s7 = smov 98   ;;  %v836_v51 = vmul.f32 %v3985_v63, %v4215_v15 }
 0x41b   :  { %1154 = vrot.lane.b32.xlu2 %v1142_v9, %s3109_s27 }
 0x41c   :  { %1013 = vrot.lane.b32.xlu0 %v998_v24, %s3106_s25  ;;  %v4514_v49 = vpop.permute.xlu1 %1499 }
 0x41d   :  { %v4516_v35 = vpop.permute.xlu2 %1403 }
 0x41e   :  { %v4518_v21 = vpop.permute.xlu0 %1891 }
 0x41f   :  { %5803 = vst [vmem:[#allocation58_spill] sm:$0xff] %v4518_v21  ;;  %v4537_v21 = vld [vmem:[#allocation2 + $0x20] sm:$0xff] }
 0x422   :  { %2283 = vrot.lane.b32.xlu1 %v2270_v3, %s3130_s7  ;;  %v1338_v3 = vmul.f32 %v4040_v57, %v4219_v20 }
 0x423   :  { %2136 = vrot.lane.b32.xlu2 %v2123_v40, %s3125_s1  ;;  %v885_v40 = vadd.f32 %v4329_v34, %v836_v51 }
 0x424   :  { %1017 = vrot.lane.b32.xlu0 %v1000_v58, %s3106_s25  ;;  %v4531_v9 = vpop.permute.xlu1 %1599  ;;  %v1097_v58 = vmul.f32 %v4036_v23, %v4537_v21 }
 0x425   :  { %v4533_v24 = vpop.permute.xlu2 %1452 }
 0x426   :  { %v4535_v14 = vpop.permute.xlu0 %1991 }
 0x427   :  { %5804 = vst [vmem:[#allocation59_spill] sm:$0xff] %v4535_v14  ;;  %v934_v14 = vadd.f32 %v4351_v37, %v885_v40  ;;  %v1147_v40 = vmul.f32 %v4013_v27, %v4520_v2 }
 0x429   :  { %v983_v57 = vadd.f32 %v4379_v45, %v934_v14 }
 0x42a   :  { %1350 = vrot.lane.b32.xlu1 %v1338_v3, %s5718_s28  ;;  %v1485_v3 = vmul.f32 %v3881_v10, %v4219_v20 }
 0x42b   :  { %2187 = vrot.lane.b32.xlu2 %v2173_v12, %s3129_s30  ;;  %v1032_v51 = vadd.f32 %v4409_v56, %v983_v57  ;;  %v2222_v12 = vmul.f32 %v3912_v22, %v4215_v15 }
 0x42c   :  { %1113 = vrot.lane.b32.xlu0 %v1097_v58, %s3105_s6  ;;  %v4552_v59 = vpop.permute.xlu1 %1646 }
 0x42d   :  { %v4554_v1 = vpop.permute.xlu2 %1501  ;;  %v1081_v58 = vadd.f32 %v4381_v33, %v1032_v51 }
 0x42e   :  { %v4557_v46 = vpop.permute.xlu0 %1105 }
 0x42f   :  { %5805 = vst [vmem:[#allocation60_spill] sm:$0xff] %v4557_v46  ;;  %v1130_v10 = vadd.f32 %v4422_v13, %v1081_v58 }
 0x431   :  { %v1179_v22 = vadd.f32 %v4439_v36, %v1130_v10 }
 0x432   :  { %1497 = vrot.lane.b32.xlu1 %v1485_v3, %s3119_s22  ;;  %v1583_v3 = vmul.f32 %v4051_v55, %v4219_v20  ;;  %v874_v55 = vsel %vm5735_vm15, %v4362_v50, %v4329_v34  ;;  %v1387_v34 = vmul.f32 %v4021_v39, %v4219_v20 }
 0x433   :  { %2236 = vrot.lane.b32.xlu2 %v2222_v12, %s5712_s5  ;;  %v2271_v12 = vmul.f32 %v4088_v4, %v4215_v15  ;;  %v1228_v51 = vadd.f32 %v4454_v47, %v1179_v22  ;;  %s5806_s5 = smov 112  }
 0x434   :  { %1164 = vrot.lane.b32.xlu0 %v1147_v40, %s3109_s27  ;;  %v4570_v14 = vpop.permute.xlu1 %1746  ;;  %v1342_v40 = vmul.f32 %v4029_v26, %v4537_v21 }
 0x435   :  { %v4572_v57 = vpop.permute.xlu2 %1548  ;;  %v1277_v15 = vadd.f32 %v4411_v8, %v1228_v51  ;;  %v972_v51 = vsel %vm970_vm1, %v4392_v32, %v4379_v45 }
 0x436   :  { %v4575_v46 = vpop.permute.xlu0 %2087 }
 0x437   :  { %v1326_v27 = vadd.f32 %v4426_v44, %v1277_v15 }
 0x439   :  { %v1375_v39 = vadd.f32 %v4501_v42, %v1326_v27  ;;  %v1877_v27 = vmul.f32 %v4060_v16, %v4219_v20  ;;  %v1119_v16 = vsel %vm1117_vm4, %v4396_v30, %v4422_v13 }
 0x43a   :  { %1595 = vrot.lane.b32.xlu1 %v1583_v3, %s5806_s5  ;;  %v835_v3 = vmul.f32 %v3985_v63, %v4213_v29  ;;  %v1441_v29 = vmul.f32 %v3890_v31, %v4520_v2 }
 0x43b   :  { %2285 = vrot.lane.b32.xlu2 %v2271_v12, %s3130_s7  ;;  %v923_v12 = vsel %vm921_vm0, %v4377_v38, %v4351_v37 }
 0x43c   :  { %1358 = vrot.lane.b32.xlu0 %v1342_v40, %s5718_s28  ;;  %v4588_v58 = vpop.permute.xlu1 %1793  ;;  %v1730_v40 = vmul.f32 %v3896_v17, %v4219_v20  ;;  %v884_v26 = vadd.f32 %v874_v55, %v835_v3  ;;  %s5807_s28 = smov 116   ;;  %v1021_v17 = vsel %vm5736_vm2, %v4407_v43, %v4409_v56  ;;  %v1424_v3 = vadd.f32 %v4516_v35, %v1375_v39 }
 0x43d   :  { %v4590_v10 = vpop.permute.xlu2 %1648 }
 0x43e   :  { %v4596_v22 = vpop.permute.xlu0 %2138  ;;  %v933_v37 = vadd.f32 %v923_v12, %v884_v26  ;;  %v1070_v26 = vsel %vm5737_vm3, %v4424_v62, %v4381_v33  ;;  %v1473_v56 = vadd.f32 %v4533_v24, %v1424_v3  ;;  %v1489_v33 = vmul.f32 %v3894_v6, %v4537_v21 }
 0x440   :  { %v982_v55 = vadd.f32 %v972_v51, %v933_v37  ;;  %v1534_v51 = vmul.f32 %v3886_v52, %v4219_v20  ;;  %v1168_v37 = vsel %vm1166_vm5, %v4437_v53, %v4439_v36  ;;  %v1266_v36 = vsel %vm1264_vm7, %v4471_v7, %v4411_v8 }
 0x442   :  { %1742 = vrot.lane.b32.xlu1 %v1730_v40, %s3116_s0  ;;  %v1031_v40 = vadd.f32 %v1021_v17, %v982_v55  ;;  %v1217_v55 = vsel %vm1215_vm6, %v4452_v18, %v4454_v47  ;;  %v1315_v47 = vsel %vm5740_vm8, %v4486_v19, %v4426_v44 }
 0x443   :  { %1399 = vrot.lane.b32.xlu2 %v1387_v34, %s5807_s28 }
 0x444   :  { %1458 = vrot.lane.b32.xlu0 %v1441_v29, %s5720_s18  ;;  %v4620_v45 = vpop.permute.xlu1 %1893  ;;  %v1080_v34 = vadd.f32 %v1070_v26, %v1031_v40  ;;  %v1522_v29 = vadd.f32 %v4554_v1, %v1473_v56  ;;  %s5808_s18 = smov 106   ;;  %v2024_v40 = vmul.f32 %v3906_v28, %v4219_v20  ;;  %v1364_v28 = vsel %vm5738_vm9, %v4469_v61, %v4501_v42 }
 0x445   :  { %v4622_v15 = vpop.permute.xlu2 %1695  ;;  %v1462_v42 = vsel %vm5723_vm11, %v4499_v25, %v4533_v24  ;;  %vm5731_vm11 = vcmask 900096  }
 0x446   :  { %v4628_v12 = vpop.permute.xlu0 %1448  ;;  %v1129_v17 = vadd.f32 %v1119_v16, %v1080_v34  ;;  %v1571_v26 = vadd.f32 %v4441_v60, %v1522_v29  ;;  %v1413_v16 = vsel %vm5739_vm10, %v4484_v41, %v4516_v35  ;;  %v1511_v35 = vsel %vm5722_vm12, %v4514_v49, %v4554_v1 }
 0x447   :  { %vm5724_vm12 = vcmask 908288  }
 0x448   :  { %v1178_v13 = vadd.f32 %v1168_v37, %v1129_v17  ;;  %v1620_v34 = vadd.f32 %v4531_v9, %v1571_v26  ;;  %v2171_v26 = vmul.f32 %v4080_v0, %v4219_v20  ;;  %v1560_v0 = vsel %vm5726_vm13, %v4572_v57, %v4441_v60  ;;  %v5811_v60 = vld [vmem:[#allocation22_spill] sm:$0xff] }
 0x449   :  { %vm5732_vm13 = vcmask 875520  }
 0x44a   :  { %1889 = vrot.lane.b32.xlu1 %v1877_v27, %s5808_s18  ;;  %v1227_v56 = vadd.f32 %v1217_v55, %v1178_v13  ;;  %v1681_v27 = vmul.f32 %v4042_v11, %v4219_v20  ;;  %v1669_v11 = vadd.f32 %v4590_v10, %v1620_v34 }
 0x44b   :  { %1546 = vrot.lane.b32.xlu2 %v1534_v51, %s3110_s29  ;;  %v1588_v51 = vmul.f32 %v4049_v54, %v4520_v2 }
 0x44c   :  { %1505 = vrot.lane.b32.xlu0 %v1489_v33, %s3119_s22  ;;  %v4647_v52 = vpop.permute.xlu1 %1940  ;;  %v1276_v8 = vadd.f32 %v1266_v36, %v1227_v56  ;;  %v1718_v55 = vadd.f32 %v4473_v5, %v1669_v11  ;;  %v1828_v36 = vmul.f32 %v4062_v48, %v4219_v20 }
 0x44d   :  { %v4649_v39 = vpop.permute.xlu2 %1795 }
 0x44e   :  { %v4655_v3 = vpop.permute.xlu0 %1644  ;;  %v1325_v29 = vadd.f32 %v1315_v47, %v1276_v8 }
 0x450   :  { %v1374_v17 = vadd.f32 %v1364_v28, %v1325_v29  ;;  %v5810_v28 = vld [vmem:[#allocation27_spill] sm:$0xff]  ;;  %v1975_v29 = vmul.f32 %v5811_v60, %v4219_v20 }
 0x451   :  { %v852_v11 = vmul.f32 %v5810_v28, %v4537_v21 }
 0x452   :  { %2036 = vrot.lane.b32.xlu1 %v2024_v40, %s3127_s24  ;;  %v1423_v13 = vadd.f32 %v1413_v16, %v1374_v17  ;;  %v5809_v40 = vld [vmem:[#allocation33_spill] sm:$0xff]  ;;  %v5812_v16 = vld [vmem:[#allocation54_spill] sm:$0xff] }
 0x453   :  { %1693 = vrot.lane.b32.xlu2 %v1681_v27, %s3114_s3  ;;  %v1636_v56 = vmul.f32 %v5809_v40, %v4537_v21  ;;  %v1767_v27 = vadd.f32 %v4570_v14, %v1718_v55  ;;  %v1609_v17 = vsel %vm5725_vm14, %v5812_v16, %v4531_v9  ;;  %v5813_v55 = vld [vmem:[#allocation57_spill] sm:$0xff]  ;;  %vm5729_vm14 = vcmask 883712  }
 0x454   :  { %1605 = vrot.lane.b32.xlu0 %v1588_v51, %s5806_s5  ;;  %v4677_v44 = vpop.permute.xlu1 %1056  ;;  %v1472_v24 = vadd.f32 %v1462_v42, %v1423_v13  ;;  %v1658_v42 = vsel %vm5724_vm12, %v4552_v59, %v4590_v10  ;;  %v5814_v13 = vld [vmem:[#allocation21_spill] sm:$0xff]  ;;  %vm5730_vm12 = vcmask 891904  }
 0x455   :  { %v4679_v33 = vpop.permute.xlu2 %1842  ;;  %v1816_v34 = vadd.f32 %v4649_v39, %v1767_v27 }
 0x456   :  { %v4684_v37 = vpop.permute.xlu0 %1791  ;;  %v1521_v47 = vadd.f32 %v1511_v35, %v1472_v24 }
 0x458   :  { %v1570_v8 = vadd.f32 %v1560_v0, %v1521_v47 }
 0x45a   :  { %2183 = vrot.lane.b32.xlu1 %v2171_v26, %s3129_s30  ;;  %v1865_v26 = vadd.f32 %v5813_v55, %v1816_v34  ;;  %v1619_v35 = vadd.f32 %v1609_v17, %v1570_v8  ;;  %v5815_v8 = vld [vmem:[#allocation10_spill] sm:$0xff] }
 0x45b   :  { %1840 = vrot.lane.b32.xlu2 %v1828_v36, %s3118_s20  ;;  %v1735_v36 = vmul.f32 %v5814_v13, %v4520_v2 }
 0x45c   :  { %1652 = vrot.lane.b32.xlu0 %v1636_v56, %s3122_s4  ;;  %v4706_v48 = vpop.permute.xlu1 %2038  ;;  %v1707_v56 = vsel %vm5731_vm11, %v4622_v15, %v4473_v5  ;;  %v1668_v24 = vadd.f32 %v1658_v42, %v1619_v35  ;;  %v1914_v10 = vadd.f32 %v4620_v45, %v1865_v26  ;;  %v5816_v5 = vld [vmem:[#allocation37_spill] sm:$0xff]  ;;  %v1805_v42 = vsel %vm5729_vm14, %v4588_v58, %v4649_v39  ;;  %v5818_v26 = vld [vmem:[#allocation35_spill] sm:$0xff] }
 0x45d   :  { %v1943_v1 = vpop.permute.xlu2 %1942  ;;  %v2122_v60 = vmul.f32 %v5816_v5, %v4219_v20  ;;  %vm1901_vm14 = vcmask 867328   ;;  %vm5734_vm11 = vcmask 850944  }
 0x45e   :  { %v4709_v51 = vpop.permute.xlu0 %1938  ;;  %v1717_v47 = vadd.f32 %v1707_v56, %v1668_v24  ;;  %v1963_v34 = vadd.f32 %v1943_v1, %v1914_v10  ;;  %v1854_v56 = vsel %vm5732_vm13, %v4679_v33, %v5813_v55  ;;  %v5819_v24 = vld [vmem:[#allocation59_spill] sm:$0xff]  ;;  %v2269_v55 = vmul.f32 %v4088_v4, %v4219_v20 }
 0x45f   :  { %vm2048_vm13 = vcmask 842752  }
 0x462   :  { %868 = vrot.lane.b32.xlu1 %v852_v11, %s3101_s21  ;;  %v901_v11 = vmul.f32 %v5815_v8, %v4537_v21 }
 0x463   :  { %1987 = vrot.lane.b32.xlu2 %v1975_v29, %s3121_s23  ;;  %v5817_v29 = vld [vmem:[#allocation56_spill] sm:$0xff] }
 0x464   :  { %1752 = vrot.lane.b32.xlu0 %v1735_v36, %s3116_s0  ;;  %v2090_v9 = vpop.permute.xlu1 %2089  ;;  %v1756_v17 = vsel %vm5730_vm12, %v5817_v29, %v4570_v14  ;;  %v1783_v36 = vmul.f32 %v5818_v26, %v4537_v21  ;;  %v2012_v14 = vadd.f32 %v5819_v24, %v1963_v34  ;;  %vm5733_vm12 = vcmask 859136   ;;  %v5821_v34 = vld [vmem:[#allocation58_spill] sm:$0xff] }
 0x465   :  { %v4730_v0 = vpop.permute.xlu2 %1989  ;;  %v1766_v35 = vadd.f32 %v1756_v17, %v1717_v47 }
 0x466   :  { %v4733_v27 = vpop.permute.xlu0 %2085  ;;  %v2001_v4 = vsel %vm5734_vm11, %v4730_v0, %v5819_v24  ;;  %v853_v24 = vmul.f32 %v5810_v28, %v4520_v2  ;;  %vm2146_vm11 = vcmask 826368  }
 0x467   :  { %v1815_v5 = vadd.f32 %v1805_v42, %v1766_v35  ;;  %v1952_v42 = vsel %vm5733_vm12, %v4647_v52, %v1943_v1  ;;  %v5822_v35 = vld [vmem:[#allocation36_spill] sm:$0xff]  ;;  %vm2097_vm12 = vcmask 834560  }
 0x46a   :  { %917 = vrot.lane.b32.xlu1 %v901_v11, %s3102_s9  ;;  %v1864_v11 = vadd.f32 %v1854_v56, %v1815_v5 }
 0x46b   :  { %2134 = vrot.lane.b32.xlu2 %v2122_v60, %s3125_s1  ;;  %v5820_v60 = vld [vmem:[#allocation11_spill] sm:$0xff] }
 0x46c   :  { %1799 = vrot.lane.b32.xlu0 %v1783_v36, %s3124_s13  ;;  %v4754_v10 = vpop.permute.xlu1 %1203  ;;  %v950_v17 = vmul.f32 %v5820_v60, %v4537_v21  ;;  %v1903_v36 = vsel %vm1901_vm14, %v5821_v34, %v4620_v45 }
 0x46d   :  { %v2041_v39 = vpop.permute.xlu2 %2040  ;;  %v1913_v56 = vadd.f32 %v1903_v36, %v1864_v11  ;;  %v5823_v11 = vld [vmem:[#allocation12_spill] sm:$0xff] }
 0x46e   :  { %v2061_v13 = vadd.f32 %v2041_v39, %v2012_v14  ;;  %v4756_v54 = vpop.permute.xlu0 %2232  ;;  %v1833_v14 = vmul.f32 %v5822_v35, %v4520_v2  ;;  %v2050_v35 = vsel %vm2048_vm13, %v4706_v48, %v2041_v39  ;;  %v999_v36 = vmul.f32 %v5823_v11, %v4537_v21 }
 0x46f   :  { %v1962_v1 = vadd.f32 %v1952_v42, %v1913_v56  ;;  %v2099_v39 = vsel %vm2097_vm12, %v4575_v46, %v2090_v9 }
 0x470   :  { %v2110_v47 = vadd.f32 %v2090_v9, %v2061_v13  ;;  %v5826_v9 = vld [vmem:[#allocation24_spill] sm:$0xff] }
 0x472   :  { %966 = vrot.lane.b32.xlu1 %v950_v17, %s3104_s8  ;;  %v2159_v13 = vadd.f32 %v4596_v22, %v2110_v47  ;;  %v2011_v47 = vadd.f32 %v2001_v4, %v1962_v1 }
 0x473   :  { %2281 = vrot.lane.b32.xlu2 %v2269_v55, %s3130_s7 }
 0x474   :  { %1850 = vrot.lane.b32.xlu0 %v1833_v14, %s3118_s20  ;;  %v4776_v45 = vpop.permute.xlu1 %2185  ;;  %v2060_v55 = vadd.f32 %v2050_v35, %v2011_v47  ;;  %v5824_v14 = vld [vmem:[#allocation39_spill] sm:$0xff]  ;;  %v5825_v47 = vld [vmem:[#allocation13_spill] sm:$0xff] }
 0x475   :  { %v1155_v5 = vpop.permute.xlu2 %1154  ;;  %v1930_v26 = vmul.f32 %v5824_v14, %v4537_v21  ;;  %v1049_v11 = vmul.f32 %v5825_v47, %v4520_v2  ;;  %v5831_v14 = vld [vmem:[#allocation51_spill] sm:$0xff] }
 0x476   :  { %v4780_v17 = vpop.permute.xlu0 %866  ;;  %v2109_v35 = vadd.f32 %v2099_v39, %v2060_v55  ;;  %v5828_v55 = vld [vmem:[#allocation52_spill] sm:$0xff] }
 0x47a   :  { %1015 = vrot.lane.b32.xlu1 %v999_v36, %s3106_s25  ;;  %v902_v36 = vmul.f32 %v5815_v8, %v4520_v2  ;;  %v5829_v8 = vld [vmem:[#allocation50_spill] sm:$0xff]  ;;  %s5847_s25 = smov 117  }
 0x47b   :  { %870 = vrot.lane.b32.xlu2 %v853_v24, %s3101_s21  ;;  %s5827_s21 = smov 123   ;;  %v873_v24 = vsel %vm5735_vm15, %v5828_v55, %v4362_v50  ;;  %v971_v50 = vsel %vm970_vm1, %v5831_v14, %v4392_v32  ;;  %vm2195_vm15 = vcmask 818176   ;;  %v1069_v32 = vsel %vm5737_vm3, %v4677_v44, %v4424_v62  ;;  %v5834_v62 = vld [vmem:[#allocation14_spill] sm:$0xff] }
 0x47c   :  { %1946 = vrot.lane.b32.xlu0 %v1930_v26, %s3126_s17  ;;  %v1253_v42 = vpop.permute.xlu1 %1252  ;;  %v1980_v26 = vmul.f32 %v5826_v9, %v4520_v2  ;;  %v1195_v44 = vmul.f32 %v5834_v62, %v4537_v21  ;;  %vm2293_vm3 = vcmask 801792  }
 0x47d   :  { %v4793_v56 = vpop.permute.xlu2 %2136 }
 0x47e   :  { %v2148_v28 = vsel %vm2146_vm11, %v4793_v56, %v4596_v22  ;;  %v4798_v4 = vpop.permute.xlu0 %915  ;;  %v834_v22 = vmul.f32 %v3985_v63, %v4219_v20  ;;  %v1098_v63 = vmul.f32 %v4036_v23, %v4520_v2  ;;  %v5832_v20 = vld [vmem:[#allocation53_spill] sm:$0xff] }
 0x47f   :  { %v2158_v1 = vadd.f32 %v2148_v28, %v2109_v35  ;;  %v922_v35 = vsel %vm921_vm0, %v5829_v8, %v4377_v38  ;;  %v951_v38 = vmul.f32 %v5820_v60, %v4520_v2 }
 0x480   :  { %v883_v9 = vadd.f32 %v873_v24, %v834_v22  ;;  %v5833_v22 = vld [vmem:[#allocation55_spill] sm:$0xff] }
 0x481   :  { %v1047_v8 = vmul.f32 %v5825_v47, %v5833_v22 }
 0x482   :  { %1066 = vrot.lane.b32.xlu1 %v1049_v11, %s5827_s21 }
 0x483   :  { %919 = vrot.lane.b32.xlu2 %v902_v36, %s3102_s9  ;;  %v932_v36 = vadd.f32 %v922_v35, %v883_v9  ;;  %s5837_s9 = smov 120  }
 0x484   :  { %1997 = vrot.lane.b32.xlu0 %v1980_v26, %s3121_s23  ;;  %v4814_v39 = vpop.permute.xlu1 %2234  ;;  %v1020_v26 = vsel %vm5736_vm2, %v5832_v20, %v4407_v43  ;;  %vm2244_vm2 = vcmask 809984  }
 0x485   :  { %v2188_v28 = vpop.permute.xlu2 %2187  ;;  %v981_v55 = vadd.f32 %v971_v50, %v932_v36 }
 0x486   :  { %v4819_v11 = vpop.permute.xlu0 %964  ;;  %v2197_v24 = vsel %vm2195_vm15, %v4776_v45, %v2188_v28  ;;  %v2208_v43 = vadd.f32 %v2188_v28, %v2159_v13  ;;  %v1048_v28 = vmul.f32 %v5825_v47, %v4537_v21  ;;  %v1216_v47 = vsel %vm1215_vm6, %v4754_v10, %v4452_v18 }
 0x487   :  { %5830 = vst [vmem:[#allocation33_spill] sm:$0xff] %v4819_v11  ;;  %v1030_v14 = vadd.f32 %v1020_v26, %v981_v55  ;;  %v2207_v9 = vadd.f32 %v2197_v24, %v2158_v1  ;;  %v5835_v26 = vld [vmem:[#allocation60_spill] sm:$0xff]  ;;  %v1167_v1 = vsel %vm1166_vm5, %v1155_v5, %v4437_v53  ;;  %v5836_v55 = vld [vmem:[#allocation38_spill] sm:$0xff] }
 0x488   :  { %v1118_v13 = vsel %vm1117_vm4, %v5835_v26, %v4396_v30  ;;  %v2029_v24 = vmul.f32 %v5836_v55, %v4520_v2 }
 0x489   :  { %v1079_v50 = vadd.f32 %v1069_v32, %v1030_v14 }
 0x48a   :  { %1115 = vrot.lane.b32.xlu1 %v1098_v63, %s3105_s6 }
 0x48b   :  { %968 = vrot.lane.b32.xlu2 %v951_v38, %s3104_s8  ;;  %v1128_v38 = vadd.f32 %v1118_v13, %v1079_v50  ;;  %v5838_v50 = vld [vmem:[#allocation15_spill] sm:$0xff]  ;;  %s5842_s8 = smov 118  }
 0x48c   :  { %1062 = vrot.lane.b32.xlu0 %v1047_v8, %s5827_s21  ;;  %v1302_v60 = vpop.permute.xlu1 %1301 }
 0x48d   :  { %v2237_v35 = vpop.permute.xlu2 %2236  ;;  %v1177_v8 = vadd.f32 %v1167_v1, %v1128_v38  ;;  %v1096_v1 = vmul.f32 %v4036_v23, %v5833_v22  ;;  %v1196_v38 = vmul.f32 %v5834_v62, %v4520_v2 }
 0x48e   :  { %v2246_v36 = vsel %vm2244_vm2, %v4814_v39, %v2237_v35  ;;  %v2257_v20 = vadd.f32 %v2237_v35, %v2208_v43  ;;  %v4843_v63 = vpop.permute.xlu0 %1013  ;;  %v1265_v43 = vsel %vm1264_vm7, %v1253_v42, %v4471_v7 }
 0x48f   :  { %v2256_v11 = vadd.f32 %v2246_v36, %v2207_v9  ;;  %v1226_v35 = vadd.f32 %v1216_v47, %v1177_v8  ;;  %v1244_v36 = vmul.f32 %v5838_v50, %v4537_v21  ;;  %v5841_v8 = vld [vmem:[#allocation25_spill] sm:$0xff] }
 0x491   :  { %v1275_v13 = vadd.f32 %v1265_v43, %v1226_v35 }
 0x492   :  { %1211 = vrot.lane.b32.xlu1 %v1195_v44, %s5837_s9  ;;  %v5839_v44 = vld [vmem:[#allocation28_spill] sm:$0xff] }
 0x493   :  { %1064 = vrot.lane.b32.xlu2 %v1048_v28, %s5827_s21  ;;  %v1146_v26 = vmul.f32 %v5839_v44, %v4537_v21 }
 0x494   :  { %2046 = vrot.lane.b32.xlu0 %v2029_v24, %s3127_s24  ;;  %v4859_v32 = vpop.permute.xlu1 %2283 }
 0x495   :  { %v2286_v30 = vpop.permute.xlu2 %2285 }
 0x496   :  { %v4861_v14 = vadd.f32 %v2286_v30, %v2257_v20  ;;  %v4863_v53 = vpop.permute.xlu0 %1017  ;;  %v2295_v5 = vsel %vm2293_vm3, %v4859_v32, %v2286_v30  ;;  %v1314_v20 = vsel %vm5740_vm8, %v1302_v60, %v4486_v19  ;;  %v5840_v60 = vld [vmem:[#allocation31_spill] sm:$0xff]  ;;  %v2078_v30 = vmul.f32 %v5841_v8, %v4520_v2 }
 0x497   :  { %v4872_v9 = vadd.f32 %v2295_v5, %v2256_v11  ;;  %v1324_v7 = vadd.f32 %v1314_v20, %v1275_v13  ;;  %v1293_v28 = vmul.f32 %v5840_v60, %v4537_v21  ;;  %v5846_v20 = vld [vmem:[#allocation29_spill] sm:$0xff]  ;;  %v1245_v13 = vmul.f32 %v5838_v50, %v4520_v2 }
 0x498   :  { %vm5850_vm8 = vcmask 908288  }
 0x49a   :  { %1260 = vrot.lane.b32.xlu1 %v1244_v36, %s3107_s26 }
 0x49b   :  { %1162 = vrot.lane.b32.xlu2 %v1146_v26, %s3109_s27  ;;  %v1343_v26 = vmul.f32 %v5846_v20, %v4520_v2 }
 0x49c   :  { %1111 = vrot.lane.b32.xlu0 %v1096_v1, %s3105_s6  ;;  %v1351_v18 = vpop.permute.xlu1 %1350  ;;  %s5843_s6 = smov 102   ;;  %v1145_v1 = vmul.f32 %v5839_v44, %v5833_v22  ;;  %v1657_v44 = vsel %vm5850_vm8, %v4655_v3, %v4552_v59  ;;  %vm5854_vm8 = vcmask 891904  }
 0x49d   :  { %v1400_v10 = vpop.permute.xlu2 %1399  ;;  %v1363_v42 = vsel %vm5738_vm9, %v1351_v18, %v4469_v61  ;;  %vm5844_vm9 = vcmask 941056  }
 0x49e   :  { %v4887_v19 = vpop.permute.xlu0 %1113  ;;  %v1373_v11 = vadd.f32 %v1363_v42, %v1324_v7  ;;  %v1412_v23 = vsel %vm5739_vm10, %v1400_v10, %v4484_v41  ;;  %v1461_v5 = vsel %vm5844_vm9, %v4628_v12, %v4499_v25  ;;  %vm5845_vm10 = vcmask 932864  }
 0x49f   :  { %vm5848_vm9 = vcmask 924672  }
 0x4a0   :  { %v1422_v24 = vadd.f32 %v1412_v23, %v1373_v11  ;;  %v1294_v23 = vmul.f32 %v5840_v60, %v4520_v2 }
 0x4a2   :  { %1309 = vrot.lane.b32.xlu1 %v1293_v28, %s5842_s8  ;;  %v1471_v35 = vadd.f32 %v1461_v5, %v1422_v24 }
 0x4a3   :  { %1213 = vrot.lane.b32.xlu2 %v1196_v38, %s5837_s9  ;;  %v5852_v38 = vld [vmem:[#allocation26_spill] sm:$0xff] }
 0x4a4   :  { %2095 = vrot.lane.b32.xlu0 %v2078_v30, %s5843_s6  ;;  %v1498_v61 = vpop.permute.xlu1 %1497  ;;  %v2127_v24 = vmul.f32 %v5852_v38, %v4520_v2 }
 0x4a5   :  { %v1547_v47 = vpop.permute.xlu2 %1546  ;;  %v1510_v41 = vsel %vm5845_vm10, %v1498_v61, %v4514_v49  ;;  %vm5849_vm10 = vcmask 916480  }
 0x4a6   :  { %v4905_v43 = vpop.permute.xlu0 %1164  ;;  %v1520_v36 = vadd.f32 %v1510_v41, %v1471_v35  ;;  %v1559_v25 = vsel %vm5848_vm9, %v1547_v47, %v4572_v57  ;;  %v5851_v57 = vld [vmem:[#allocation30_spill] sm:$0xff]  ;;  %vm5853_vm9 = vcmask 900096  }
 0x4a7   :  { %v1391_v28 = vmul.f32 %v5851_v57, %v4537_v21 }
 0x4a8   :  { %v1569_v49 = vadd.f32 %v1559_v25, %v1520_v36  ;;  %v1392_v36 = vmul.f32 %v5851_v57, %v4520_v2 }
 0x4aa   :  { %1360 = vrot.lane.b32.xlu1 %v1343_v26, %s5847_s25  ;;  %v5856_v26 = vld [vmem:[#allocation40_spill] sm:$0xff] }
 0x4ab   :  { %1262 = vrot.lane.b32.xlu2 %v1245_v13, %s3107_s26  ;;  %v2175_v13 = vmul.f32 %v5856_v26, %v4537_v21 }
 0x4ac   :  { %1160 = vrot.lane.b32.xlu0 %v1145_v1, %s3109_s27  ;;  %v1596_v12 = vpop.permute.xlu1 %1595  ;;  %s5861_s27 = smov 115  }
 0x4ad   :  { %v1694_v7 = vpop.permute.xlu2 %1693  ;;  %v1608_v18 = vsel %vm5849_vm10, %v1596_v12, %v5812_v16  ;;  %vm5855_vm10 = vcmask 883712  }
 0x4ae   :  { %v4920_v10 = vpop.permute.xlu0 %1358  ;;  %v1618_v42 = vadd.f32 %v1608_v18, %v1569_v49  ;;  %v1706_v16 = vsel %vm5853_vm9, %v1694_v7, %v4622_v15  ;;  %v1804_v41 = vsel %vm5855_vm10, %v4684_v37, %v4588_v58  ;;  %v1490_v15 = vmul.f32 %v3894_v6, %v4520_v2 }
 0x4af   :  { %vm5857_vm9 = vcmask 875520   ;;  %vm5860_vm10 = vcmask 850944  }
 0x4b0   :  { %v1667_v11 = vadd.f32 %v1657_v44, %v1618_v42  ;;  %v1440_v44 = vmul.f32 %v3890_v31, %v4537_v21 }
 0x4b2   :  { %1407 = vrot.lane.b32.xlu1 %v1391_v28, %s5807_s28  ;;  %v1716_v59 = vadd.f32 %v1706_v16, %v1667_v11  ;;  %v1292_v11 = vmul.f32 %v5840_v60, %v5833_v22  ;;  %v2098_v60 = vsel %vm2097_vm12, %v4733_v27, %v4575_v46 }
 0x4b3   :  { %1311 = vrot.lane.b32.xlu2 %v1294_v23, %s5842_s8 }
 0x4b4   :  { %2144 = vrot.lane.b32.xlu0 %v2127_v24, %s3125_s1  ;;  %v1743_v3 = vpop.permute.xlu1 %1742 }
 0x4b5   :  { %v1841_v30 = vpop.permute.xlu2 %1840  ;;  %v1755_v61 = vsel %vm5854_vm8, %v1743_v3, %v5817_v29  ;;  %vm5858_vm8 = vcmask 859136  }
 0x4b6   :  { %v4938_v5 = vpop.permute.xlu0 %1458  ;;  %v1765_v47 = vadd.f32 %v1755_v61, %v1716_v59  ;;  %v1853_v29 = vsel %vm5857_vm9, %v1841_v30, %v4679_v33  ;;  %v1951_v7 = vsel %vm5858_vm8, %v4709_v51, %v4647_v52  ;;  %v5859_v33 = vld [vmem:[#allocation34_spill] sm:$0xff]  ;;  %vm5866_vm8 = vcmask 1039360  }
 0x4b7   :  { %v1538_v42 = vmul.f32 %v5859_v33, %v4537_v21  ;;  %v1539_v3 = vmul.f32 %v5859_v33, %v4520_v2  ;;  %v5862_v30 = vld [vmem:[#allocation42_spill] sm:$0xff] }
 0x4b8   :  { %v1814_v35 = vadd.f32 %v1804_v41, %v1765_v47  ;;  %v2274_v61 = vmul.f32 %v5862_v30, %v4520_v2 }
 0x4ba   :  { %1507 = vrot.lane.b32.xlu1 %v1490_v15, %s3119_s22  ;;  %v1863_v58 = vadd.f32 %v1853_v29, %v1814_v35 }
 0x4bb   :  { %1409 = vrot.lane.b32.xlu2 %v1392_v36, %s5807_s28  ;;  %v2245_v36 = vsel %vm2244_vm2, %v4756_v54, %v4814_v39  ;;  %v5865_v54 = vld [vmem:[#allocation48_spill] sm:$0xff] }
 0x4bc   :  { %2191 = vrot.lane.b32.xlu0 %v2175_v13, %s3129_s30  ;;  %v1890_v37 = vpop.permute.xlu1 %1889  ;;  %v839_v39 = vmul.f32 %v5865_v54, %v4520_v2 }
 0x4bd   :  { %v1988_v1 = vpop.permute.xlu2 %1987  ;;  %v1902_v25 = vsel %vm1901_vm14, %v1890_v37, %v5821_v34  ;;  %v5864_v37 = vld [vmem:[#allocation32_spill] sm:$0xff] }
 0x4be   :  { %v4956_v49 = vpop.permute.xlu0 %1505  ;;  %v1912_v12 = vadd.f32 %v1902_v25, %v1863_v58  ;;  %v2000_v34 = vsel %vm5860_vm10, %v1988_v1, %v4730_v0  ;;  %v1637_v0 = vmul.f32 %v5809_v40, %v4520_v2  ;;  %v1587_v1 = vmul.f32 %v5864_v37, %v4537_v21  ;;  %vm5867_vm10 = vmmov %vm5866_vm8 }
 0x4c0   :  { %v1961_v18 = vadd.f32 %v1951_v7, %v1912_v12  ;;  %v1390_v12 = vmul.f32 %v5851_v57, %v5833_v22  ;;  %v838_v57 = vmul.f32 %v5865_v54, %v4537_v21 }
 0x4c2   :  { %1554 = vrot.lane.b32.xlu1 %v1538_v42, %s3110_s29  ;;  %v2010_v52 = vadd.f32 %v2000_v34, %v1961_v18 }
 0x4c3   :  { %1456 = vrot.lane.b32.xlu2 %v1440_v44, %s5861_s27 }
 0x4c4   :  { %1307 = vrot.lane.b32.xlu0 %v1292_v11, %s5842_s8  ;;  %v2037_v51 = vpop.permute.xlu1 %2036 }
 0x4c5   :  { %v2135_v28 = vpop.permute.xlu2 %2134  ;;  %v2049_v23 = vsel %vm2048_vm13, %v2037_v51, %v4706_v48 }
 0x4c6   :  { %v4974_v24 = vpop.permute.xlu0 %1605  ;;  %v2059_v16 = vadd.f32 %v2049_v23, %v2010_v52  ;;  %v2147_v48 = vsel %vm2146_vm11, %v2135_v28, %v4793_v56  ;;  %v5863_v56 = vld [vmem:[#allocation20_spill] sm:$0xff] }
 0x4c7   :  { %v1685_v29 = vmul.f32 %v5863_v56, %v4537_v21 }
 0x4c8   :  { %v2108_v59 = vadd.f32 %v2098_v60, %v2059_v16  ;;  %v5868_v16 = vld [vmem:[#allocation35_spill] sm:$0xff] }
 0x4c9   :  { %v1784_v60 = vmul.f32 %v5868_v16, %v4520_v2 }
 0x4ca   :  { %1654 = vrot.lane.b32.xlu1 %v1637_v0, %s3122_s4  ;;  %v2157_v46 = vadd.f32 %v2147_v48, %v2108_v59  ;;  %v1686_v59 = vmul.f32 %v5863_v56, %v4520_v2 }
 0x4cb   :  { %1556 = vrot.lane.b32.xlu2 %v1539_v3, %s3110_s29 }
 0x4cc   :  { %2291 = vrot.lane.b32.xlu0 %v2274_v61, %s3130_s7  ;;  %v2184_v27 = vpop.permute.xlu1 %2183 }
 0x4cd   :  { %v2282_v47 = vpop.permute.xlu2 %2281  ;;  %v2196_v41 = vsel %vm2195_vm15, %v2184_v27, %v4776_v45  ;;  %v5006_v45 = vstv %s5626_s10  ;;  %s5880_s10 = smov 99  }
 0x4ce   :  { %v4992_v35 = vpop.permute.xlu0 %1652  ;;  %v2206_v15 = vadd.f32 %v2196_v41, %v2157_v46  ;;  %v2294_v58 = vsel %vm2293_vm3, %v2282_v47, %v4859_v32  ;;  %v837_v32 = vmul.f32 %v5865_v54, %v5833_v22 }
 0x4d0   :  { %v2255_v13 = vadd.f32 %v2245_v36, %v2206_v15  ;;  %v5870_v36 = vld [vmem:[#allocation21_spill] sm:$0xff] }
 0x4d2   :  { %v2304_v25 = vadd.f32 %v2294_v58, %v2255_v13  ;;  %1701 = vrot.lane.b32.xlu1 %v1685_v29, %s3114_s3  ;;  %v1734_v13 = vmul.f32 %v5870_v36, %v4537_v21  ;;  %v1684_v29 = vmul.f32 %v5863_v56, %v5833_v22  ;;  %v5872_v56 = vld [vmem:[#allocation39_spill] sm:$0xff] }
 0x4d3   :  { %1603 = vrot.lane.b32.xlu2 %v1587_v1, %s5806_s5  ;;  %v5871_v1 = vld [vmem:[#allocation33_spill] sm:$0xff] }
 0x4d4   :  { %1405 = vrot.lane.b32.xlu0 %v1390_v12, %s5807_s28  ;;  %v869_v7 = vpop.permute.xlu1 %868  ;;  %vm2335_vm9 = vcmp.ge.f32.partialorder %v2304_v25, 0.0  ;;  %v2340_v18 = vmul.f32 %v5006_v45, %v2304_v25 }
 0x4d5   :  { %v871_v42 = vpop.permute.xlu2 %870  ;;  %v875_v44 = vsel %vm5866_vm8, %v4780_v17, %v869_v7  ;;  %v1537_v17 = vmul.f32 %v5859_v33, %v5833_v22  ;;  %v5869_v33 = vld [vmem:[#allocation23_spill] sm:$0xff] }
 0x4d6   :  { %v888_v11 = vadd.f32 %v871_v42, %v839_v39  ;;  %v5022_v34 = vpop.permute.xlu0 %1752  ;;  %v876_v52 = vsel %vm5867_vm10, %v869_v7, %v871_v42  ;;  %v886_v51 = vadd.f32 %v875_v44, %v837_v32  ;;  %v5025_v28 = vsel %vm2335_vm9, %v2304_v25, %v2340_v18  ;;  %v5873_v42 = vld [vmem:[#allocation36_spill] sm:$0xff] }
 0x4d7   :  { %v887_v23 = vadd.f32 %v876_v52, %v838_v57  ;;  %2364 = vmatmul.f32.vlgmr.msrb.gmra.mxu2 %v5025_v28  ;;  %v1881_v15 = vmul.f32 %v5869_v33, %v4537_v21  ;;  %v1931_v18 = vmul.f32 %v5872_v56, %v4520_v2  ;;  %v1832_v57 = vmul.f32 %v5873_v42, %v4537_v21 }
 0x4d8   :  { %v1831_v44 = vmul.f32 %v5873_v42, %v5833_v22  ;;  %vm5877_vm9 = vcmask 1006592   ;;  %v5879_v42 = vld [vmem:[#allocation41_spill] sm:$0xff]  ;;  %vm5881_vm10 = vcmask 965632  }
 0x4d9   :  { %vm5878_vm8 = vmmov %vm5877_vm9 }
 0x4da   :  { %1801 = vrot.lane.b32.xlu1 %v1784_v60, %s3124_s13 }
 0x4db   :  { %1703 = vrot.lane.b32.xlu2 %v1686_v59, %s3114_s3 }
 0x4dc   :  { %1552 = vrot.lane.b32.xlu0 %v1537_v17, %s3110_s29  ;;  %v918_v0 = vpop.permute.xlu1 %917 }
 0x4dd   :  { %v920_v3 = vpop.permute.xlu2 %919  ;;  %v924_v61 = vsel %vm921_vm0, %v4798_v4, %v918_v0 }
 0x4de   :  { %v937_v48 = vadd.f32 %v920_v3, %v888_v11  ;;  %v5039_v46 = vpop.permute.xlu0 %1799  ;;  %v925_v27 = vsel %vm921_vm0, %v918_v0, %v920_v3  ;;  %v935_v47 = vadd.f32 %v924_v61, %v886_v51  ;;  %vm5874_vm0 = vcmask 1014784   ;;  %v5876_v61 = vld [vmem:[#allocation24_spill] sm:$0xff] }
 0x4df   :  { %v936_v41 = vadd.f32 %v925_v27, %v887_v23  ;;  %v1194_v0 = vmul.f32 %v5834_v62, %v5833_v22  ;;  %v1882_v3 = vmul.f32 %v5869_v33, %v4520_v2 }
 0x4e2   :  { %1897 = vrot.lane.b32.xlu1 %v1881_v15, %s5808_s18 }
 0x4e3   :  { %1750 = vrot.lane.b32.xlu2 %v1734_v13, %s3116_s0 }
 0x4e4   :  { %1699 = vrot.lane.b32.xlu0 %v1684_v29, %s3114_s3  ;;  %v967_v4 = vpop.permute.xlu1 %966  ;;  %v2176_v29 = vmul.f32 %v5856_v26, %v4520_v2 }
 0x4e5   :  { %v969_v58 = vpop.permute.xlu2 %968  ;;  %v973_v25 = vsel %vm970_vm1, %v5871_v1, %v967_v4 }
 0x4e6   :  { %v986_v12 = vadd.f32 %v969_v58, %v937_v48  ;;  %v5053_v54 = vpop.permute.xlu0 %1850  ;;  %v974_v39 = vsel %vm970_vm1, %v967_v4, %v969_v58  ;;  %v984_v32 = vadd.f32 %v973_v25, %v935_v47  ;;  %vm5875_vm1 = vmmov %vm5874_vm0  ;;  %v1978_v48 = vmul.f32 %v5876_v61, %v5833_v22 }
 0x4e7   :  { %v985_v7 = vadd.f32 %v974_v39, %v936_v41  ;;  %v1979_v4 = vmul.f32 %v5876_v61, %v4537_v21 }
 0x4ea   :  { %1948 = vrot.lane.b32.xlu1 %v1931_v18, %s3126_s17 }
 0x4eb   :  { %1848 = vrot.lane.b32.xlu2 %v1832_v57, %s3118_s20  ;;  %v2224_v57 = vmul.f32 %v5879_v42, %v4537_v21 }
 0x4ec   :  { %1846 = vrot.lane.b32.xlu0 %v1831_v44, %s3118_s20  ;;  %v1016_v11 = vpop.permute.xlu1 %1015 }
 0x4ed   :  { %v1065_v52 = vpop.permute.xlu2 %1064  ;;  %v1022_v51 = vsel %vm5874_vm0, %v4843_v63, %v1016_v11  ;;  %v1023_v23 = vsel %vm5875_vm1, %v1016_v11, %v4863_v53  ;;  %v1035_v63 = vadd.f32 %v4863_v53, %v986_v12  ;;  %v2125_v53 = vmul.f32 %v5852_v38, %v5833_v22 }
 0x4ee   :  { %v5069_v60 = vpop.permute.xlu0 %1946  ;;  %v1033_v59 = vadd.f32 %v1022_v51, %v984_v32  ;;  %v1034_v17 = vadd.f32 %v1023_v23, %v985_v7  ;;  %v2028_v11 = vmul.f32 %v5836_v55, %v4537_v21  ;;  %v5106_v23 = vld [vmem:[#allocation2 + $0x18] sm:$0xff]  ;;  %vm5884_vm0 = vcmask 941056  }
 0x4ef   :  { %vm5885_vm1 = vcmask 932864  }
 0x4f2   :  { %1209 = vrot.lane.b32.xlu1 %v1194_v0, %s5837_s9  ;;  %v662_v0 = vpop.f32.mrf.mxu2 }
 0x4f3   :  { %1899 = vrot.lane.b32.xlu2 %v1882_v3, %s5808_s18 }
 0x4f4   :  { %1993 = vrot.lane.b32.xlu0 %v1978_v48, %s3121_s23  ;;  %v1067_v27 = vpop.permute.xlu1 %1066 }
 0x4f5   :  { %v5081_v47 = vpop.permute.xlu2 %1162  ;;  %v1072_v41 = vsel %vm5877_vm9, %v1065_v52, %v1067_v27  ;;  %v1084_v62 = vadd.f32 %v1067_v27, %v1035_v63  ;;  %vm5886_vm9 = vcmask 924672  }
 0x4f6   :  { %v5084_v15 = vpop.permute.xlu0 %1997  ;;  %v1083_v13 = vadd.f32 %v1072_v41, %v1034_v17  ;;  %v1170_v32 = vsel %vm1166_vm5, %v5081_v47, %v4905_v43  ;;  %v2174_v17 = vmul.f32 %v5106_v23, %v5856_v26  ;;  %v1341_v26 = vmul.f32 %v5106_v23, %v5846_v20 }
 0x4f7   :  { %v2077_v41 = vmul.f32 %v5841_v8, %v4537_v21 }
 0x4fa   :  { %2193 = vrot.lane.b32.xlu1 %v2176_v29, %s3129_s30 }
 0x4fb   :  { %1995 = vrot.lane.b32.xlu2 %v1979_v4, %s3121_s23 }
 0x4fc   :  { %2140 = vrot.lane.b32.xlu0 %v2125_v53, %s3125_s1  ;;  %v1116_v58 = vpop.permute.xlu1 %1115 }
 0x4fd   :  { %v1214_v1 = vpop.permute.xlu2 %1213  ;;  %v1121_v25 = vsel %vm1117_vm4, %v4887_v19, %v1116_v58  ;;  %v1133_v12 = vadd.f32 %v1116_v58, %v1084_v62 }
 0x4fe   :  { %v1063_v39 = vpop.permute.xlu0 %1062  ;;  %v1132_v2 = vadd.f32 %v1121_v25, %v1083_v13 }
 0x4ff   :  { %v1071_v22 = vsel %vm5878_vm8, %v1063_v39, %v1065_v52  ;;  %v1182_v7 = vadd.f32 %v4905_v43, %v1133_v12  ;;  %v685_v52 = vpop.f32.mrf.mxu3  ;;  %v1488_v12 = vmul.f32 %v5106_v23, %v3894_v6  ;;  %v2126_v39 = vmul.f32 %v5852_v38, %v4537_v21 }
 0x500   :  { %v1082_v18 = vadd.f32 %v1071_v22, %v1033_v59  ;;  %v1181_v44 = vadd.f32 %v1170_v32, %v1132_v2  ;;  %v686_v61 = vadd.f32 %v685_v52, %v662_v0  ;;  %v1243_v6 = vmul.f32 %v5106_v23, %v5838_v50  ;;  %v3010_v0 = vld [vmem:[#allocation2 + $0x28] sm:$0xff] }
 0x501   :  { %v1231_v51 = vadd.f32 %v1214_v1, %v1182_v7  ;;  %v2225_v52 = vmul.f32 %v3010_v0, %v5879_v42  ;;  %vm5887_vm8 = vcmask 916480  }
 0x502   :  { %2240 = vrot.lane.b32.xlu1 %v2224_v57, %s5880_s10  ;;  %v5123_v62 = vmul.f32 0.0052083335, %v686_v61 }
 0x503   :  { %2044 = vrot.lane.b32.xlu2 %v2028_v11, %s3127_s24 }
 0x504   :  { %2189 = vrot.lane.b32.xlu0 %v2174_v17, %s3129_s30  ;;  %v5113_v43 = vpop.permute.xlu1 %1211 }
 0x505   :  { %v1263_v59 = vpop.permute.xlu2 %1262  ;;  %v1219_v3 = vsel %vm1215_vm6, %v5113_v43, %v1214_v1 }
 0x506   :  { %v5117_v48 = vpop.permute.xlu0 %2046  ;;  %v1280_v63 = vadd.f32 %v1263_v59, %v1231_v51  ;;  %v1230_v27 = vadd.f32 %v1219_v3, %v1181_v44 }
 0x50a   :  { %1356 = vrot.lane.b32.xlu1 %v1341_v26, %s5847_s25 }
 0x50b   :  { %2093 = vrot.lane.b32.xlu2 %v2077_v41, %s5843_s6 }
 0x50c   :  { %697 = vperm.xlu0 %2938, %v5123_v62   ;;  %v5128_v13 = vpop.permute.xlu1 %1260 }
 0x50d   :  { %v1312_v29 = vpop.permute.xlu2 %1311  ;;  %v1268_v4 = vsel %vm1264_vm7, %v5128_v13, %v1263_v59 }
 0x50e   :  { %v1112_v53 = vpop.permute.xlu0 %1111  ;;  %v1329_v58 = vadd.f32 %v1312_v29, %v1280_v63  ;;  %v1279_v20 = vadd.f32 %v1268_v4, %v1230_v27  ;;  %v3011_v27 = vld [vmem:[#allocation2 + $0x20] sm:$0xff]  ;;  %v2076_v4 = vmul.f32 %v5106_v23, %v5841_v8 }
 0x50f   :  { %v1120_v1 = vsel %vm1117_vm4, %v1112_v53, %v4887_v19  ;;  %vm5882_vm4 = vcmask 957440   ;;  %v2273_v26 = vmul.f32 %v3011_v27, %v5862_v30 }
 0x510   :  { %v1131_v25 = vadd.f32 %v1120_v1, %v1082_v18  ;;  %v1635_v18 = vmul.f32 %v5106_v23, %v5809_v40  ;;  %v1782_v40 = vmul.f32 %v5106_v23, %v5868_v16  ;;  %v1929_v16 = vmul.f32 %v5106_v23, %v5872_v56 }
 0x512   :  { %1503 = vrot.lane.b32.xlu1 %v1488_v12, %s3119_s22 }
 0x513   :  { %2142 = vrot.lane.b32.xlu2 %v2126_v39, %s3125_s1 }
 0x514   :  { %v5140_v2 = vpop.permute.xlu1 %1309 }
 0x515   :  { %v1410_v32 = vpop.permute.xlu2 %1409  ;;  %v1317_v22 = vsel %vm5881_vm10, %v5140_v2, %v1312_v29  ;;  %vm5888_vm10 = vcmask 908288  }
 0x516   :  { %v5144_v7 = vpop.permute.xlu0 %2095  ;;  %v1328_v19 = vadd.f32 %v1317_v22, %v1279_v20  ;;  %v1586_v22 = vmul.f32 %v5106_v23, %v5864_v37  ;;  %v1880_v37 = vmul.f32 %v5106_v23, %v5869_v33 }
 0x51a   :  { %1650 = vrot.lane.b32.xlu1 %v1635_v18, %s3122_s4  ;;  %v1733_v18 = vmul.f32 %v5106_v23, %v5870_v36 }
 0x51b   :  { %1258 = vrot.lane.b32.xlu2 %v1243_v6, %s3107_s26 }
 0x51c   :  { %v1361_v21 = vpop.permute.xlu1 %1360 }
 0x51d   :  { %v5152_v38 = vpop.permute.xlu2 %1456  ;;  %v1378_v57 = vadd.f32 %v1361_v21, %v1329_v58  ;;  %v1366_v50 = vsel %vm5882_vm4, %v4920_v10, %v1361_v21  ;;  %v1439_v58 = vmul.f32 %v5106_v23, %v3890_v31  ;;  %vm5889_vm4 = vcmask 900096  }
 0x51e   :  { %v1161_v44 = vpop.permute.xlu0 %1160  ;;  %v1377_v59 = vadd.f32 %v1366_v50, %v1328_v19  ;;  %v1464_v53 = vsel %vm5884_vm0, %v5152_v38, %v4938_v5  ;;  %vm5891_vm0 = vcmask 883712  }
 0x51f   :  { %v1169_v11 = vsel %vm1166_vm5, %v1161_v44, %v5081_v47  ;;  %v1427_v51 = vadd.f32 %v1410_v32, %v1378_v57  ;;  %vm5883_vm5 = vcmask 949248  }
 0x520   :  { %v5156_v17 = vadd.f32 %v1169_v11, %v1131_v25 }
 0x521   :  { %v1476_v21 = vadd.f32 %v4938_v5, %v1427_v51 }
 0x522   :  { %1797 = vrot.lane.b32.xlu1 %v1782_v40, %s3124_s13 }
 0x523   :  { %2242 = vrot.lane.b32.xlu2 %v2225_v52, %s5880_s10  ;;  %v2027_v52 = vmul.f32 %v5106_v23, %v5836_v55 }
 0x524   :  { %v5165_v3 = vpop.permute.xlu1 %1407 }
 0x525   :  { %v1557_v47 = vpop.permute.xlu2 %1556  ;;  %v1415_v61 = vsel %vm5883_vm5, %v5165_v3, %v1410_v32  ;;  %v2223_v32 = vmul.f32 %v5106_v23, %v5879_v42  ;;  %vm5890_vm5 = vcmask 891904  }
 0x526   :  { %v1426_v63 = vadd.f32 %v1415_v61, %v1377_v59  ;;  %v5211_v57 = vpop.permute.xlu0 %2144 }
 0x528   :  { %v1475_v20 = vadd.f32 %v1464_v53, %v1426_v63 }
 0x52a   :  { %1944 = vrot.lane.b32.xlu1 %v1929_v16, %s3126_s17 }
 0x52b   :  { %2289 = vrot.lane.b32.xlu2 %v2273_v26, %s3130_s7 }
 0x52c   :  { %v1508_v41 = vpop.permute.xlu1 %1507 }
 0x52d   :  { %v5174_v29 = vpop.permute.xlu2 %1603  ;;  %v1513_v56 = vsel %vm5885_vm1, %v4956_v49, %v1508_v41  ;;  %v1525_v44 = vadd.f32 %v1508_v41, %v1476_v21  ;;  %vm5893_vm1 = vcmask 875520  }
 0x52e   :  { %v1524_v1 = vadd.f32 %v1513_v56, %v1475_v20  ;;  %v1611_v36 = vsel %vm5887_vm8, %v5174_v29, %v4974_v24  ;;  %v5232_v26 = vpop.permute.xlu0 %2191  ;;  %vm5895_vm8 = vcmask 850944  }
 0x52f   :  { %v1574_v5 = vadd.f32 %v1557_v47, %v1525_v44 }
 0x531   :  { %v1623_v63 = vadd.f32 %v4974_v24, %v1574_v5 }
 0x532   :  { %2091 = vrot.lane.b32.xlu1 %v2076_v4, %s5843_s6  ;;  %v5892_v4 = vld [vmem:[#allocation49_spill] sm:$0xff] }
 0x533   :  { %1454 = vrot.lane.b32.xlu2 %v1439_v58, %s5861_s27  ;;  %v5237_v53 = vmul.f32 0.0052083335, %v5892_v4 }
 0x534   :  { %v5187_v25 = vpop.permute.xlu1 %1554 }
 0x535   :  { %v1704_v12 = vpop.permute.xlu2 %1703  ;;  %v1562_v8 = vsel %vm5886_vm9, %v5187_v25, %v1557_v47  ;;  %vm5894_vm9 = vcmask 859136  }
 0x536   :  { %v1573_v39 = vadd.f32 %v1562_v8, %v1524_v1 }
 0x538   :  { %v1622_v11 = vadd.f32 %v1611_v36, %v1573_v39 }
 0x53a   :  { %2238 = vrot.lane.b32.xlu1 %v2223_v32, %s5880_s10 }
 0x53b   :  { %1601 = vrot.lane.b32.xlu2 %v1586_v22, %s5806_s5 }
 0x53c   :  { %v1655_v31 = vpop.permute.xlu1 %1654 }
 0x53d   :  { %v5197_v19 = vpop.permute.xlu2 %1750  ;;  %v1672_v41 = vadd.f32 %v1655_v31, %v1623_v63 }
 0x53e   :  { %v1758_v59 = vsel %vm5890_vm5, %v5197_v19, %v5022_v34  ;;  %vm5900_vm5 = vcmask 932864  }
 0x53f   :  { %v1721_v24 = vadd.f32 %v1704_v12, %v1672_v41 }
 0x541   :  { %v1770_v22 = vadd.f32 %v5022_v34, %v1721_v24  ;;  %v2272_v34 = vmul.f32 %v5106_v23, %v5862_v30 }
 0x542   :  { %2316 = vrot.lane.b32.xlu1 %v4872_v9, %s3130_s7  ;;  %v1660_v9 = vsel %vm5888_vm10, %v4992_v35, %v1655_v31  ;;  %vm5896_vm10 = vcmask 965632  }
 0x543   :  { %1748 = vrot.lane.b32.xlu2 %v1733_v18, %s3116_s0  ;;  %v1671_v0 = vadd.f32 %v1660_v9, %v1622_v11  ;;  %v1308_v18 = vpop.permute.xlu0 %1307 }
 0x544   :  { %v5204_v6 = vpop.permute.xlu1 %1701 }
 0x545   :  { %v5206_v42 = vpop.permute.xlu2 %1848  ;;  %v1709_v50 = vsel %vm5889_vm4, %v5204_v6, %v1704_v12  ;;  %vm5899_vm4 = vcmask 941056  }
 0x546   :  { %v1720_v51 = vadd.f32 %v1709_v50, %v1671_v0  ;;  %v1856_v56 = vsel %vm5893_vm1, %v5206_v42, %v5053_v54  ;;  %vm5902_vm1 = vcmask 916480  }
 0x548   :  { %v1769_v16 = vadd.f32 %v1758_v59, %v1720_v51 }
 0x54b   :  { %1895 = vrot.lane.b32.xlu2 %v1880_v37, %s5808_s18  ;;  %v2292_v50 = vpop.permute.xlu0 %2291 }
 0x54c   :  { %v1802_v40 = vpop.permute.xlu1 %1801 }
 0x54d   :  { %v1900_v33 = vpop.permute.xlu2 %1899  ;;  %v1807_v61 = vsel %vm5891_vm0, %v5039_v46, %v1802_v40  ;;  %v1819_v21 = vadd.f32 %v1802_v40, %v1770_v22  ;;  %vm5901_vm0 = vcmask 924672  }
 0x54e   :  { %v1818_v55 = vadd.f32 %v1807_v61, %v1769_v16 }
 0x54f   :  { %v1868_v36 = vadd.f32 %v5053_v54, %v1819_v21 }
 0x550   :  { %v1867_v20 = vadd.f32 %v1856_v56, %v1818_v55 }
 0x551   :  { %v1917_v11 = vadd.f32 %v1900_v33, %v1868_v36 }
 0x553   :  { %2042 = vrot.lane.b32.xlu2 %v2027_v52, %s3127_s24  ;;  %v1406_v52 = vpop.permute.xlu0 %1405 }
 0x554   :  { %v5230_v27 = vpop.permute.xlu1 %1897 }
 0x555   :  { %v5234_v47 = vpop.permute.xlu2 %1995  ;;  %v1905_v58 = vsel %vm1901_vm14, %v5230_v27, %v1900_v33 }
 0x556   :  { %v1916_v1 = vadd.f32 %v1905_v58, %v1867_v20  ;;  %v2003_v37 = vsel %vm5895_vm8, %v5234_v47, %v5084_v15  ;;  %vm5904_vm8 = vcmask 900096  }
 0x55b   :  { %692 = vperm.xlu2 %2940, %v5237_v53   ;;  %v1553_v58 = vpop.permute.xlu0 %1552 }
 0x55c   :  { %v1949_v8 = vpop.permute.xlu1 %1948 }
 0x55d   :  { %v5245_v39 = vpop.permute.xlu2 %2044  ;;  %v1954_v32 = vsel %vm5894_vm9, %v5069_v60, %v1949_v8  ;;  %v1966_v0 = vadd.f32 %v1949_v8, %v1917_v11  ;;  %vm5903_vm9 = vcmask 908288  }
 0x55e   :  { %v1965_v31 = vadd.f32 %v1954_v32, %v1916_v1 }
 0x55f   :  { %v2015_v40 = vadd.f32 %v5084_v15, %v1966_v0  ;;  %v1316_v15 = vsel %vm5896_vm10, %v1308_v18, %v5140_v2  ;;  %vm5905_vm10 = vcmask 891904  }
 0x560   :  { %v2014_v12 = vadd.f32 %v2003_v37, %v1965_v31 }
 0x563   :  { %2318 = vrot.lane.b32.xlu2 %v4861_v14, %s3130_s7  ;;  %v2064_v14 = vadd.f32 %v5117_v48, %v2015_v40 }
 0x564   :  { %v1210_v9 = vpop.permute.xlu1 %1209 }
 0x565   :  { %v5256_v44 = vpop.permute.xlu2 %2093  ;;  %v1218_v54 = vsel %vm1215_vm6, %v1210_v9, %v5113_v43  ;;  %v2113_v30 = vadd.f32 %v5144_v7, %v2064_v14  ;;  %v2052_v43 = vsel %vm2048_vm13, %v5245_v39, %v5117_v48  ;;  %vm5897_vm6 = vcmask 957440  }
 0x566   :  { %v1229_v33 = vadd.f32 %v1218_v54, %v5156_v17  ;;  %v2101_v41 = vsel %vm2097_vm12, %v5256_v44, %v5144_v7  ;;  %v2063_v55 = vadd.f32 %v2052_v43, %v2014_v12  ;;  %v1561_v54 = vsel %vm5901_vm0, %v1553_v58, %v5187_v25 }
 0x567   :  { %v2162_v17 = vadd.f32 %v5211_v57, %v2113_v30 }
 0x568   :  { %v2112_v2 = vadd.f32 %v2101_v41, %v2063_v55 }
 0x56b   :  { %2287 = vrot.lane.b32.xlu2 %v2272_v34, %s3130_s7 }
 0x56c   :  { %v2194_v5 = vpop.permute.xlu1 %2193 }
 0x56d   :  { %v5261_v51 = vpop.permute.xlu2 %2142  ;;  %v2211_v4 = vadd.f32 %v2194_v5, %v2162_v17  ;;  %v2199_v31 = vsel %vm2195_vm15, %v5232_v26, %v2194_v5 }
 0x574   :  { %v5267_v59 = vpop.permute.xlu1 %2240 }
 0x575   :  { %v1259_v61 = vpop.permute.xlu2 %1258 }
 0x576   :  { %v1267_v23 = vsel %vm1264_vm7, %v1259_v61, %v5128_v13  ;;  %v2150_v13 = vsel %vm2146_vm11, %v5261_v51, %v5211_v57  ;;  %vm5898_vm7 = vcmask 949248  }
 0x577   :  { %v1278_v63 = vadd.f32 %v1267_v23, %v1229_v33  ;;  %v1414_v7 = vsel %vm5898_vm7, %v1406_v52, %v5165_v3  ;;  %v2161_v8 = vadd.f32 %v2150_v13, %v2112_v2  ;;  %v1700_v3 = vpop.permute.xlu0 %1699  ;;  %vm5907_vm7 = vcmask 875520  }
 0x579   :  { %v1327_v16 = vadd.f32 %v1316_v15, %v1278_v63  ;;  %v2210_v18 = vadd.f32 %v2199_v31, %v2161_v8  ;;  %v1708_v63 = vsel %vm5904_vm8, %v1700_v3, %v5204_v6 }
 0x57c   :  { %v1357_v56 = vpop.permute.xlu1 %1356 }
 0x57d   :  { %v2243_v24 = vpop.permute.xlu2 %2242  ;;  %v1365_v20 = vsel %vm5897_vm6, %v1357_v56, %v4920_v10  ;;  %vm5906_vm6 = vcmask 883712  }
 0x57e   :  { %v2260_v48 = vadd.f32 %v2243_v24, %v2211_v4  ;;  %v1376_v1 = vadd.f32 %v1365_v20, %v1327_v16  ;;  %v2248_v57 = vsel %vm2244_vm2, %v5267_v59, %v2243_v24 }
 0x57f   :  { %v2259_v21 = vadd.f32 %v2248_v57, %v2210_v18  ;;  %v1847_v40 = vpop.permute.xlu0 %1846 }
 0x580   :  { %v2309_v32 = vadd.f32 %v2292_v50, %v2260_v48  ;;  %v1425_v22 = vadd.f32 %v1414_v7, %v1376_v1  ;;  %v1855_v55 = vsel %vm5907_vm7, %v1847_v40, %v5206_v42  ;;  %v3014_v40 = vld [vmem:[%s5618_s2 + $0x70] sm:$0xff] }
 0x582   :  { %2322 = vrot.lane.b32.xlu1 %v2309_v32, %s3130_s7 }
 0x584   :  { %v1504_v37 = vpop.permute.xlu1 %1503 }
 0x585   :  { %v5294_v10 = vpop.permute.xlu2 %2289  ;;  %v1512_v5 = vsel %vm5900_vm5, %v1504_v37, %v4956_v49  ;;  %vm5909_vm5 = vcmask 850944   ;;  %v5911_v37 = vld [vmem:[#allocation45_spill] sm:$0xff] }
 0x586   :  { %v2297_v12 = vsel %vm2293_vm3, %v5294_v10, %v2292_v50 }
 0x587   :  { %v2308_v36 = vadd.f32 %v2297_v12, %v2259_v21  ;;  %v1994_v49 = vpop.permute.xlu0 %1993 }
 0x588   :  { %v2002_v24 = vsel %vm5909_vm5, %v1994_v49, %v5234_v47  ;;  %v3020_v49 = vld [vmem:[%s5618_s2 + $0x58] sm:$0xff] }
 0x589   :  { %2320 = vrot.lane.b32.xlu0 %v2308_v36, %s3130_s7 }
 0x58c   :  { %v1651_v9 = vpop.permute.xlu1 %1650 }
 0x58d   :  { %v1455_v11 = vpop.permute.xlu2 %1454  ;;  %v1659_v23 = vsel %vm5903_vm9, %v1651_v9, %v4992_v35 }
 0x58e   :  { %v1463_v34 = vsel %vm5899_vm4, %v1455_v11, %v5152_v38  ;;  %vm5908_vm4 = vcmask 859136   ;;  %v5913_v11 = vld [vmem:[#allocation47_spill] sm:$0xff] }
 0x58f   :  { %v1474_v0 = vadd.f32 %v1463_v34, %v1425_v22  ;;  %v2141_v13 = vpop.permute.xlu0 %2140 }
 0x590   :  { %v2149_v8 = vsel %vm2146_vm11, %v2141_v13, %v5261_v51  ;;  %v3012_v51 = vld [vmem:[%s5618_s2 + $0x78] sm:$0xff]  ;;  %v3027_v13 = vld [vmem:[%s5618_s2 + $0xc0] sm:$0xff] }
 0x591   :  { %v1523_v14 = vadd.f32 %v1512_v5, %v1474_v0 }
 0x593   :  { %v1572_v52 = vadd.f32 %v1561_v54, %v1523_v14  ;;  %v3015_v14 = vld [vmem:[%s5618_s2 + $0xf0] sm:$0xff] }
 0x594   :  { %v1798_v33 = vpop.permute.xlu1 %1797 }
 0x595   :  { %v1602_v50 = vpop.permute.xlu2 %1601  ;;  %v1806_v17 = vsel %vm5906_vm6, %v1798_v33, %v5039_v46  ;;  %v3017_v33 = vld [vmem:[%s5618_s2 + $0xe8] sm:$0xff] }
 0x596   :  { %v1610_v61 = vsel %vm5902_vm1, %v1602_v50, %v5174_v29  ;;  %v3016_v50 = vld [vmem:[%s5618_s2 + $0x68] sm:$0xff] }
 0x597   :  { %v1621_v30 = vadd.f32 %v1610_v61, %v1572_v52  ;;  %v2190_v48 = vpop.permute.xlu0 %2189 }
 0x598   :  { %v2198_v22 = vsel %vm2195_vm15, %v2190_v48, %v5232_v26  ;;  %v3013_v26 = vld [vmem:[%s5618_s2 + $0xf8] sm:$0xff] }
 0x599   :  { %v1670_v38 = vadd.f32 %v1659_v23, %v1621_v30  ;;  %v3037_v48 = vld [vmem:[%s5618_s2 + $0x98] sm:$0xff] }
 0x59b   :  { %v1719_v15 = vadd.f32 %v1708_v63, %v1670_v38  ;;  %v3018_v38 = vld [vmem:[%s5618_s2 + $0x60] sm:$0xff] }
 0x59c   :  { %v1945_v41 = vpop.permute.xlu1 %1944  ;;  %v3019_v63 = vld [vmem:[%s5618_s2 + $0xe0] sm:$0xff] }
 0x59d   :  { %v1749_v16 = vpop.permute.xlu2 %1748  ;;  %v1953_v58 = vsel %vm5908_vm4, %v1945_v41, %v5069_v60  ;;  %v3023_v41 = vld [vmem:[%s5618_s2 + $0xd0] sm:$0xff] }
 0x59e   :  { %v1757_v25 = vsel %vm5905_vm10, %v1749_v16, %v5197_v19 }
 0x59f   :  { %v1768_v43 = vadd.f32 %v1757_v25, %v1719_v15  ;;  %v698_v36 = vpop.permute.xlu0 %697  ;;  %v3021_v15 = vld [vmem:[%s5618_s2 + $0xd8] sm:$0xff]  ;;  %v3022_v25 = vld [vmem:[%s5618_s2 + $0x50] sm:$0xff] }
 0x5a0   :  { %v703_v34 = vsub.f32 %v5913_v11, %v698_v36 }
 0x5a1   :  { %v1817_v29 = vadd.f32 %v1806_v17, %v1768_v43 }
 0x5a2   :  { %v707_v30 = vmul.f32 %v703_v34, %v703_v34 }
 0x5a3   :  { %v1866_v35 = vadd.f32 %v1855_v55, %v1817_v29  ;;  %v3024_v29 = vld [vmem:[%s5618_s2 + $0x48] sm:$0xff] }
 0x5a4   :  { %v2092_v2 = vpop.permute.xlu1 %2091  ;;  %v3025_v55 = vld [vmem:[%s5618_s2 + $0xc8] sm:$0xff] }
 0x5a5   :  { %v1896_v4 = vpop.permute.xlu2 %1895  ;;  %v2100_v7 = vsel %vm2097_vm12, %v2092_v2, %v5256_v44  ;;  %v3032_v2 = vld [vmem:[%s5618_s2 + $0x28] sm:$0xff] }
 0x5a6   :  { %v1904_v6 = vsel %vm1901_vm14, %v1896_v4, %v5230_v27 }
 0x5a7   :  { %v1915_v56 = vadd.f32 %v1904_v6, %v1866_v35  ;;  %v3028_v6 = vld [vmem:[%s5618_s2 + $0x38] sm:$0xff] }
 0x5a9   :  { %v1964_v19 = vadd.f32 %v1953_v58, %v1915_v56  ;;  %v3029_v56 = vld [vmem:[%s5618_s2 + $0xb8] sm:$0xff]  ;;  %v3030_v58 = vld [vmem:[%s5618_s2 + $0x30] sm:$0xff] }
 0x5ab   :  { %v2013_v46 = vadd.f32 %v2002_v24, %v1964_v19  ;;  %v3031_v19 = vld [vmem:[%s5618_s2 + $0xb0] sm:$0xff]  ;;  %v3033_v24 = vld [vmem:[%s5618_s2 + $0xa8] sm:$0xff] }
 0x5ac   :  { %v2239_v32 = vpop.permute.xlu1 %2238 }
 0x5ad   :  { %v2043_v20 = vpop.permute.xlu2 %2042  ;;  %v2247_v57 = vsel %vm2244_vm2, %v2239_v32, %v5267_v59  ;;  %v5912_v59 = vld [vmem:[#allocation46_spill] sm:$0xff]  ;;  %v3043_v32 = vld [vmem:[%s5618_s2 + $0x80] sm:$0xff] }
 0x5ae   :  { %v2051_v42 = vsel %vm2048_vm13, %v2043_v20, %v5245_v39  ;;  %v5910_v39 = vld [vmem:[#allocation44_spill] sm:$0xff]  ;;  %v702_v9 = vsub.f32 %v5912_v59, %v698_v36 }
 0x5af   :  { %v2062_v1 = vadd.f32 %v2051_v42, %v2013_v46  ;;  %v3034_v46 = vld [vmem:[%s5618_s2 + $0x20] sm:$0xff]  ;;  %v3036_v42 = vld [vmem:[%s5618_s2 + $0x18] sm:$0xff] }
 0x5b0   :  { %v706_v61 = vmul.f32 %v702_v9, %v702_v9  ;;  %v3035_v20 = vld [vmem:[%s5618_s2 + $0xa0] sm:$0xff] }
 0x5b1   :  { %v2111_v27 = vadd.f32 %v2100_v7, %v2062_v1  ;;  %v3038_v1 = vld [vmem:[%s5618_s2 + $0x10] sm:$0xff] }
 0x5b2   :  { %v3039_v7 = vld [vmem:[%s5618_s2 + $0x90] sm:$0xff] }
 0x5b3   :  { %v2160_v60 = vadd.f32 %v2149_v8, %v2111_v27  ;;  %v3040_v27 = vld [vmem:[%s5618_s2 + $0x8] sm:$0xff] }
 0x5b4   :  { %v2317_v0 = vpop.permute.xlu1 %2316  ;;  %v3041_v8 = vld [vmem:[%s5618_s2 + $0x88] sm:$0xff] }
 0x5b5   :  { %v2209_v47 = vadd.f32 %v2198_v22, %v2160_v60  ;;  %v693_v31 = vpop.permute.xlu2 %692  ;;  %v3042_v60 = vld [vmem:[%s5618_s2] sm:$0xff] }
 0x5b6   :  { %v700_v18 = vsub.f32 %v5910_v39, %v693_v31  ;;  %v701_v21 = vsub.f32 %v5911_v37, %v693_v31 }
 0x5b7   :  { %v2258_v12 = vadd.f32 %v2247_v57, %v2209_v47 }
 0x5b8   :  { %v704_v44 = vmul.f32 %v700_v18, %v700_v18  ;;  %v705_v3 = vmul.f32 %v701_v21, %v701_v21 }
 0x5ba   :  { %724 = vmatmul.f32.vlgmr.msra.gmra.mxu0 %v704_v44  ;;  %747 = vmatmul.f32.vlgmr.msra.gmra.mxu1 %v705_v3 }
 0x5bb   :  { %2596 = vmatpush.msra.mxu0 %v3012_v51  ;;  %2619 = vmatpush.msra.mxu1 %v3013_v26 }
 0x5bd   :  { %v2319_v5 = vpop.permute.xlu2 %2318  ;;  %2597 = vmatpush.msra.mxu0 %v3014_v40  ;;  %2620 = vmatpush.msra.mxu1 %v3015_v14  ;;  %v2365_v14 = vpop.f32.mrf.mxu2 }
 0x5be   :  { %v2324_v54 = vsel %vm2293_vm3, %v2317_v0, %v2319_v5  ;;  %v5914_v5 = vld [vmem:[#allocation16_spill] sm:$0xff] }
 0x5bf   :  { %vm2336_vm15 = vcmp.ge.f32.partialorder %v2324_v54, 0.0  ;;  %v2341_v52 = vmul.f32 %v5006_v45, %v2324_v54  ;;  %2598 = vmatpush.msra.mxu0 %v3016_v50  ;;  %2621 = vmatpush.msra.mxu1 %v3017_v33  ;;  %v2803_v40 = vmul.f32 -1.442695, %v5914_v5 }
 0x5c1   :  { %v5357_v23 = vsel %vm2336_vm15, %v2324_v54, %v2341_v52  ;;  %2599 = vmatpush.msra.mxu0 %v3018_v38  ;;  %2622 = vmatpush.msra.mxu1 %v3019_v63 }
 0x5c2   :  { %727 = vmatmul.f32.gmra.mxu0 %v706_v61  ;;  %750 = vmatmul.f32.gmra.mxu1 %v707_v30 }
 0x5c3   :  { %2387 = vmatmul.f32.vlgmr.msra.gmra.mxu3 %v5357_v23  ;;  %2600 = vmatpush.msra.mxu0 %v3020_v49 }
 0x5c4   :  { %2623 = vmatpush.msra.mxu1 %v3021_v15  ;;  %v2502_v15 = vld [vmem:[%s5628_s12] sm:$0xff] }
 0x5c5   :  { %v2288_v16 = vpop.permute.xlu2 %2287  ;;  %2601 = vmatpush.msra.mxu0 %v3022_v25 }
 0x5c6   :  { %v2296_v43 = vsel %vm2293_vm3, %v2288_v16, %v5294_v10  ;;  %2624 = vmatpush.msra.mxu1 %v3023_v41  ;;  %v3026_v10 = vld [vmem:[%s5618_s2 + $0x40] sm:$0xff] }
 0x5c7   :  { %v2307_v17 = vadd.f32 %v2296_v43, %v2258_v12  ;;  %2602 = vmatpush.msra.mxu0 %v3024_v29  ;;  %v2503_v29 = vld [vmem:[%s5628_s12 + $0x8] sm:$0xff] }
 0x5c8   :  { %2625 = vmatpush.msra.mxu1 %v3025_v55 }
 0x5c9   :  { %vm2337_vm2 = vcmp.ge.f32.partialorder %v2307_v17, 0.0  ;;  %v2342_v35 = vmul.f32 %v5006_v45, %v2307_v17  ;;  %2603 = vmatpush.msra.mxu0 %v3026_v10 }
 0x5ca   :  { %2626 = vmatpush.msra.mxu1 %v3027_v13  ;;  %v622_v13 = vld [vmem:[%s5630_s14 + $0x8] sm:$0xff] }
 0x5cb   :  { %v5393_v4 = vsel %vm2337_vm2, %v2307_v17, %v2342_v35  ;;  %2604 = vmatpush.msra.mxu0 %v3028_v6 }
 0x5cc   :  { %2367 = vmatmul.f32.gmra.mxu2 %v5393_v4  ;;  %2627 = vmatpush.msra.mxu1 %v3029_v56  ;;  %v621_v56 = vld [vmem:[%s5630_s14] sm:$0xff] }
 0x5cd   :  { %2605 = vmatpush.msra.mxu0 %v3030_v58 }
 0x5ce   :  { %2628 = vmatpush.msra.mxu1 %v3031_v19 }
 0x5cf   :  { %2606 = vmatpush.msra.mxu0 %v3032_v2 }
 0x5d0   :  { %2629 = vmatpush.msra.mxu1 %v3033_v24 }
 0x5d1   :  { %2607 = vmatpush.msra.mxu0 %v3034_v46 }
 0x5d2   :  { %2630 = vmatpush.msra.mxu1 %v3035_v20 }
 0x5d3   :  { %2608 = vmatpush.msra.mxu0 %v3036_v42  ;;  %v626_v42 = vld [vmem:[%s5631_s15 + $0x8] sm:$0xff] }
 0x5d4   :  { %2631 = vmatpush.msra.mxu1 %v3037_v48 }
 0x5d5   :  { %2609 = vmatpush.msra.mxu0 %v3038_v1 }
 0x5d6   :  { %2632 = vmatpush.msra.mxu1 %v3039_v7 }
 0x5d7   :  { %2610 = vmatpush.msra.mxu0 %v3040_v27 }
 0x5d8   :  { %2633 = vmatpush.msra.mxu1 %v3041_v8 }
 0x5d9   :  { %2611 = vmatpush.msra.mxu0 %v3042_v60 }
 0x5da   :  { %2634 = vmatpush.msra.mxu1 %v3043_v32 }
 0x5f4   :  { %v2323_v22 = vpop.permute.xlu1 %2322 }
 0x5fb   :  { %v2321_v47 = vpop.permute.xlu0 %2320 }
 0x5fc   :  { %v2325_v31 = vsel %vm2293_vm3, %v2321_v47, %v2323_v22  ;;  %v5915_v22 = vmov 1  }
 0x5fd   :  { %v2343_v57 = vmul.f32 %v5006_v45, %v2325_v31  ;;  %vm2338_vm11 = vcmp.ge.f32.partialorder %v2325_v31, 0.0 }
 0x5ff   :  { %v5446_v18 = vsel %vm2338_vm11, %v2325_v31, %v2343_v57 }
 0x600   :  { %2390 = vmatmul.f32.gmra.mxu3 %v5446_v18 }
 0x637   :  { %v725_v21 = vpop.f32.mrf.mxu0  ;;  %v748_v12 = vpop.f32.mrf.mxu1 }
 0x638   :  { %v749_v44 = vadd.f32 %v748_v12, %v725_v21 }
 0x63a   :  { %v754_v3 = vmul.f32 0.0052083335, %v749_v44 }
 0x63c   :  { %v756_v36 = vadd.f32 1e-05, %v754_v3 }
 0x63e   :  { %2950 = vrsqrt.f32 %v756_v36  ;;  %vm764_vm13 = vweird.f32 %v756_v36 }
 0x63f   :  { %v728_v51 = vpop.f32.mrf.mxu0  ;;  %v751_v26 = vpop.f32.mrf.mxu1 }
 0x640   :  { %v752_v9 = vadd.f32 %v751_v26, %v728_v51 }
 0x642   :  { %v755_v34 = vmul.f32 0.0052083335, %v752_v9 }
 0x644   :  { %v757_v0 = vadd.f32 1e-05, %v755_v34  ;;  %v2951_v54 = vpop.eup %2950 }
 0x645   :  { %v759_v33 = vmul.f32 %v2951_v54, %v756_v36  ;;  %vm765_vm3 = vweird.f32 %v2951_v54 }
 0x646   :  { %2952 = vrsqrt.f32 %v757_v0  ;;  %v2388_v45 = vpop.f32.mrf.mxu3  ;;  %vm766_vm14 = vmor %vm764_vm13, %vm765_vm3  ;;  %vm774_vm0 = vweird.f32 %v757_v0 }
 0x647   :  { %v2389_v52 = vadd.f32 %v2388_v45, %v2365_v14  ;;  %2954 = vpow2.f32 %v2803_v40  ;;  %v760_v38 = vmul.f32 %v2951_v54, %v759_v33 }
 0x649   :  { %v2394_v50 = vmul.f32 0.0052083335, %v2389_v52  ;;  %v761_v16 = vmul.f32 0.5, %v760_v38 }
 0x64b   :  { %2398 = vperm.xlu2 %2940, %v2394_v50   ;;  %v762_v41 = vsub.f32 1.5, %v761_v16 }
 0x64c   :  { %v2953_v61 = vpop.eup %2952 }
 0x64d   :  { %v769_v30 = vmul.f32 %v2953_v61, %v757_v0  ;;  %v2955_v49 = vpop.eup %2954  ;;  %v763_v55 = vmul.f32 %v2951_v54, %v762_v41  ;;  %vm775_vm12 = vweird.f32 %v2953_v61 }
 0x64e   :  { %v306_v43 = vadd.f32 1.0, %v2955_v49  ;;  %vm776_vm1 = vmor %vm774_vm0, %vm775_vm12 }
 0x64f   :  { %v770_v63 = vmul.f32 %v2953_v61, %v769_v30  ;;  %v767_v58 = vsel %vm766_vm14, %v2951_v54, %v763_v55  ;;  %v2368_v31 = vpop.f32.mrf.mxu2 }
 0x650   :  { %2956 = vrcp.f32 %v306_v43  ;;  %v5464_v24 = vmul.f32 %v767_v58, %v621_v56  ;;  %v321_v27 = vand.u32 2147483648, %v306_v43  ;;  %vm315_vm8 = vweird.f32 %v306_v43 }
 0x651   :  { %v771_v25 = vmul.f32 0.5, %v770_v63  ;;  %v319_v8 = vand.u32 2147483647, %v306_v43 }
 0x652   :  { %v322_v32 = vor.u32 1.1754944e-38, %v321_v27 }
 0x653   :  { %2506 = vperm.xlu2 %2940, %v2502_v15   ;;  %v772_v17 = vsub.f32 1.5, %v771_v25  ;;  %vm320_vm6 = vcmp.eq.f32.partialorder %v319_v8, 8.507059e+37 }
 0x655   :  { %v773_v35 = vmul.f32 %v2953_v61, %v772_v17 }
 0x656   :  { %v2957_v10 = vpop.eup %2956 }
 0x657   :  { %v777_v6 = vsel %vm776_vm1, %v2953_v61, %v773_v35  ;;  %v311_v19 = vmul.f32 %v2957_v10, %v306_v43  ;;  %vm316_vm9 = vweird.f32 %v2957_v10 }
 0x658   :  { %v5462_v2 = vmul.f32 %v777_v6, %v622_v13  ;;  %vm317_vm10 = vmor %vm315_vm8, %vm316_vm9  ;;  %v2463_v13 = vld [vmem:[%s5627_s11 + $0x8] sm:$0xff] }
 0x659   :  { %v312_v46 = vsub.f32 1.0, %v311_v19 }
 0x65a   :  { %v781_v20 = vmul.f32 %v5462_v2, %v5123_v62  ;;  %v5916_v62 = vmov 0  }
 0x65b   :  { %2511 = vperm.xlu2 %2940, %v2503_v29   ;;  %v313_v48 = vmul.f32 %v2957_v10, %v312_v46 }
 0x65c   :  { %v783_v1 = vsub.f32 %v626_v42, %v781_v20 }
 0x65d   :  { %v314_v7 = vadd.f32 %v2957_v10, %v313_v48 }
 0x65f   :  { %v318_v60 = vsel %vm317_vm10, %v2957_v10, %v314_v7 }
 0x660   :  { %v5473_v47 = vsel %vm320_vm6, %v322_v32, %v318_v60 }
 0x663   :  { %2674 = vperm.xlu2 %2940, %v5464_v24  }
 0x66b   :  { %2691 = vperm.xlu2 %2940, %v783_v1   ;;  %v5917_v1 = vld [vmem:[#allocation43_spill] sm:$0xff] }
 0x673   :  { %2941 = vset.pattern.permute.xlu2 %v5915_v22 }
 0x674   :  { %2757 = vperm.xlu2 %2941, %v5473_v47  }
 0x67c   :  { %2942 = vset.pattern.permute.xlu2 %v5916_v62 }
 0x683   :  { %v2391_v57 = vpop.f32.mrf.mxu3 }
 0x684   :  { %v2392_v21 = vadd.f32 %v2391_v57, %v2368_v31 }
 0x686   :  { %v2395_v12 = vmul.f32 0.0052083335, %v2392_v21 }
 0x688   :  { %2403 = vperm.xlu0 %2938, %v2395_v12  }
 0x6a5   :  { %v2399_v44 = vpop.permute.xlu2 %2398 }
 0x6a6   :  { %v2406_v3 = vsub.f32 %v5025_v28, %v2399_v44  ;;  %v2407_v36 = vsub.f32 %v5357_v23, %v2399_v44 }
 0x6a8   :  { %v2410_v51 = vmul.f32 %v2406_v3, %v2406_v3  ;;  %v2411_v26 = vmul.f32 %v2407_v36, %v2407_v36 }
 0x6aa   :  { %2430 = vmatmul.f32.vlgmr.msrb.gmra.mxu0 %v2410_v51  ;;  %2453 = vmatmul.f32.vlgmr.msrb.gmra.mxu1 %v2411_v26  ;;  %v5918_v26 = vld [vmem:[#allocation18_spill] sm:$0xff] }
 0x6ad   :  { %v2507_v20 = vpop.permute.xlu2 %2506 }
 0x6b5   :  { %v2512_v57 = vpop.permute.xlu2 %2511 }
 0x6fa   :  { %v2404_v9 = vpop.permute.xlu0 %2403 }
 0x6fb   :  { %v2408_v34 = vsub.f32 %v5393_v4, %v2404_v9  ;;  %v2409_v0 = vsub.f32 %v5446_v18, %v2404_v9  ;;  %v2462_v4 = vld [vmem:[%s5627_s11] sm:$0xff]  ;;  %v2805_v9 = vmul.f32 -1.442695, %v5918_v26 }
 0x6fd   :  { %v2412_v5 = vmul.f32 %v2408_v34, %v2408_v34  ;;  %v2413_v40 = vmul.f32 %v2409_v0, %v2409_v0 }
 0x6ff   :  { %2433 = vmatmul.f32.gmra.mxu0 %v2412_v5  ;;  %2456 = vmatmul.f32.gmra.mxu1 %v2413_v40 }
 0x727   :  { %v2431_v14 = vpop.f32.mrf.mxu0  ;;  %v2454_v45 = vpop.f32.mrf.mxu1 }
 0x728   :  { %v2455_v54 = vadd.f32 %v2454_v45, %v2431_v14 }
 0x72a   :  { %v2460_v52 = vmul.f32 0.0052083335, %v2455_v54 }
 0x72c   :  { %v2464_v28 = vadd.f32 1e-05, %v2460_v52 }
 0x72e   :  { %2958 = vrsqrt.f32 %v2464_v28  ;;  %vm2472_vm4 = vweird.f32 %v2464_v28 }
 0x734   :  { %v2959_v23 = vpop.eup %2958 }
 0x735   :  { %v2467_v50 = vmul.f32 %v2959_v23, %v2464_v28  ;;  %vm2473_vm7 = vweird.f32 %v2959_v23 }
 0x736   :  { %vm2474_vm5 = vmor %vm2472_vm4, %vm2473_vm7 }
 0x737   :  { %v2468_v33 = vmul.f32 %v2959_v23, %v2467_v50 }
 0x739   :  { %v2469_v61 = vmul.f32 0.5, %v2468_v33 }
 0x73b   :  { %v2470_v30 = vsub.f32 1.5, %v2469_v61 }
 0x73d   :  { %v2471_v38 = vmul.f32 %v2959_v23, %v2470_v30 }
 0x73f   :  { %v2475_v18 = vsel %vm2474_vm5, %v2959_v23, %v2471_v38 }
 0x740   :  { %v2486_v63 = vmul.f32 %v2475_v18, %v2462_v4  ;;  %v5919_v18 = vld [vmem:[#allocation17_spill] sm:$0xff] }
 0x742   :  { %2490 = vperm.xlu1 %2939, %v2486_v63   ;;  %v2804_v63 = vmul.f32 -1.442695, %v5919_v18  ;;  %v3044_v18 = vld [vmem:[%s5742_s19 + $0x8] sm:$0xff] }
 0x77c   :  { %v2434_v49 = vpop.f32.mrf.mxu0  ;;  %v2457_v15 = vpop.f32.mrf.mxu1 }
 0x77d   :  { %v2458_v16 = vadd.f32 %v2457_v15, %v2434_v49 }
 0x77f   :  { %v2461_v25 = vmul.f32 0.0052083335, %v2458_v16 }
 0x781   :  { %v2465_v43 = vadd.f32 1e-05, %v2461_v25 }
 0x783   :  { %2960 = vrsqrt.f32 %v2465_v43  ;;  %vm2482_vm2 = vweird.f32 %v2465_v43 }
 0x784   :  { %2962 = vpow2.f32 %v2805_v9 }
 0x789   :  { %v2961_v41 = vpop.eup %2960 }
 0x78a   :  { %v2477_v17 = vmul.f32 %v2961_v41, %v2465_v43  ;;  %vm2483_vm15 = vweird.f32 %v2961_v41 }
 0x78b   :  { %vm2484_vm11 = vmor %vm2482_vm2, %vm2483_vm15 }
 0x78c   :  { %v2478_v29 = vmul.f32 %v2961_v41, %v2477_v17 }
 0x78e   :  { %v2479_v55 = vmul.f32 0.5, %v2478_v29 }
 0x790   :  { %v2480_v35 = vsub.f32 1.5, %v2479_v55 }
 0x792   :  { %v2481_v10 = vmul.f32 %v2961_v41, %v2480_v35 }
 0x794   :  { %v2485_v6 = vsel %vm2484_vm11, %v2961_v41, %v2481_v10 }
 0x795   :  { %v2487_v56 = vmul.f32 %v2485_v6, %v2463_v13  ;;  %v780_v6 = vmul.f32 %v5464_v24, %v5237_v53 }
 0x797   :  { %2495 = vperm.xlu1 %2939, %v2487_v56   ;;  %v625_v56 = vld [vmem:[%s5631_s15] sm:$0xff] }
 0x7b4   :  { %v2491_v58 = vpop.permute.xlu1 %2490 }
 0x7b5   :  { %v2498_v19 = vmul.f32 %v2491_v58, %v2406_v3  ;;  %v2499_v46 = vmul.f32 %v2491_v58, %v2407_v36 }
 0x7b7   :  { %v2514_v42 = vadd.f32 %v2507_v20, %v2498_v19  ;;  %v2515_v48 = vadd.f32 %v2507_v20, %v2499_v46  ;;  %v782_v46 = vsub.f32 %v625_v56, %v780_v6 }
 0x7b9   :  { %vm2518_vm3 = vcmp.ge.f32.partialorder %v2514_v42, 0.0  ;;  %v2522_v7 = vmul.f32 %v2514_v42, %v5917_v1  ;;  %vm2519_vm12 = vcmp.ge.f32.partialorder %v2515_v48, 0.0  ;;  %v2523_v27 = vmul.f32 %v2515_v48, %v5917_v1 }
 0x7bb   :  { %v5489_v8 = vsel %vm2518_vm3, %v2514_v42, %v2522_v7  ;;  %v5491_v60 = vsel %vm2519_vm12, %v2515_v48, %v2523_v27 }
 0x7bc   :  { %2546 = vmatmul.f32.vlgmr.msra.gmra.mxu2 %v5489_v8  ;;  %2569 = vmatmul.f32.vlgmr.msrb.gmra.mxu3 %v5491_v60 }
 0x809   :  { %v2496_v32 = vpop.permute.xlu1 %2495 }
 0x80a   :  { %v2500_v62 = vmul.f32 %v2496_v32, %v2408_v34  ;;  %v2501_v31 = vmul.f32 %v2496_v32, %v2409_v0  ;;  %v2963_v34 = vpop.eup %2962 }
 0x80b   :  { %v308_v0 = vadd.f32 1.0, %v2963_v34 }
 0x80c   :  { %v2516_v21 = vadd.f32 %v2512_v57, %v2500_v62  ;;  %v2517_v12 = vadd.f32 %v2512_v57, %v2501_v31 }
 0x80d   :  { %2964 = vrcp.f32 %v308_v0  ;;  %v351_v33 = vand.u32 2147483648, %v308_v0  ;;  %vm345_vm1 = vweird.f32 %v308_v0  ;;  %v349_v61 = vand.u32 2147483647, %v308_v0 }
 0x80e   :  { %vm2520_vm13 = vcmp.ge.f32.partialorder %v2516_v21, 0.0  ;;  %v2524_v44 = vmul.f32 %v2516_v21, %v5917_v1  ;;  %vm2521_vm14 = vcmp.ge.f32.partialorder %v2517_v12, 0.0  ;;  %v2525_v3 = vmul.f32 %v2517_v12, %v5917_v1 }
 0x80f   :  { %v352_v38 = vor.u32 1.1754944e-38, %v351_v33  ;;  %vm350_vm8 = vcmp.eq.f32.partialorder %v349_v61, 8.507059e+37  ;;  %2966 = vpow2.f32 %v2804_v63 }
 0x810   :  { %v5497_v36 = vsel %vm2520_vm13, %v2516_v21, %v2524_v44  ;;  %v5499_v51 = vsel %vm2521_vm14, %v2517_v12, %v2525_v3 }
 0x811   :  { %2549 = vmatmul.f32.gmra.mxu2 %v5497_v36  ;;  %2572 = vmatmul.f32.gmra.mxu3 %v5499_v51 }
 0x813   :  { %v2965_v54 = vpop.eup %2964 }
 0x814   :  { %v341_v52 = vmul.f32 %v2965_v54, %v308_v0  ;;  %vm346_vm0 = vweird.f32 %v2965_v54  ;;  %v2675_v0 = vpop.permute.xlu2 %2674 }
 0x815   :  { %vm347_vm9 = vmor %vm345_vm1, %vm346_vm0  ;;  %v2967_v15 = vpop.eup %2966  ;;  %v2682_v61 = vmul.f32 %v2675_v0, %v5910_v39 }
 0x816   :  { %v342_v28 = vsub.f32 1.0, %v341_v52 }
 0x818   :  { %v343_v23 = vmul.f32 %v2965_v54, %v342_v28 }
 0x81a   :  { %v344_v50 = vadd.f32 %v2965_v54, %v343_v23 }
 0x81c   :  { %v348_v30 = vsel %vm347_vm9, %v2965_v54, %v344_v50 }
 0x81d   :  { %v5509_v4 = vsel %vm350_vm8, %v352_v38, %v348_v30  ;;  %v2752_v30 = vmul.f32 %v2675_v0, %v5911_v37 }
 0x83f   :  { %v2547_v5 = vpop.f32.mrf.mxu2  ;;  %v2570_v40 = vpop.f32.mrf.mxu3 }
 0x840   :  { %v2571_v14 = vadd.f32 %v2570_v40, %v2547_v5  ;;  %v5530_v5 = vpop.permute.xlu2 %2691 }
 0x842   :  { %v5504_v45 = vmul.f32 0.0052083335, %v2571_v14 }
 0x844   :  { %2580 = vperm.xlu0 %2938, %v5504_v45  }
 0x848   :  { %v2758_v50 = vpop.permute.xlu2 %2757 }
 0x849   :  { %v2764_v63 = vmul.f32 %v3044_v18, %v2758_v50 }
 0x84c   :  { %2679 = vperm.xlu0 %2938, %v5462_v2   ;;  %v5920_v2 = vld [vmem:[#allocation19_spill] sm:$0xff] }
 0x84d   :  { %v2806_v49 = vmul.f32 -1.442695, %v5920_v2  ;;  %v3045_v2 = vld [vmem:[%s5742_s19] sm:$0xff] }
 0x84f   :  { %2968 = vpow2.f32 %v2806_v49 }
 0x854   :  { %2698 = vperm.xlu0 %2938, %v5473_v47   ;;  %v307_v47 = vadd.f32 1.0, %v2967_v15 }
 0x855   :  { %v2969_v16 = vpop.eup %2968 }
 0x856   :  { %2970 = vrcp.f32 %v307_v47  ;;  %v309_v25 = vadd.f32 1.0, %v2969_v16  ;;  %v336_v48 = vand.u32 2147483648, %v307_v47  ;;  %vm330_vm6 = vweird.f32 %v307_v47 }
 0x857   :  { %v334_v1 = vand.u32 2147483647, %v307_v47 }
 0x858   :  { %2972 = vrcp.f32 %v309_v25  ;;  %v337_v32 = vor.u32 1.1754944e-38, %v336_v48  ;;  %v366_v62 = vand.u32 2147483648, %v309_v25  ;;  %vm360_vm15 = vweird.f32 %v309_v25  ;;  %v623_v48 = vld [vmem:[%s5630_s14 + $0x10] sm:$0xff] }
 0x859   :  { %vm335_vm4 = vcmp.eq.f32.partialorder %v334_v1, 8.507059e+37  ;;  %v364_v31 = vand.u32 2147483647, %v309_v25 }
 0x85a   :  { %v367_v21 = vor.u32 1.1754944e-38, %v366_v62 }
 0x85b   :  { %vm365_vm11 = vcmp.eq.f32.partialorder %v364_v31, 8.507059e+37 }
 0x85c   :  { %2738 = vperm.xlu0 %2938, %v5509_v4   ;;  %v2971_v43 = vpop.eup %2970 }
 0x85d   :  { %v326_v55 = vmul.f32 %v2971_v43, %v307_v47  ;;  %vm331_vm10 = vweird.f32 %v2971_v43 }
 0x85e   :  { %v2973_v13 = vpop.eup %2972  ;;  %vm332_vm7 = vmor %vm330_vm6, %vm331_vm10 }
 0x85f   :  { %v327_v10 = vsub.f32 1.0, %v326_v55  ;;  %v356_v19 = vmul.f32 %v2973_v13, %v309_v25  ;;  %vm361_vm5 = vweird.f32 %v2973_v13 }
 0x860   :  { %vm362_vm2 = vmor %vm360_vm15, %vm361_vm5 }
 0x861   :  { %v328_v58 = vmul.f32 %v2971_v43, %v327_v10  ;;  %v357_v42 = vsub.f32 1.0, %v356_v19 }
 0x863   :  { %v329_v20 = vadd.f32 %v2971_v43, %v328_v58  ;;  %v358_v27 = vmul.f32 %v2973_v13, %v357_v42 }
 0x865   :  { %v333_v7 = vsel %vm332_vm7, %v2971_v43, %v329_v20  ;;  %v359_v24 = vadd.f32 %v2973_v13, %v358_v27  ;;  %v627_v27 = vld [vmem:[%s5631_s15 + $0x10] sm:$0xff] }
 0x866   :  { %v5522_v53 = vsel %vm335_vm4, %v337_v32, %v333_v7 }
 0x867   :  { %v363_v57 = vsel %vm362_vm2, %v2973_v13, %v359_v24 }
 0x868   :  { %v5525_v12 = vsel %vm365_vm11, %v367_v21, %v363_v57 }
 0x894   :  { %v2550_v41 = vpop.f32.mrf.mxu2  ;;  %v2573_v17 = vpop.f32.mrf.mxu3 }
 0x895   :  { %v2574_v29 = vadd.f32 %v2573_v17, %v2550_v41  ;;  %v3046_v41 = vld [vmem:[%s5742_s19 + $0x10] sm:$0xff] }
 0x897   :  { %v5514_v35 = vmul.f32 0.0052083335, %v2574_v29 }
 0x899   :  { %2585 = vperm.xlu1 %2939, %v5514_v35  }
 0x8a1   :  { %2686 = vperm.xlu1 %2939, %v782_v46  }
 0x8a9   :  { %2703 = vperm.xlu1 %2939, %v5522_v53  }
 0x8b1   :  { %2743 = vperm.xlu1 %2939, %v5525_v12  }
 0x8b6   :  { %v2581_v44 = vpop.permute.xlu0 %2580 }
 0x8b7   :  { %v2588_v3 = vsub.f32 %v5489_v8, %v2581_v44  ;;  %v2589_v26 = vsub.f32 %v5491_v60, %v2581_v44 }
 0x8b9   :  { %v2592_v9 = vmul.f32 %v2588_v3, %v2588_v3  ;;  %v2593_v34 = vmul.f32 %v2589_v26, %v2589_v26 }
 0x8bb   :  { %2612 = vmatmul.f32.vlgmr.msra.gmra.mxu0 %v2592_v9  ;;  %2635 = vmatmul.f32.vlgmr.msra.gmra.mxu1 %v2593_v34 }
 0x8be   :  { %v5532_v40 = vpop.permute.xlu0 %2679 }
 0x8bf   :  { %v2683_v39 = vmul.f32 %v5532_v40, %v5912_v59 }
 0x8c1   :  { %v2695_v43 = vadd.f32 %v5530_v5, %v2683_v39 }
 0x8c6   :  { %v2699_v33 = vpop.permute.xlu0 %2698 }
 0x8c7   :  { %v2706_v49 = vmul.f32 %v3045_v2, %v2699_v33 }
 0x90b   :  { %v2586_v14 = vpop.permute.xlu1 %2585 }
 0x90c   :  { %v2590_v54 = vsub.f32 %v5497_v36, %v2586_v14  ;;  %v2591_v52 = vsub.f32 %v5499_v51, %v2586_v14 }
 0x90e   :  { %v2594_v28 = vmul.f32 %v2590_v54, %v2590_v54  ;;  %v2595_v23 = vmul.f32 %v2591_v52, %v2591_v52  ;;  %v628_v52 = vld [vmem:[%s5631_s15 + $0x18] sm:$0xff] }
 0x910   :  { %2615 = vmatmul.f32.gmra.mxu0 %v2594_v28  ;;  %2638 = vmatmul.f32.gmra.mxu1 %v2595_v23 }
 0x913   :  { %v2687_v38 = vpop.permute.xlu1 %2686 }
 0x914   :  { %v2694_v15 = vadd.f32 %v2687_v38, %v2682_v61  ;;  %v2754_v47 = vadd.f32 %v2752_v30, %v2687_v38  ;;  %v2739_v61 = vpop.permute.xlu0 %2738 }
 0x916   :  { %v2708_v16 = vadd.f32 %v2706_v49, %v2694_v15  ;;  %v2766_v25 = vadd.f32 %v2764_v63, %v2754_v47 }
 0x918   :  { %2710 = vst [vmem:[%s5632_s16] sm:$0xff] %v2708_v16 }
 0x919   :  { %2768 = vst [vmem:[%s5632_s16 + $0x8] sm:$0xff] %v2766_v25 }
 0x91b   :  { %v2704_v37 = vpop.permute.xlu1 %2703 }
 0x91c   :  { %v2707_v17 = vmul.f32 %v3046_v41, %v2704_v37  ;;  %v3050_v41 = vld [vmem:[%s5742_s19 + $0x38] sm:$0xff] }
 0x91e   :  { %v2709_v29 = vadd.f32 %v2707_v17, %v2695_v43 }
 0x920   :  { %2711 = vst [vmem:[%s5632_s16 + $0x10] sm:$0xff] %v2709_v29 }
 0x923   :  { %v2744_v50 = vpop.permute.xlu1 %2743 }
 0x938   :  { %v2613_v59 = vpop.f32.mrf.mxu0  ;;  %v2636_v55 = vpop.f32.mrf.mxu1 }
 0x939   :  { %v2637_v10 = vadd.f32 %v2636_v55, %v2613_v59 }
 0x93b   :  { %v2642_v13 = vmul.f32 0.0052083335, %v2637_v10 }
 0x93d   :  { %v2644_v6 = vadd.f32 1e-05, %v2642_v13  ;;  %v2753_v13 = vmul.f32 %v5532_v40, %v5913_v11 }
 0x93f   :  { %2974 = vrsqrt.f32 %v2644_v6  ;;  %vm2652_vm12 = vweird.f32 %v2644_v6 }
 0x945   :  { %v2975_v56 = vpop.eup %2974 }
 0x946   :  { %v2647_v58 = vmul.f32 %v2975_v56, %v2644_v6  ;;  %vm2653_vm3 = vweird.f32 %v2975_v56  ;;  %v3051_v6 = vld [vmem:[%s5742_s19 + $0x18] sm:$0xff] }
 0x947   :  { %vm2654_vm13 = vmor %vm2652_vm12, %vm2653_vm3 }
 0x948   :  { %v2648_v19 = vmul.f32 %v2975_v56, %v2647_v58 }
 0x94a   :  { %v2649_v46 = vmul.f32 0.5, %v2648_v19 }
 0x94c   :  { %v2650_v20 = vsub.f32 1.5, %v2649_v46 }
 0x94e   :  { %v2651_v42 = vmul.f32 %v2975_v56, %v2650_v20 }
 0x950   :  { %v2655_v1 = vsel %vm2654_vm13, %v2975_v56, %v2651_v42 }
 0x951   :  { %v2666_v7 = vmul.f32 %v2655_v1, %v623_v48 }
 0x953   :  { %2714 = vperm.xlu2 %2942, %v2666_v7   ;;  %v2668_v32 = vmul.f32 %v2666_v7, %v5504_v45  ;;  %v624_v45 = vld [vmem:[%s5630_s14 + $0x18] sm:$0xff] }
 0x955   :  { %v2670_v24 = vsub.f32 %v627_v27, %v2668_v32 }
 0x957   :  { %2726 = vperm.xlu1 %2939, %v2670_v24  }
 0x95f   :  { %2944 = vset.pattern.permute.xlu1 %v5915_v22 }
 0x960   :  { %2775 = vperm.xlu1 %2944, %v5509_v4  }
 0x98d   :  { %v2616_v62 = vpop.f32.mrf.mxu0  ;;  %v2639_v31 = vpop.f32.mrf.mxu1 }
 0x98e   :  { %v2640_v57 = vadd.f32 %v2639_v31, %v2616_v62 }
 0x990   :  { %v2643_v21 = vmul.f32 0.0052083335, %v2640_v57 }
 0x992   :  { %v2645_v44 = vadd.f32 1e-05, %v2643_v21 }
 0x994   :  { %2976 = vrsqrt.f32 %v2645_v44  ;;  %vm2662_vm0 = vweird.f32 %v2645_v44 }
 0x99a   :  { %v2977_v3 = vpop.eup %2976 }
 0x99b   :  { %v2657_v26 = vmul.f32 %v2977_v3, %v2645_v44  ;;  %vm2663_vm14 = vweird.f32 %v2977_v3 }
 0x99c   :  { %vm2664_vm1 = vmor %vm2662_vm0, %vm2663_vm14 }
 0x99d   :  { %v2658_v9 = vmul.f32 %v2977_v3, %v2657_v26 }
 0x99f   :  { %v2659_v34 = vmul.f32 0.5, %v2658_v9 }
 0x9a1   :  { %v2660_v0 = vsub.f32 1.5, %v2659_v34 }
 0x9a3   :  { %v2661_v14 = vmul.f32 %v2977_v3, %v2660_v0 }
 0x9a5   :  { %v2665_v4 = vsel %vm2664_vm1, %v2977_v3, %v2661_v14 }
 0x9a6   :  { %v2667_v54 = vmul.f32 %v2665_v4, %v624_v45 }
 0x9a8   :  { %2719 = vperm.xlu0 %2938, %v2667_v54   ;;  %v2669_v28 = vmul.f32 %v2667_v54, %v5514_v35  ;;  %v3047_v35 = vld [vmem:[%s5742_s19 + $0x20] sm:$0xff] }
 0x9a9   :  { %v2746_v18 = vmul.f32 %v3047_v35, %v2739_v61 }
 0x9aa   :  { %v2671_v23 = vsub.f32 %v628_v52, %v2669_v28 }
 0x9ac   :  { %2731 = vperm.xlu2 %2942, %v2671_v23  }
 0x9ad   :  { %v2715_v33 = vpop.permute.xlu2 %2714 }
 0x9ae   :  { %v2722_v30 = vmul.f32 %v2715_v33, %v5489_v8  ;;  %v3048_v8 = vld [vmem:[%s5742_s19 + $0x28] sm:$0xff] }
 0x9b0   :  { %2943 = vset.pattern.permute.xlu0 %v5915_v22 }
 0x9b1   :  { %2761 = vperm.xlu0 %2943, %v5522_v53  }
 0x9b4   :  { %2945 = vset.pattern.permute.xlu2 %v5915_v22  ;;  %v2770_v22 = vmul.f32 %v2715_v33, %v5491_v60  ;;  %v3049_v60 = vld [vmem:[%s5742_s19 + $0x30] sm:$0xff] }
 0x9b5   :  { %2779 = vperm.xlu2 %2945, %v5525_v12   ;;  %v2747_v43 = vmul.f32 %v3049_v60, %v2744_v50 }
 0x9c9   :  { %v2727_v38 = vpop.permute.xlu1 %2726 }
 0x9ca   :  { %v2734_v63 = vadd.f32 %v2727_v38, %v2722_v30  ;;  %v2772_v12 = vadd.f32 %v2770_v22, %v2727_v38 }
 0x9cc   :  { %v2748_v2 = vadd.f32 %v2746_v18, %v2734_v63 }
 0x9ce   :  { %2750 = vst [vmem:[%s5632_s16 + $0x20] sm:$0xff] %v2748_v2 }
 0x9d2   :  { %v2776_v53 = vpop.permute.xlu1 %2775 }
 0x9d3   :  { %v2782_v49 = vmul.f32 %v3048_v8, %v2776_v53 }
 0x9d5   :  { %v2784_v15 = vadd.f32 %v2782_v49, %v2772_v12 }
 0x9d7   :  { %2786 = vst [vmem:[%s5632_s16 + $0x28] sm:$0xff] %v2784_v15 }
 0xa06   :  { %v2732_v47 = vpop.permute.xlu2 %2731 }
 0xa0f   :  { %v2780_v16 = vpop.permute.xlu2 %2779 }
 0xa10   :  { %v2783_v17 = vmul.f32 %v3050_v41, %v2780_v16 }
 0xa1a   :  { %v2720_v25 = vpop.permute.xlu0 %2719 }
 0xa1b   :  { %v2723_v39 = vmul.f32 %v2720_v25, %v5497_v36  ;;  %v2771_v37 = vmul.f32 %v2720_v25, %v5499_v51  ;;  %v2755_v51 = vadd.f32 %v2753_v13, %v5530_v5 }
 0xa1d   :  { %v2735_v29 = vadd.f32 %v2732_v47, %v2723_v39  ;;  %v2773_v59 = vadd.f32 %v2771_v37, %v2732_v47 }
 0xa1f   :  { %v2749_v55 = vadd.f32 %v2747_v43, %v2735_v29  ;;  %v2785_v10 = vadd.f32 %v2783_v17, %v2773_v59 }
 0xa21   :  { %2751 = vst [vmem:[%s5632_s16 + $0x30] sm:$0xff] %v2749_v55 }
 0xa22   :  { %2787 = vst [vmem:[%s5632_s16 + $0x38] sm:$0xff] %v2785_v10 }
 0xa23   :  { %v2762_v36 = vpop.permute.xlu0 %2761 }
 0xa24   :  { %v2765_v56 = vmul.f32 %v3051_v6, %v2762_v36 }
 0xa26   :  { %v2767_v58 = vadd.f32 %v2765_v56, %v2755_v51 }
 0xa28   :  { %2769 = vst [vmem:[%s5632_s16 + $0x18] sm:$0xff] %v2767_v58 }
 0xa29   :  { %2792 = vsyncpa [#allocation8], 1 }

</bundles_post_ra>
